<compile_context>
chip_gen: v7x
topology: tpu7x:2x2x1
jax: 0.10.0
libtpu: 0.0.40
codegen_flags: <defaults>
</compile_context>

<pallas_src>
import math

import jax
import jax.numpy as jnp
from jax.experimental import pallas as pl
from jax.experimental.pallas import tpu as pltpu


def mlp_kernel(x_ref, w1_ref, b1_ref, w2_ref, b2_ref, o_ref):
    # x:(M,C) f32 (resident) | w1:(C,TK) bf16 | b1:(1,TK) f32
    # w2:(TK,Cout) bf16 | b2:(1,Cout) f32 | o:(M,Cout) f32 (resident accumulator)
    k = pl.program_id(0)

    @pl.when(k == 0)
    def _():
        o_ref[...] = jnp.zeros_like(o_ref)

    # First matmul chunk on the MXU (bf16 inputs, f32 accumulate).
    x_bf16 = x_ref[...].astype(jnp.bfloat16)
    h = jnp.dot(x_bf16, w1_ref[...], preferred_element_type=jnp.float32)
    h = h + b1_ref[...]

    # Exact GELU (approximate='none'): 0.5 * h * (1 + erf(h / sqrt(2))), in f32.
    inv_sqrt2 = jnp.float32(1.0 / math.sqrt(2.0))
    g = 0.5 * h * (1.0 + jax.lax.erf(h * inv_sqrt2))

    # Second matmul chunk, accumulated across the hidden (k) grid axis directly
    # into the resident f32 output block.
    o_ref[...] += jnp.dot(g.astype(jnp.bfloat16), w2_ref[...],
                          preferred_element_type=jnp.float32)

    @pl.when(k == pl.num_programs(0) - 1)
    def _():
        o_ref[...] += b2_ref[...]


def mlp_pallas(x_2d_f32, w1_bf16, b1_f32, w2_bf16, b2_f32, *, tk=768):
    m_pad, c_in = x_2d_f32.shape
    hidden = w1_bf16.shape[1]
    c_out = w2_bf16.shape[1]
    assert hidden % tk == 0

    grid = (hidden // tk,)

    cost = pl.CostEstimate(
        flops=2 * m_pad * c_in * hidden + 2 * m_pad * hidden * c_out,
        transcendentals=m_pad * hidden,
        bytes_accessed=(x_2d_f32.size * x_2d_f32.dtype.itemsize
                        + w1_bf16.size * w1_bf16.dtype.itemsize
                        + w2_bf16.size * w2_bf16.dtype.itemsize
                        + b1_f32.size * b1_f32.dtype.itemsize
                        + b2_f32.size * b2_f32.dtype.itemsize
                        + m_pad * c_out * 4),
    )

    return pl.pallas_call(
        mlp_kernel,
        out_shape=jax.ShapeDtypeStruct((m_pad, c_out), jnp.float32),
        grid_spec=pltpu.PrefetchScalarGridSpec(
            num_scalar_prefetch=0,
            grid=grid,
            in_specs=[
                pl.BlockSpec((m_pad, c_in), lambda k: (0, 0)),   # x (resident, f32)
                pl.BlockSpec((c_in, tk), lambda k: (0, k)),      # w1 chunk (bf16)
                pl.BlockSpec((1, tk), lambda k: (0, k)),         # b1 chunk (f32)
                pl.BlockSpec((tk, c_out), lambda k: (k, 0)),     # w2 chunk (bf16)
                pl.BlockSpec((1, c_out), lambda k: (0, 0)),      # b2 (resident, f32)
            ],
            out_specs=pl.BlockSpec((m_pad, c_out), lambda k: (0, 0)),
        ),
        compiler_params=pltpu.CompilerParams(
            dimension_semantics=("arbitrary",),
            vmem_limit_bytes=16 << 20,
        ),
        cost_estimate=cost,
    )(x_2d_f32, w1_bf16, b1_f32, w2_bf16, b2_f32)


def module_forward(x, w1_bf16, b1_f32, w2_bf16, b2_f32, *, tk=768):
    # x: (B, H, W, C) f32.  Weights are expected pre-cast to bf16 (done once,
    # outside the hot path) so no per-call weight cast traffic remains.
    B, H, W, C = x.shape
    c_out = w2_bf16.shape[1]
    m = B * H * W
    x_2d = x.reshape(m, C)

    # Pad rows 196 -> 224 (multiple of 32) so tiles are unmasked; x stays f32
    # and is cast to bf16 inside the kernel.
    m_pad = ((m + 31) // 32) * 32
    if m_pad != m:
        x_2d = jnp.pad(x_2d, ((0, m_pad - m), (0, 0)))

    y_2d = mlp_pallas(x_2d, w1_bf16, b1_f32, w2_bf16, b2_f32, tk=tk)
    return y_2d[:m].reshape(B, H, W, c_out)


def _init_linear(key, in_features, out_features):
    # Deterministic init mimicking torch.nn.Linear: U(-1/sqrt(fan_in), 1/sqrt(fan_in)).
    kw, kb = jax.random.split(key)
    bound = 1.0 / math.sqrt(in_features)
    # Stored as (in, out) so the kernel does x @ w (== x @ W.T in torch).
    w = jax.random.uniform(kw, (in_features, out_features), jnp.float32, -bound, bound)
    b = jax.random.uniform(kb, (1, out_features), jnp.float32, -bound, bound)
    return w, b


if __name__ == "__main__":
    key = jax.random.PRNGKey(0)
    kx, k1, k2 = jax.random.split(key, 3)

    B, H, W, C = 1, 14, 14, 384
    HIDDEN = 1536

    x = jax.random.normal(kx, (B, H, W, C), jnp.float32)
    w1, b1 = _init_linear(k1, C, HIDDEN)
    w2, b2 = _init_linear(k2, HIDDEN, C)

    # One-time weight cast outside the hot path (per perf review).
    w1_bf16 = jax.block_until_ready(w1.astype(jnp.bfloat16))
    w2_bf16 = jax.block_until_ready(w2.astype(jnp.bfloat16))

    y = jax.block_until_ready(module_forward(x, w1_bf16, b1, w2_bf16, b2))

    # Plain-JAX f32 reference (exact GELU).
    x_2d = x.reshape(-1, C)
    h_ref = x_2d @ w1 + b1
    g_ref = 0.5 * h_ref * (1.0 + jax.lax.erf(h_ref / jnp.sqrt(2.0)))
    y_ref = (g_ref @ w2 + b2).reshape(B, H, W, C)

    assert y.shape == (B, H, W, C)
    # bf16 MXU matmuls with f32 accumulation -> looser tolerance than pure f32.
    assert jnp.allclose(y, y_ref, atol=3e-2, rtol=3e-2), "mismatch vs reference"

    print("KERNEL_OK")
</pallas_src>

<mosaic_0001>
module attributes {stable_mosaic.version = 11 : i64} {
  func.func @mlp_kernel(%arg0: i32, %arg1: memref<224x384xf32, #tpu.memory_space<vmem>>, %arg2: memref<384x768xbf16, #tpu.memory_space<vmem>>, %arg3: memref<1x768xf32, #tpu.memory_space<vmem>>, %arg4: memref<768x384xbf16, #tpu.memory_space<vmem>>, %arg5: memref<1x384xf32, #tpu.memory_space<vmem>>, %arg6: memref<224x384xf32, #tpu.memory_space<vmem>>) attributes {dimension_semantics = [#tpu.dimension_semantics<arbitrary>], iteration_bounds = array<i64: 2>, scalar_prefetch = 0 : i64, scratch_operands = 0 : i64, tpu.core_type = #tpu.core_type<tc>, window_params = [{pipeline_mode = #tpu.pipeline_mode<synchronous>, transform_indices = @transform_0, window_bounds = array<i64: 224, 384>}, {transform_indices = @transform_1, window_bounds = array<i64: 384, 768>}, {transform_indices = @transform_2, window_bounds = array<i64: 1, 768>}, {transform_indices = @transform_3, window_bounds = array<i64: 768, 384>}, {pipeline_mode = #tpu.pipeline_mode<synchronous>, transform_indices = @transform_4, window_bounds = array<i64: 1, 384>}, {pipeline_mode = #tpu.pipeline_mode<synchronous>, transform_indices = @transform_5, window_bounds = array<i64: 224, 384>}]} {
    %c0_i32 = arith.constant 0 : i32
    %0 = arith.cmpi eq, %arg0, %c0_i32 : i32
    %1 = arith.extui %0 : i1 to i32
    %c0_i32_0 = arith.constant 0 : i32
    %2 = arith.cmpi ne, %1, %c0_i32_0 : i32
    scf.if %2 {
      %cst_17 = arith.constant 0.000000e+00 : f32
      %27 = vector.broadcast %cst_17 : f32 to vector<224x384xf32>
      %c0_18 = arith.constant 0 : index
      %c0_19 = arith.constant 0 : index
      %28 = vector.load %arg6[%c0_18, %c0_19] : memref<224x384xf32, #tpu.memory_space<vmem>>, vector<224x384xf32>
      tpu.vector_store %arg6[%c0_18, %c0_19], %27 {strides = array<i32>} : memref<224x384xf32, #tpu.memory_space<vmem>>, vector<224x384xf32>,
    } else {
    }
    %c0 = arith.constant 0 : index
    %c0_1 = arith.constant 0 : index
    %3 = vector.load %arg1[%c0, %c0_1] : memref<224x384xf32, #tpu.memory_space<vmem>>, vector<224x384xf32>
    %4 = arith.truncf %3 : vector<224x384xf32> to vector<224x384xbf16>
    %c0_2 = arith.constant 0 : index
    %c0_3 = arith.constant 0 : index
    %5 = vector.load %arg2[%c0_2, %c0_3] : memref<384x768xbf16, #tpu.memory_space<vmem>>, vector<384x768xbf16>
    %cst = arith.constant dense<0.000000e+00> : vector<224x768xf32>
    %6 = tpu.matmul %4, %5, %cst {dimension_numbers = #tpu.dot_dimension_numbers<[1], [0], [0], [1], [0, 0, 1, 1], [], []>} : vector<224x384xbf16>, vector<384x768xbf16>, vector<224x768xf32> -> vector<224x768xf32>
    %c0_4 = arith.constant 0 : index
    %c0_5 = arith.constant 0 : index
    %7 = vector.load %arg3[%c0_4, %c0_5] : memref<1x768xf32, #tpu.memory_space<vmem>>, vector<1x768xf32>
    %8 = vector.broadcast %7 : vector<1x768xf32> to vector<224x768xf32>
    %9 = arith.addf %6, %8 : vector<224x768xf32>
    %cst_6 = arith.constant 5.000000e-01 : f32
    %10 = vector.broadcast %cst_6 : f32 to vector<224x768xf32>
    %11 = arith.mulf %10, %9 : vector<224x768xf32>
    %cst_7 = arith.constant 0.707106769 : f32
    %12 = vector.broadcast %cst_7 : f32 to vector<224x768xf32>
    %13 = arith.mulf %9, %12 : vector<224x768xf32>
    %14 = math.erf %13 : vector<224x768xf32>
    %cst_8 = arith.constant 1.000000e+00 : f32
    %15 = vector.broadcast %cst_8 : f32 to vector<224x768xf32>
    %16 = arith.addf %15, %14 : vector<224x768xf32>
    %17 = arith.mulf %11, %16 : vector<224x768xf32>
    %c0_9 = arith.constant 0 : index
    %c0_10 = arith.constant 0 : index
    %18 = vector.load %arg6[%c0_9, %c0_10] : memref<224x384xf32, #tpu.memory_space<vmem>>, vector<224x384xf32>
    %19 = arith.truncf %17 : vector<224x768xf32> to vector<224x768xbf16>
    %c0_11 = arith.constant 0 : index
    %c0_12 = arith.constant 0 : index
    %20 = vector.load %arg4[%c0_11, %c0_12] : memref<768x384xbf16, #tpu.memory_space<vmem>>, vector<768x384xbf16>
    %cst_13 = arith.constant dense<0.000000e+00> : vector<224x384xf32>
    %21 = tpu.matmul %19, %20, %cst_13 {dimension_numbers = #tpu.dot_dimension_numbers<[1], [0], [0], [1], [0, 0, 1, 1], [], []>} : vector<224x768xbf16>, vector<768x384xbf16>, vector<224x384xf32> -> vector<224x384xf32>
    %22 = arith.addf %18, %21 : vector<224x384xf32>
    %c0_14 = arith.constant 0 : index
    %c0_15 = arith.constant 0 : index
    %23 = vector.load %arg6[%c0_14, %c0_15] : memref<224x384xf32, #tpu.memory_space<vmem>>, vector<224x384xf32>
    tpu.vector_store %arg6[%c0_14, %c0_15], %22 {strides = array<i32>} : memref<224x384xf32, #tpu.memory_space<vmem>>, vector<224x384xf32>,
    %c1_i32 = arith.constant 1 : i32
    %24 = arith.cmpi eq, %arg0, %c1_i32 : i32
    %25 = arith.extui %24 : i1 to i32
    %c0_i32_16 = arith.constant 0 : i32
    %26 = arith.cmpi ne, %25, %c0_i32_16 : i32
    scf.if %26 {
      %c0_17 = arith.constant 0 : index
      %c0_18 = arith.constant 0 : index
      %27 = vector.load %arg6[%c0_17, %c0_18] : memref<224x384xf32, #tpu.memory_space<vmem>>, vector<224x384xf32>
      %c0_19 = arith.constant 0 : index
      %c0_20 = arith.constant 0 : index
      %28 = vector.load %arg5[%c0_19, %c0_20] : memref<1x384xf32, #tpu.memory_space<vmem>>, vector<1x384xf32>
      %29 = vector.broadcast %28 : vector<1x384xf32> to vector<224x384xf32>
      %30 = arith.addf %27, %29 : vector<224x384xf32>
      %c0_21 = arith.constant 0 : index
      %c0_22 = arith.constant 0 : index
      %31 = vector.load %arg6[%c0_21, %c0_22] : memref<224x384xf32, #tpu.memory_space<vmem>>, vector<224x384xf32>
      tpu.vector_store %arg6[%c0_21, %c0_22], %30 {strides = array<i32>} : memref<224x384xf32, #tpu.memory_space<vmem>>, vector<224x384xf32>,
    } else {
    }
    return
  }
  func.func @transform_0(%arg0: i32) -> (i32, i32) {
    %c0_i32 = arith.constant 0 : i32
    %c0_i32_0 = arith.constant 0 : i32
    %c0_i32_1 = arith.constant 0 : i32
    return %c0_i32, %c0_i32_0 : i32, i32
  }
  func.func @transform_1(%arg0: i32) -> (i32, i32) {
    %c0_i32 = arith.constant 0 : i32
    %c0_i32_0 = arith.constant 0 : i32
    return %c0_i32, %arg0 : i32, i32
  }
  func.func @transform_2(%arg0: i32) -> (i32, i32) {
    %c0_i32 = arith.constant 0 : i32
    %c0_i32_0 = arith.constant 0 : i32
    return %c0_i32, %arg0 : i32, i32
  }
  func.func @transform_3(%arg0: i32) -> (i32, i32) {
    %c0_i32 = arith.constant 0 : i32
    %c0_i32_0 = arith.constant 0 : i32
    return %arg0, %c0_i32 : i32, i32
  }
  func.func @transform_4(%arg0: i32) -> (i32, i32) {
    %c0_i32 = arith.constant 0 : i32
    %c0_i32_0 = arith.constant 0 : i32
    %c0_i32_1 = arith.constant 0 : i32
    return %c0_i32, %c0_i32_0 : i32, i32
  }
  func.func @transform_5(%arg0: i32) -> (i32, i32) {
    %c0_i32 = arith.constant 0 : i32
    %c0_i32_0 = arith.constant 0 : i32
    %c0_i32_1 = arith.constant 0 : i32
    return %c0_i32, %c0_i32_0 : i32, i32
  }
}

</mosaic_0001>

<bundles_post_ra>
// kernel: tpu_custom_call.1
= control target key start
LH: loop header
LB: loop body
LE: loop exit
PB: predicated region body
PF: predicated region fallthrough
CT: control target
= control target key end

     0   :  { %s10912_s0 = inlined_call_operand.hbm [shape: f32[224,384], index: 0, kind: input, shape index: {}]   ;;  %s10913_s1 = inlined_call_operand.hbm [shape: bf16[384,1536], index: 1, kind: input, shape index: {}]   ;;  %s10914_s2 = inlined_call_operand.hbm [shape: f32[1,1536], index: 2, kind: input, shape index: {}]   ;;  %s10915_s3 = inlined_call_operand.hbm [shape: bf16[1536,384], index: 3, kind: input, shape index: {}]   ;;  %s10916_s4 = inlined_call_operand.hbm [shape: f32[1,384], index: 4, kind: input, shape index: {}]   ;;  %s10917_s5 = inlined_call_operand.hbm [shape: f32[224,384], index: 5, kind: output, shape index: {}]  }
   0x1   :  { %10960 = sst [smem:[#allocation79_spill]] %s10913_s1 }
   0x2   :  { %10 = vsyncpa [#allocation3], 0 }
   0x3   :  { %11 = vsyncpa [#allocation6], 0 }
   0x4   :  { %13 = vsyncpa [#allocation6 + $0x1], 0 }
   0x5   :  { %14 = vsyncpa [#allocation9], 0 }
   0x6   :  { %16 = vsyncpa [#allocation9 + $0x1], 0 }
   0x7   :  { %17 = vsyncpa [#allocation4], 0  ;;  %s8134_s18 = smov 0   ;;  %s8136_s19 = smov 0  }
   0x8   :  { %s8138_s20 = smov 0   ;;  %s8140_s21 = smov 0  }
   0x9 LB: > { %s8153_s22 = sadd.s32 4294967295, %s8087_s21   ;;  %s8156_s23 = sadd.s32 1, %s8087_s21   ;;  %s8087_s21 = sphi %s8140_s21, %s11150_s21   ;;  %s8083_s20 = sphi %s8138_s20, %s11149_s20   ;;  %s8079_s19 = sphi %s8136_s19, %s11148_s19   ;;  %s8075_s18 = sphi %s8134_s18, %s11147_s18  }
   0xa   : > { %s48_s24 = ssub.s32 %s8087_s21, %s8156_s23  ;;  %s51_s25 = sadd.s32 1, %s8083_s20 }
   0xb   : > { %p49_p0 = scmp.eq.s32.totalorder %s48_s24, 0  ;;  %p58_p1 = scmp.ne.s32.totalorder %s8083_s20, %s8079_s19 }
   0xc   : > { %p59_p2 = scmp.eq.s32.totalorder %s8087_s21, 0  ;;  %p64_p3 = scmp.ne.s32.totalorder %s8079_s19, %s8075_s18 }
   0xd   : > { %s8166_s26 = scalar_select %p49_p0, %s8083_s20, %s51_s25  }
   0xe   : > { %p8168_p4 = por %p59_p2, %p58_p1  ;;  %p10918_p5 = scmp.eq.s32.totalorder %s8153_s22, 0 }
   0xf   : > { %p5973_p6 = scmp.ge.s32.totalorder %s8087_s21, 1  ;;  %p169_p7 = scmp.lt.s32.totalorder %s8087_s21, 3 }
  0x10   : > { %p8177_p8 = por %p10918_p5, %p64_p3  ;;  %s8089_s30 = smov [#allocation10]  }
  0x11   : > { %p8182_p10 = pnand %p5973_p6, %p169_p7  ;;  %s195_s6 = sshll.u32 %s8089_s30, 4  ;;  %s196_s6 = int_to_ptr.vmem [resolvable:$true] %s195_s6 }
  0x12   : > { %s10962_s28 = scalar_select %p8177_p8, 1, 0 }
  0x13   : > { %s10963_s29 = scalar_select %p8182_p10, 1, 0 }
  0x14   : > { %p7051_p11 = pneg %p8182_p10  ;;  %p7070_p12 = scmp.lt.s32.totalorder %s8087_s21, 2 }
  0x15   : > { %s10925_s9 = sand.u32 1, %s8087_s21   ;;  %s7865_s12 = scalar_lea.hbm %s10916_s4, 48 }
  0x16   : > { %p8191_p13 = pnand %p7051_p11, %p10918_p5  ;;  %p8197_p0 = pnand %p7070_p12, %p8168_p4 }
  0x17   : > { %p7866_p1 = scmp.ne.s32.totalorder %s10916_s4, %s7865_s12  ;;  %p7872_p4 = scmp.lt.u32.totalorder %s7865_s12, %s10916_s4 }
  0x18   : > { %s10964_s7 = scalar_select %p8191_p13, 1, 0 }
  0x19   : > { %s10965_s8 = scalar_select %p8197_p0, 1, 0 }
  0x1a   : > { %p10922_p2 = pneg %p8191_p13 }
  0x1c   : > { %p7868_p3 = pnand %p10922_p2, %p7866_p1 }
  0x1e   : > { %p7869_p6 = pneg %p7868_p3 }
  0x20   : > { %p7874_p7 = pnand %p7872_p4, %p7869_p6 }
  0x22   : > { %7877 = shalt.err (!%p7874_p7)
}
  0x23   : > { %s7878_s17 = scalar_lea.vmem %s196_s6, 48  ;;  %s7885_s18 = scalar_lea.vmem %s196_s6, 64 }
  0x24   : > { %p7879_p11 = scmp.ne.s32.totalorder %s196_s6, %s7878_s17  ;;  %p7886_p5 = scmp.lt.s32.totalorder %s196_s6, %s196_s6 }
  0x25   : > { %p7887_p8 = scmp.lt.s32.totalorder %s7885_s18, %s7878_s17 }
  0x26   : > { %p7881_p12 = pnand %p7879_p11, %p10922_p2 }
  0x27   : > { %p7888_p10 = por %p7887_p8, %p7886_p5 }
  0x28   : > { %p7882_p9 = pneg %p7881_p12 }
  0x2a   : > { %p7889_p0 = pnand %p7888_p10, %p7882_p9 }
  0x2c   : > { %7892 = shalt.err (!%p7889_p0)
}
  0x2d   : > { %7057 = dma.hbm_to_vmem [thread:$0]  (!%p8191_p13), %s10916_s4, 48, %s196_s6, [#allocation9]  }
  0x2e   : > { %s10926_s27 = sand.u32 1, %s8083_s20   ;;  %s6277_s10 = smul.u32 384, %s8087_s21 }
  0x2f   : > { %s8227_s30 = smul.u32 1152, %s10926_s27  ;;  %s8090_s11 = smov [#allocation2]  }
  0x30   : > { %s181_s12 = sshll.u32 %s8090_s11, 4  ;;  %s10966_s1 = sld [smem:[#allocation79_spill]]  ;;  %s8238_s12 = int_to_ptr.vmem [resolvable:$true] %s181_s12 }
  0x31   : > { %s210_s16 = scalar_lea.vmem [#allocation5], %s8227_s30  ;;  %s8242_s6 = scalar_lea.sflag [#allocation6], %s10925_s9 }
  0x32   : > { %s217_s17 = sshll.u32 %s210_s16, 4  ;;  %p10967_p8 = scmp.ne.s32.totalorder %s10965_s8, 0  ;;  %s8236_s17 = int_to_ptr.vmem [resolvable:$true] %s217_s17 }
  0x34   : > { %p8248_p9 = pneg %p10967_p8 }
  0x36   : > { %s8233_s15 = scalar_lea.hbm %s10966_s1, %s6277_s10  ;;  %s7898_s11 = scalar_lea.hbm %s10966_s1, 36864 }
  0x37   : > { %s7893_s18 = scalar_lea.hbm %s8233_s15, 18432  ;;  %p7899_p1 = scmp.lt.u32.totalorder %s8233_s15, %s10966_s1 }
  0x38   : > { %p7894_p5 = scmp.ne.s32.totalorder %s8233_s15, %s7893_s18  ;;  %p7900_p3 = scmp.lt.u32.totalorder %s7898_s11, %s7893_s18 }
  0x39   : > { %p7902_p4 = scmp.lt.u32.totalorder %s7893_s18, %s8233_s15 }
  0x3a   : > { %p7896_p10 = pnand %p8248_p9, %p7894_p5  ;;  %p7901_p6 = por %p7900_p3, %p7899_p1 }
  0x3c   : > { %p7897_p0 = pneg %p7896_p10  ;;  %p7903_p7 = por %p7902_p4, %p7901_p6 }
  0x3e   : > { %p7904_p11 = pnand %p7903_p7, %p7897_p0 }
  0x40   : > { %7907 = shalt.err (!%p7904_p11)
}
  0x41   : > { %s7908_s16 = scalar_lea.vmem %s8236_s17, 18432  ;;  %s8091_s25 = smov [#allocation5]  }
  0x42   : > { %p7909_p12 = scmp.ne.s32.totalorder %s8236_s17, %s7908_s16  ;;  %s7913_s10 = sshll.u32 %s8091_s25, 4  ;;  %s7914_s10 = int_to_ptr.vmem [resolvable:$false] %s7913_s10 }
  0x43   : > { %s7915_s13 = scalar_lea.vmem %s7914_s10, 36864  ;;  %p7916_p2 = scmp.lt.s32.totalorder %s8236_s17, %s7914_s10 }
  0x44   : > { %p7911_p5 = pnand %p7909_p12, %p8248_p9  ;;  %p7917_p13 = scmp.lt.s32.totalorder %s7915_s13, %s7908_s16 }
  0x46   : > { %p7912_p10 = pneg %p7911_p5  ;;  %p7918_p1 = por %p7917_p13, %p7916_p2 }
  0x48   : > { %p7919_p3 = pnand %p7918_p1, %p7912_p10 }
  0x4a   : > { %7922 = shalt.err (!%p7919_p3)
}
  0x4b   : > { %s8092_s18 = smov 768   ;;  %s8093_s11 = smov 384  }
  0x4c   : > { %s8094_s14 = smov 24   ;;  %s7923_s25 = scalar_lea.hbm %s10912_s0, 10752 }
  0x4d   : > { %7061 = dma.hbm_to_vmem [thread:$0]  (!%p10967_p8), %s8233_s15, 18432, %s8236_s17, %s8242_s6, %s8092_s18, %s8093_s11, %s8094_s14  }
  0x4e   : > { %p7924_p13 = scmp.ne.s32.totalorder %s10912_s0, %s7923_s25  ;;  %p10969_p2 = scmp.ne.s32.totalorder %s10964_s7, 0 }
  0x4f   : > { %p7930_p7 = scmp.lt.u32.totalorder %s7923_s25, %s10912_s0 }
  0x50   : > { %p10970_p0 = pneg %p10969_p2 }
  0x52   : > { %p7926_p6 = pnand %p7924_p13, %p10970_p0 }
  0x54   : > { %p7927_p4 = pneg %p7926_p6 }
  0x56   : > { %p7932_p11 = pnand %p7930_p7, %p7927_p4 }
  0x58   : > { %7935 = shalt.err (!%p7932_p11)
}
  0x59   : > { %s7936_s9 = scalar_lea.vmem %s8238_s12, 10752  ;;  %p10971_p5 = pmov %p10970_p0 }
  0x5a   : > { %p7937_p12 = scmp.ne.s32.totalorder %s8238_s12, %s7936_s9  ;;  %p7944_p3 = scmp.lt.s32.totalorder %s8238_s12, %s8238_s12 }
  0x5b   : > { %p7945_p13 = scmp.lt.s32.totalorder %s7936_s9, %s7936_s9 }
  0x5c   : > { %p7939_p10 = pnand %p7937_p12, %p10971_p5 }
  0x5d   : > { %p7946_p0 = por %p7945_p13, %p7944_p3 }
  0x5e   : > { %p7940_p1 = pneg %p7939_p10 }
  0x60   : > { %p7947_p6 = pnand %p7946_p0, %p7940_p1 }
  0x62   : > { %7950 = shalt.err (!%p7947_p6)
}
  0x63   : > { %7054 = dma.hbm_to_vmem [thread:$0]  (!%p10969_p2), %s10912_s0, 10752, %s8238_s12, [#allocation3], %s8093_s11, %s8093_s11, %s8094_s14  }
  0x64   : > { %s10972_s15 = sand.u32 1, %s8083_s20   ;;  %s6278_s18 = smul.u32 96, %s8087_s21 }
  0x65   : > { %s7028_s17 = smul.u32 6, %s10972_s15 }
  0x66   : > { %s7071_s25 = smul.u32 18432, %s8087_s21  ;;  %s8304_s13 = scalar_lea.hbm %s10914_s2, %s6278_s18 }
  0x67   : > { %s231_s7 = scalar_lea.vmem [#allocation7], %s7028_s17  ;;  %s7951_s11 = scalar_lea.hbm %s8304_s13, 96 }
  0x68   : > { %s239_s9 = sshll.u32 %s231_s7, 4  ;;  %s8309_s12 = scalar_lea.hbm %s10915_s3, %s7071_s25  ;;  %s240_s9 = int_to_ptr.vmem [resolvable:$true] %s239_s9 }
  0x69   : > { %p7952_p2 = scmp.ne.s32.totalorder %s8304_s13, %s7951_s11  ;;  %s7956_s18 = scalar_lea.hbm %s10914_s2, 192 }
  0x6a   : > { %p7957_p11 = scmp.lt.u32.totalorder %s8304_s13, %s10914_s2  ;;  %p7958_p12 = scmp.lt.u32.totalorder %s7956_s18, %s7951_s11 }
  0x6b   : > { %p7954_p4 = pnand %p7952_p2, %p8248_p9  ;;  %p7960_p10 = scmp.lt.u32.totalorder %s7951_s11, %s8304_s13 }
  0x6c   : > { %p7959_p5 = por %p7958_p12, %p7957_p11 }
  0x6d   : > { %p7955_p7 = pneg %p7954_p4 }
  0x6e   : > { %p7961_p1 = por %p7960_p10, %p7959_p5 }
  0x70   : > { %p7962_p3 = pnand %p7961_p1, %p7955_p7 }
  0x72   : > { %7965 = shalt.err (!%p7962_p3)
}
  0x73   : > { %s7966_s17 = scalar_lea.vmem %s240_s9, 96  ;;  %s8095_s25 = smov [#allocation7]  }
  0x74   : > { %p7967_p13 = scmp.ne.s32.totalorder %s240_s9, %s7966_s17  ;;  %s7971_s7 = sshll.u32 %s8095_s25, 4  ;;  %s7972_s7 = int_to_ptr.vmem [resolvable:$false] %s7971_s7 }
  0x75   : > { %s7973_s1 = scalar_lea.vmem %s7972_s7, 192  ;;  %p7974_p2 = scmp.lt.s32.totalorder %s240_s9, %s7972_s7 }
  0x76   : > { %p7969_p0 = pnand %p7967_p13, %p8248_p9  ;;  %p7975_p4 = scmp.lt.s32.totalorder %s7973_s1, %s7966_s17 }
  0x78   : > { %p7970_p6 = pneg %p7969_p0  ;;  %p7976_p8 = por %p7975_p4, %p7974_p2 }
  0x7a   : > { %p7977_p11 = pnand %p7976_p8, %p7970_p6 }
  0x7c   : > { %7980 = shalt.err (!%p7977_p11)
}
  0x7d   : > { %p10973_p12 = scmp.ne.s32.totalorder %s10965_s8, 0  ;;  %s250_s27 = scalar_lea.vmem [#allocation8], %s8227_s30 }
  0x7e   : > { %s258_s11 = sshll.u32 %s250_s27, 4  ;;  %s10974_s14 = sand.u32 1, %s8087_s21   ;;  %s8330_s11 = int_to_ptr.vmem [resolvable:$true] %s258_s11 }
  0x7f   : > { %7064 = dma.hbm_to_vmem [thread:$0]  (!%p10973_p12), %s8304_s13, 96, %s240_s9, %s8242_s6  }
  0x80   : > { %s8334_s15 = scalar_lea.sflag [#allocation9], %s10974_s14  ;;  %s7981_s18 = scalar_lea.hbm %s8309_s12, 18432 }
  0x81   : > { %p7982_p8 = scmp.ne.s32.totalorder %s8309_s12, %s7981_s18  ;;  %s7986_s17 = scalar_lea.hbm %s10915_s3, 36864 }
  0x82   : > { %p7987_p10 = scmp.lt.u32.totalorder %s8309_s12, %s10915_s3  ;;  %p7988_p1 = scmp.lt.u32.totalorder %s7986_s17, %s7981_s18 }
  0x83   : > { %p7984_p7 = pnand %p7982_p8, %p8248_p9  ;;  %p7990_p13 = scmp.lt.u32.totalorder %s7981_s18, %s8309_s12 }
  0x84   : > { %p7989_p3 = por %p7988_p1, %p7987_p10 }
  0x85   : > { %p7985_p5 = pneg %p7984_p7 }
  0x86   : > { %p7991_p0 = por %p7990_p13, %p7989_p3 }
  0x88   : > { %p7992_p6 = pnand %p7991_p0, %p7985_p5 }
  0x8a   : > { %7995 = shalt.err (!%p7992_p6)
}
  0x8b   : > { %s7996_s21 = scalar_lea.vmem %s8330_s11, 18432  ;;  %s8096_s30 = smov [#allocation8]  }
  0x8c   : > { %p7997_p2 = scmp.ne.s32.totalorder %s8330_s11, %s7996_s21  ;;  %s8001_s6 = sshll.u32 %s8096_s30, 4  ;;  %s8002_s6 = int_to_ptr.vmem [resolvable:$false] %s8001_s6 }
  0x8d   : > { %s8003_s13 = scalar_lea.vmem %s8002_s6, 36864  ;;  %p8004_p8 = scmp.lt.s32.totalorder %s8330_s11, %s8002_s6 }
  0x8e   : > { %p7999_p4 = pnand %p7997_p2, %p8248_p9  ;;  %p8005_p7 = scmp.lt.s32.totalorder %s8003_s13, %s7996_s21 }
  0x90   : > { %p8000_p11 = pneg %p7999_p4  ;;  %p8006_p10 = por %p8005_p7, %p8004_p8 }
  0x92   : > { %p8007_p1 = pnand %p8006_p10, %p8000_p11 }
  0x94   : > { %8010 = shalt.err (!%p8007_p1)
}
  0x95   : > { %s8097_s9 = smov 192   ;;  %s8098_s1 = smov 12  }
  0x96   : > { %7067 = dma.hbm_to_vmem [thread:$0]  (!%p10973_p12), %s8309_s12, 18432, %s8330_s11, %s8334_s15, %s8097_s9, %s8097_s9, %s8098_s1  }
  0x97   : > { %p10975_p9 = scmp.ne.s32.totalorder %s10963_s29, 0 }
  0x99   : > { %270 = sbr.rel (%p10975_p9) target bundleno = 1420 (0x58c), region = 40 }
  0xa0   : > { %p10976_p5 = scmp.eq.s32.totalorder %s8153_s22, 0 }
  0xa2   : > { %8054 = dma.done.wait (%p10976_p5), [#allocation3], 10752   ;;  %p10977_p3 = pmov %p10976_p5 }
  0xa3   : > { %s276_s24 = sand.u32 1, %s8153_s22   ;;  %s278_s27 = sand.u32 1, %s8079_s19  }
  0xa4   : > { %8056 = vsyncadd (%p10977_p3), [#allocation3], 4294956544  ;;  %s7031_s14 = smul.u32 1152, %s278_s27  ;;  %s277_s18 = scalar_lea.sflag [#allocation6], %s276_s24 }
  0xa5   : > { %p10978_p13 = scmp.ne.s32.totalorder %s10962_s28, 0 }
  0xa6   : > { %s8366_s10 = scalar_lea.vmem [#allocation5], %s7031_s14 }
  0xa7   : > { %8058 = dma.done.wait (%p10978_p13), %s277_s18, 18528  }
  0xa8   : > { %8060 = vsyncadd (%p10978_p13), %s277_s18, 4294948768  ;;  %s8372_s29 = smul.u32 6, %s278_s27  ;;  %s295_s12 = scalar_lea.sflag [#allocation9], %s276_s24 }
  0xa9   : > { %s8375_s11 = scalar_lea.vmem [#allocation8], %s7031_s14 }
  0xaa   : > { %s289_s8 = scalar_lea.vmem [#allocation7], %s8372_s29 }
  0xab   : > { %8062 = dma.done.wait (%p10978_p13), %s295_s12, 18432  }
  0xac   : > { %8064 = vsyncadd (%p10978_p13), %s295_s12, 4294948864  ;;  %p10979_p12 = pmov %p10977_p3 }
  0xad   : > { %p10980_p0 = pmov %p10977_p3 }
  0xae   : > { %8066 = dma.done.wait (%p10979_p12), [#allocation9], 48  }
  0xaf   : > { %8068 = vsyncadd (%p10980_p0), [#allocation9], 4294967248  ;;  %p10981_p6 = scmp.ne.s32.totalorder %s8153_s22, 0 }
  0xb0   : > { %v8099_v0 = vmov (!%p10981_p6), 0.0  }
  0xb1   : > { %341 = sbr.rel (%p10981_p6) target bundleno = 219 (0xdb), region = 64  ;;  %342 = vst [vmem:[#allocation11] sm:$0xff] (!%p10981_p6), %v8099_v0  ;;  %343 = vst [vmem:[#allocation11 + $0x8] sm:$0xff] (!%p10981_p6), %v8099_v0 }
  0xb2   : > { %344 = vst [vmem:[#allocation11 + $0x10] sm:$0xff] (!%p10981_p6), %v8099_v0  ;;  %345 = vst [vmem:[#allocation11 + $0x18] sm:$0xff] (!%p10981_p6), %v8099_v0 }
  0xb3   : > { %346 = vst [vmem:[#allocation11 + $0x20] sm:$0xff] (!%p10981_p6), %v8099_v0  ;;  %347 = vst [vmem:[#allocation11 + $0x28] sm:$0xff] (!%p10981_p6), %v8099_v0 }
  0xb4   : > { %348 = vst [vmem:[#allocation11 + $0x30] sm:$0xff] (!%p10981_p6), %v8099_v0  ;;  %349 = vst [vmem:[#allocation11 + $0x38] sm:$0xff] (!%p10981_p6), %v8099_v0 }
  0xb5   : > { %350 = vst [vmem:[#allocation11 + $0x40] sm:$0xff] (!%p10981_p6), %v8099_v0  ;;  %351 = vst [vmem:[#allocation11 + $0x48] sm:$0xff] (!%p10981_p6), %v8099_v0 }
  0xb6   : > { %352 = vst [vmem:[#allocation11 + $0x50] sm:$0xff] (!%p10981_p6), %v8099_v0  ;;  %353 = vst [vmem:[#allocation11 + $0x58] sm:$0xff] (!%p10981_p6), %v8099_v0 }
  0xb7   : > { %354 = vst [vmem:[#allocation11 + $0x60] sm:$0xff] (!%p10981_p6), %v8099_v0  ;;  %355 = vst [vmem:[#allocation11 + $0x68] sm:$0xff] (!%p10981_p6), %v8099_v0 }
  0xb8   : > { %356 = vst [vmem:[#allocation11 + $0x70] sm:$0xff] %v8099_v0  ;;  %357 = vst [vmem:[#allocation11 + $0x78] sm:$0xff] %v8099_v0 }
  0xb9   : > { %358 = vst [vmem:[#allocation11 + $0x80] sm:$0xff] %v8099_v0  ;;  %359 = vst [vmem:[#allocation11 + $0x88] sm:$0xff] %v8099_v0 }
  0xba   : > { %360 = vst [vmem:[#allocation11 + $0x90] sm:$0xff] %v8099_v0  ;;  %361 = vst [vmem:[#allocation11 + $0x98] sm:$0xff] %v8099_v0 }
  0xbb   : > { %362 = vst [vmem:[#allocation11 + $0xa0] sm:$0xff] %v8099_v0  ;;  %363 = vst [vmem:[#allocation11 + $0xa8] sm:$0xff] %v8099_v0 }
  0xbc   : > { %364 = vst [vmem:[#allocation11 + $0xb0] sm:$0xff] %v8099_v0  ;;  %365 = vst [vmem:[#allocation11 + $0xb8] sm:$0xff] %v8099_v0 }
  0xbd   : > { %366 = vst [vmem:[#allocation11 + $0xc0] sm:$0xff] %v8099_v0  ;;  %367 = vst [vmem:[#allocation11 + $0xc8] sm:$0xff] %v8099_v0 }
  0xbe   : > { %368 = vst [vmem:[#allocation11 + $0xd0] sm:$0xff] %v8099_v0  ;;  %369 = vst [vmem:[#allocation11 + $0xd8] sm:$0xff] %v8099_v0 }
  0xbf   : > { %370 = vst [vmem:[#allocation11 + $0xe0] sm:$0xff] %v8099_v0  ;;  %371 = vst [vmem:[#allocation11 + $0xe8] sm:$0xff] %v8099_v0 }
  0xc0   : > { %372 = vst [vmem:[#allocation11 + $0xf0] sm:$0xff] %v8099_v0  ;;  %373 = vst [vmem:[#allocation11 + $0xf8] sm:$0xff] %v8099_v0 }
  0xc1   : > { %374 = vst [vmem:[#allocation11 + $0x100] sm:$0xff] %v8099_v0  ;;  %375 = vst [vmem:[#allocation11 + $0x108] sm:$0xff] %v8099_v0 }
  0xc2   : > { %376 = vst [vmem:[#allocation11 + $0x110] sm:$0xff] %v8099_v0  ;;  %377 = vst [vmem:[#allocation11 + $0x118] sm:$0xff] %v8099_v0 }
  0xc3   : > { %378 = vst [vmem:[#allocation11 + $0x120] sm:$0xff] %v8099_v0  ;;  %379 = vst [vmem:[#allocation11 + $0x128] sm:$0xff] %v8099_v0 }
  0xc4   : > { %380 = vst [vmem:[#allocation11 + $0x130] sm:$0xff] %v8099_v0  ;;  %381 = vst [vmem:[#allocation11 + $0x138] sm:$0xff] %v8099_v0 }
  0xc5   : > { %382 = vst [vmem:[#allocation11 + $0x140] sm:$0xff] %v8099_v0  ;;  %383 = vst [vmem:[#allocation11 + $0x148] sm:$0xff] %v8099_v0 }
  0xc6   : > { %384 = vst [vmem:[#allocation11 + $0x150] sm:$0xff] %v8099_v0  ;;  %385 = vst [vmem:[#allocation11 + $0x158] sm:$0xff] %v8099_v0 }
  0xc7   : > { %386 = vst [vmem:[#allocation11 + $0x160] sm:$0xff] %v8099_v0  ;;  %387 = vst [vmem:[#allocation11 + $0x168] sm:$0xff] %v8099_v0 }
  0xc8   : > { %388 = vst [vmem:[#allocation11 + $0x170] sm:$0xff] %v8099_v0  ;;  %389 = vst [vmem:[#allocation11 + $0x178] sm:$0xff] %v8099_v0 }
  0xc9   : > { %390 = vst [vmem:[#allocation11 + $0x180] sm:$0xff] %v8099_v0  ;;  %391 = vst [vmem:[#allocation11 + $0x188] sm:$0xff] %v8099_v0 }
  0xca   : > { %392 = vst [vmem:[#allocation11 + $0x190] sm:$0xff] %v8099_v0  ;;  %393 = vst [vmem:[#allocation11 + $0x198] sm:$0xff] %v8099_v0 }
  0xcb   : > { %394 = vst [vmem:[#allocation11 + $0x1a0] sm:$0xff] %v8099_v0  ;;  %395 = vst [vmem:[#allocation11 + $0x1a8] sm:$0xff] %v8099_v0 }
  0xcc   : > { %396 = vst [vmem:[#allocation11 + $0x1b0] sm:$0xff] %v8099_v0  ;;  %397 = vst [vmem:[#allocation11 + $0x1b8] sm:$0xff] %v8099_v0 }
  0xcd   : > { %398 = vst [vmem:[#allocation11 + $0x1c0] sm:$0xff] %v8099_v0  ;;  %399 = vst [vmem:[#allocation11 + $0x1c8] sm:$0xff] %v8099_v0 }
  0xce   : > { %400 = vst [vmem:[#allocation11 + $0x1d0] sm:$0xff] %v8099_v0  ;;  %401 = vst [vmem:[#allocation11 + $0x1d8] sm:$0xff] %v8099_v0 }
  0xcf   : > { %402 = vst [vmem:[#allocation11 + $0x1e0] sm:$0xff] %v8099_v0  ;;  %403 = vst [vmem:[#allocation11 + $0x1e8] sm:$0xff] %v8099_v0 }
  0xd0   : > { %404 = vst [vmem:[#allocation11 + $0x1f0] sm:$0xff] %v8099_v0  ;;  %405 = vst [vmem:[#allocation11 + $0x1f8] sm:$0xff] %v8099_v0 }
  0xd1   : > { %406 = vst [vmem:[#allocation11 + $0x200] sm:$0xff] %v8099_v0  ;;  %407 = vst [vmem:[#allocation11 + $0x208] sm:$0xff] %v8099_v0 }
  0xd2   : > { %408 = vst [vmem:[#allocation11 + $0x210] sm:$0xff] %v8099_v0  ;;  %409 = vst [vmem:[#allocation11 + $0x218] sm:$0xff] %v8099_v0 }
  0xd3   : > { %410 = vst [vmem:[#allocation11 + $0x220] sm:$0xff] %v8099_v0  ;;  %411 = vst [vmem:[#allocation11 + $0x228] sm:$0xff] %v8099_v0 }
  0xd4   : > { %412 = vst [vmem:[#allocation11 + $0x230] sm:$0xff] %v8099_v0  ;;  %413 = vst [vmem:[#allocation11 + $0x238] sm:$0xff] %v8099_v0 }
  0xd5   : > { %414 = vst [vmem:[#allocation11 + $0x240] sm:$0xff] %v8099_v0  ;;  %415 = vst [vmem:[#allocation11 + $0x248] sm:$0xff] %v8099_v0 }
  0xd6   : > { %416 = vst [vmem:[#allocation11 + $0x250] sm:$0xff] %v8099_v0  ;;  %417 = vst [vmem:[#allocation11 + $0x258] sm:$0xff] %v8099_v0 }
  0xd7   : > { %418 = vst [vmem:[#allocation11 + $0x260] sm:$0xff] %v8099_v0  ;;  %419 = vst [vmem:[#allocation11 + $0x268] sm:$0xff] %v8099_v0 }
  0xd8   : > { %420 = vst [vmem:[#allocation11 + $0x270] sm:$0xff] %v8099_v0  ;;  %421 = vst [vmem:[#allocation11 + $0x278] sm:$0xff] %v8099_v0 }
  0xd9   : > { %422 = vst [vmem:[#allocation11 + $0x280] sm:$0xff] %v8099_v0  ;;  %423 = vst [vmem:[#allocation11 + $0x288] sm:$0xff] %v8099_v0 }
  0xda   : > { %424 = vst [vmem:[#allocation11 + $0x290] sm:$0xff] %v8099_v0  ;;  %425 = vst [vmem:[#allocation11 + $0x298] sm:$0xff] %v8099_v0 }
  0xdb PF: > { %v7120_v1 = vld [vmem:[%s8366_s10 + $0x4] ss:$24 sps:$4 sm:$0xff]   ;;  %v7124_v3 = vld [vmem:[%s8366_s10] ss:$24 sps:$4 sm:$0xff]   ;;  %v7126_v5 = vld [vmem:[%s8366_s10 + $0x34] ss:$24 sps:$4 sm:$0xff]  }
  0xdc   : > { %v7122_v2 = vld [vmem:[%s8366_s10 + $0xc] ss:$24 sps:$4 sm:$0xff]   ;;  %1448 = vmatprep.subr.bf16.mxu0 %v7120_v1  ;;  %v7125_v4 = vld [vmem:[%s8366_s10 + $0x8] ss:$24 sps:$4 sm:$0xff]   ;;  %v7128_v6 = vld [vmem:[%s8366_s10 + $0x3c] ss:$24 sps:$4 sm:$0xff]  }
  0xdd   : > { %1794 = vmatprep.subr.bf16.mxu1 %v7122_v2  ;;  %1449 = vmatpush1.bf16.msra.mxu0 %v7124_v3  ;;  %v7130_v7 = vld [vmem:[%s8366_s10 + $0x30] ss:$24 sps:$4 sm:$0xff]   ;;  %v7132_v9 = vld [vmem:[%s8366_s10 + $0x64] ss:$24 sps:$4 sm:$0xff]   ;;  %v7136_v11 = vld [vmem:[%s8366_s10 + $0x60] ss:$24 sps:$4 sm:$0xff]  }
  0xde   : > { %1795 = vmatpush1.bf16.msra.mxu1 %v7125_v4  ;;  %1450 = vmatprep.subr.bf16.mxu0 %v7126_v5  ;;  %v7131_v8 = vld [vmem:[%s8366_s10 + $0x38] ss:$24 sps:$4 sm:$0xff]   ;;  %v7134_v10 = vld [vmem:[%s8366_s10 + $0x6c] ss:$24 sps:$4 sm:$0xff]   ;;  %v7137_v12 = vld [vmem:[%s8366_s10 + $0x68] ss:$24 sps:$4 sm:$0xff]  }
  0xdf   : > { %1796 = vmatprep.subr.bf16.mxu1 %v7128_v6  ;;  %v7138_v13 = vld [vmem:[%s8366_s10 + $0x94] ss:$24 sps:$4 sm:$0xff]   ;;  %v7142_v15 = vld [vmem:[%s8366_s10 + $0x90] ss:$24 sps:$4 sm:$0xff]   ;;  %v7144_v17 = vld [vmem:[%s8366_s10 + $0xc4] ss:$24 sps:$4 sm:$0xff]  }
  0xe0   : > { %v7140_v14 = vld [vmem:[%s8366_s10 + $0x9c] ss:$24 sps:$4 sm:$0xff]   ;;  %v7143_v16 = vld [vmem:[%s8366_s10 + $0x98] ss:$24 sps:$4 sm:$0xff]   ;;  %v7146_v18 = vld [vmem:[%s8366_s10 + $0xcc] ss:$24 sps:$4 sm:$0xff]  }
  0xe1   : > { %1451 = vmatpush1.bf16.msra.mxu0 %v7130_v7  ;;  %v7148_v19 = vld [vmem:[%s8366_s10 + $0xc0] ss:$24 sps:$4 sm:$0xff]   ;;  %v7150_v21 = vld [vmem:[%s8366_s10 + $0xf4] ss:$24 sps:$4 sm:$0xff]   ;;  %v7154_v23 = vld [vmem:[%s8366_s10 + $0xf0] ss:$24 sps:$4 sm:$0xff]  }
  0xe2   : > { %1797 = vmatpush1.bf16.msra.mxu1 %v7131_v8  ;;  %1452 = vmatprep.subr.bf16.mxu0 %v7132_v9  ;;  %v7149_v20 = vld [vmem:[%s8366_s10 + $0xc8] ss:$24 sps:$4 sm:$0xff]   ;;  %v7152_v22 = vld [vmem:[%s8366_s10 + $0xfc] ss:$24 sps:$4 sm:$0xff]   ;;  %v7155_v24 = vld [vmem:[%s8366_s10 + $0xf8] ss:$24 sps:$4 sm:$0xff]  }
  0xe3   : > { %1798 = vmatprep.subr.bf16.mxu1 %v7134_v10  ;;  %v7156_v25 = vld [vmem:[%s8366_s10 + $0x124] ss:$24 sps:$4 sm:$0xff]   ;;  %v7160_v27 = vld [vmem:[%s8366_s10 + $0x120] ss:$24 sps:$4 sm:$0xff]   ;;  %v7162_v29 = vld [vmem:[%s8366_s10 + $0x154] ss:$24 sps:$4 sm:$0xff]  }
  0xe4   : > { %v7158_v26 = vld [vmem:[%s8366_s10 + $0x12c] ss:$24 sps:$4 sm:$0xff]   ;;  %v7161_v28 = vld [vmem:[%s8366_s10 + $0x128] ss:$24 sps:$4 sm:$0xff]   ;;  %v7164_v30 = vld [vmem:[%s8366_s10 + $0x15c] ss:$24 sps:$4 sm:$0xff]  }
  0xe5   : > { %1453 = vmatpush1.bf16.msra.mxu0 %v7136_v11  ;;  %v7166_v31 = vld [vmem:[%s8366_s10 + $0x150] ss:$24 sps:$4 sm:$0xff]   ;;  %v7168_v33 = vld [vmem:[%s8366_s10 + $0x184] ss:$24 sps:$4 sm:$0xff]   ;;  %v7172_v35 = vld [vmem:[%s8366_s10 + $0x180] ss:$24 sps:$4 sm:$0xff]  }
  0xe6   : > { %1799 = vmatpush1.bf16.msra.mxu1 %v7137_v12  ;;  %1454 = vmatprep.subr.bf16.mxu0 %v7138_v13  ;;  %v7167_v32 = vld [vmem:[%s8366_s10 + $0x158] ss:$24 sps:$4 sm:$0xff]   ;;  %v7170_v34 = vld [vmem:[%s8366_s10 + $0x18c] ss:$24 sps:$4 sm:$0xff]   ;;  %v7173_v36 = vld [vmem:[%s8366_s10 + $0x188] ss:$24 sps:$4 sm:$0xff]  }
  0xe7   : > { %1800 = vmatprep.subr.bf16.mxu1 %v7140_v14  ;;  %v7174_v37 = vld [vmem:[%s8366_s10 + $0x1b4] ss:$24 sps:$4 sm:$0xff]   ;;  %v7178_v39 = vld [vmem:[%s8366_s10 + $0x1b0] ss:$24 sps:$4 sm:$0xff]   ;;  %v7180_v41 = vld [vmem:[%s8366_s10 + $0x1e4] ss:$24 sps:$4 sm:$0xff]  }
  0xe8   : > { %v7176_v38 = vld [vmem:[%s8366_s10 + $0x1bc] ss:$24 sps:$4 sm:$0xff]   ;;  %v7179_v40 = vld [vmem:[%s8366_s10 + $0x1b8] ss:$24 sps:$4 sm:$0xff]   ;;  %v7182_v42 = vld [vmem:[%s8366_s10 + $0x1ec] ss:$24 sps:$4 sm:$0xff]  }
  0xe9   : > { %1455 = vmatpush1.bf16.msra.mxu0 %v7142_v15  ;;  %v7184_v43 = vld [vmem:[%s8366_s10 + $0x1e0] ss:$24 sps:$4 sm:$0xff]   ;;  %v7186_v45 = vld [vmem:[%s8366_s10 + $0x214] ss:$24 sps:$4 sm:$0xff]   ;;  %v7190_v48 = vld [vmem:[%s8366_s10 + $0x210] ss:$24 sps:$4 sm:$0xff]  }
  0xea   : > { %1801 = vmatpush1.bf16.msra.mxu1 %v7143_v16  ;;  %1456 = vmatprep.subr.bf16.mxu0 %v7144_v17  ;;  %v7185_v44 = vld [vmem:[%s8366_s10 + $0x1e8] ss:$24 sps:$4 sm:$0xff]   ;;  %v7188_v46 = vld [vmem:[%s8366_s10 + $0x21c] ss:$24 sps:$4 sm:$0xff]   ;;  %v7191_v50 = vld [vmem:[%s8366_s10 + $0x218] ss:$24 sps:$4 sm:$0xff]  }
  0xeb   : > { %1802 = vmatprep.subr.bf16.mxu1 %v7146_v18  ;;  %v427_v47 = vld [vmem:[#allocation2 + $0x8] sm:$0xff]  ;;  %v430_v49 = vld [vmem:[#allocation2 + $0x20] sm:$0xff]  ;;  %v7200_v57 = vld [vmem:[%s8366_s10 + $0x27c] ss:$24 sps:$4 sm:$0xff]   ;;  %p6272_p2 = scmp.ne.s32.totalorder %s8153_s22, 1 }
  0xec   : > { %v8519_v51 = vpack.c.bf16 %v430_v49, %v427_v47  ;;  %v7192_v52 = vld [vmem:[%s8366_s10 + $0x244] ss:$24 sps:$4 sm:$0xff]   ;;  %v7196_v54 = vld [vmem:[%s8366_s10 + $0x240] ss:$24 sps:$4 sm:$0xff]   ;;  %v7198_v56 = vld [vmem:[%s8366_s10 + $0x274] ss:$24 sps:$4 sm:$0xff]  }
  0xed   : > { %1457 = vmatpush1.bf16.msra.mxu0 %v7148_v19  ;;  %v7194_v53 = vld [vmem:[%s8366_s10 + $0x24c] ss:$24 sps:$4 sm:$0xff]   ;;  %v7197_v55 = vld [vmem:[%s8366_s10 + $0x248] ss:$24 sps:$4 sm:$0xff]   ;;  %v7203_v59 = vld [vmem:[%s8366_s10 + $0x278] ss:$24 sps:$4 sm:$0xff]  }
  0xee   : > { %1803 = vmatpush1.bf16.msra.mxu1 %v7149_v20  ;;  %1458 = vmatprep.subr.bf16.mxu0 %v7150_v21  ;;  %v7202_v58 = vld [vmem:[%s8366_s10 + $0x270] ss:$24 sps:$4 sm:$0xff]   ;;  %v7204_v60 = vld [vmem:[%s8366_s10 + $0x2a4] ss:$24 sps:$4 sm:$0xff]   ;;  %v7208_v62 = vld [vmem:[%s8366_s10 + $0x2a0] ss:$24 sps:$4 sm:$0xff]  }
  0xef   : > { %1804 = vmatprep.subr.bf16.mxu1 %v7152_v22  ;;  %1480 = vmatprep.mubr.bf16.mxu0 %v8519_v51  ;;  %v7206_v61 = vld [vmem:[%s8366_s10 + $0x2ac] ss:$24 sps:$4 sm:$0xff]   ;;  %v7209_v63 = vld [vmem:[%s8366_s10 + $0x2a8] ss:$24 sps:$4 sm:$0xff]   ;;  %v7212_v1 = vld [vmem:[%s8366_s10 + $0x2dc] ss:$24 sps:$4 sm:$0xff]  }
  0xf0   : > { %1826 = vmatprep.mubr.bf16.mxu1 %v8519_v51  ;;  %v7210_v0 = vld [vmem:[%s8366_s10 + $0x2d4] ss:$24 sps:$4 sm:$0xff]   ;;  %v7214_v2 = vld [vmem:[%s8366_s10 + $0x2d0] ss:$24 sps:$4 sm:$0xff]   ;;  %v426_v4 = vld [vmem:[#allocation2] sm:$0xff] }
  0xf1   : > { %1459 = vmatpush1.bf16.msra.mxu0 %v7154_v23  ;;  %v7215_v3 = vld [vmem:[%s8366_s10 + $0x2d8] ss:$24 sps:$4 sm:$0xff]   ;;  %v7218_v6 = vld [vmem:[%s8366_s10 + $0x304] ss:$24 sps:$4 sm:$0xff]   ;;  %v7221_v12 = vld [vmem:[%s8366_s10 + $0x334] ss:$24 sps:$4 sm:$0xff]  }
  0xf2   : > { %1805 = vmatpush1.bf16.msra.mxu1 %v7155_v24  ;;  %1460 = vmatprep.subr.bf16.mxu0 %v7156_v25  ;;  %v429_v5 = vld [vmem:[#allocation2 + $0x18] sm:$0xff]  ;;  %v436_v8 = vld [vmem:[#allocation2 + $0x50] sm:$0xff]  ;;  %v435_v14 = vld [vmem:[#allocation2 + $0x48] sm:$0xff] }
  0xf3   : > { %1806 = vmatprep.subr.bf16.mxu1 %v7158_v26  ;;  %v433_v7 = vld [vmem:[#allocation2 + $0x38] sm:$0xff]  ;;  %v8540_v9 = vpack.c.bf16 %v429_v5, %v426_v4  ;;  %v432_v13 = vld [vmem:[#allocation2 + $0x30] sm:$0xff]  ;;  %v7236_v15 = vld [vmem:[%s8366_s10 + $0x30c] ss:$24 sps:$4 sm:$0xff]  }
  0xf4   : > { %v7216_v10 = vld [vmem:[%s8366_s10 + $0x300] ss:$24 sps:$4 sm:$0xff]   ;;  %v8543_v11 = vpack.c.bf16 %v436_v8, %v433_v7  ;;  %v7219_v16 = vld [vmem:[%s8366_s10 + $0x330] ss:$24 sps:$4 sm:$0xff]   ;;  %v7224_v20 = vld [vmem:[%s8366_s10 + $0x364] ss:$24 sps:$4 sm:$0xff]   ;;  %v8555_v22 = vpack.c.bf16 %v435_v14, %v432_v13 }
  0xf5   : > { %1461 = vmatpush1.bf16.msra.mxu0 %v7160_v27  ;;  %v7234_v17 = vld [vmem:[%s8366_s10 + $0x308] ss:$24 sps:$4 sm:$0xff]   ;;  %v7242_v21 = vld [vmem:[%s8366_s10 + $0x33c] ss:$24 sps:$4 sm:$0xff]   ;;  %v7240_v25 = vld [vmem:[%s8366_s10 + $0x338] ss:$24 sps:$4 sm:$0xff]  }
  0xf6   : > { %1807 = vmatpush1.bf16.msra.mxu1 %v7161_v28  ;;  %1462 = vmatprep.subr.bf16.mxu0 %v7162_v29  ;;  %v439_v18 = vld [vmem:[#allocation2 + $0x68] sm:$0xff]  ;;  %v442_v19 = vld [vmem:[#allocation2 + $0x80] sm:$0xff]  ;;  %v441_v27 = vld [vmem:[#allocation2 + $0x78] sm:$0xff] }
  0xf7   : > { %1808 = vmatprep.subr.bf16.mxu1 %v7164_v30  ;;  %v8557_v23 = vpack.c.bf16 %v442_v19, %v439_v18  ;;  %v7222_v24 = vld [vmem:[%s8366_s10 + $0x360] ss:$24 sps:$4 sm:$0xff]   ;;  %v7227_v28 = vld [vmem:[%s8366_s10 + $0x394] ss:$24 sps:$4 sm:$0xff]  }
  0xf8   : > { %v438_v26 = vld [vmem:[#allocation2 + $0x60] sm:$0xff]  ;;  %v445_v30 = vld [vmem:[#allocation2 + $0x98] sm:$0xff]  ;;  %v456_v4 = vld [vmem:[#allocation2 + $0xf0] sm:$0xff] }
  0xf9   : > { %1463 = vmatpush1.bf16.msra.mxu0 %v7166_v31  ;;  %v7245_v29 = vld [vmem:[%s8366_s10 + $0x36c] ss:$24 sps:$4 sm:$0xff]   ;;  %v448_v31 = vld [vmem:[#allocation2 + $0xb0] sm:$0xff]  ;;  %v7249_v47 = vld [vmem:[%s8366_s10 + $0x3c8] ss:$24 sps:$4 sm:$0xff]  }
  0xfa   : > { %1809 = vmatpush1.bf16.msra.mxu1 %v7167_v32  ;;  %1464 = vmatprep.subr.bf16.mxu0 %v7168_v33  ;;  %v7225_v32 = vld [vmem:[%s8366_s10 + $0x390] ss:$24 sps:$4 sm:$0xff]   ;;  %v7257_v49 = vld [vmem:[%s8366_s10 + $0x3fc] ss:$24 sps:$4 sm:$0xff]   ;;  %v466_v7 = vld [vmem:[#allocation2 + $0x140] sm:$0xff] }
  0xfb   : > { %1810 = vmatprep.subr.bf16.mxu1 %v7170_v34  ;;  %v7243_v33 = vld [vmem:[%s8366_s10 + $0x368] ss:$24 sps:$4 sm:$0xff]   ;;  %v7230_v34 = vld [vmem:[%s8366_s10 + $0x3c4] ss:$24 sps:$4 sm:$0xff]   ;;  %v468_v18 = vld [vmem:[#allocation2 + $0x150] sm:$0xff] }
  0xfc   : > { %v459_v5 = vld [vmem:[#allocation2 + $0x108] sm:$0xff]  ;;  %v465_v13 = vld [vmem:[#allocation2 + $0x138] sm:$0xff] }
  0xfd   : > { %1465 = vmatpush1.bf16.msra.mxu0 %v7172_v35  ;;  %v7248_v35 = vld [vmem:[%s8366_s10 + $0x39c] ss:$24 sps:$4 sm:$0xff]   ;;  %v8612_v8 = vpack.c.bf16 %v459_v5, %v456_v4  ;;  %v471_v19 = vld [vmem:[#allocation2 + $0x168] sm:$0xff]  ;;  %v10931_v4 = vmov 0  }
  0xfe   : > { %1811 = vmatpush1.bf16.msra.mxu1 %v7173_v36  ;;  %1466 = vmatprep.subr.bf16.mxu0 %v7174_v37  ;;  %v8571_v36 = vpack.c.bf16 %v441_v27, %v438_v26  ;;  %v8573_v37 = vpack.c.bf16 %v448_v31, %v445_v30  ;;  %v469_v14 = vld [vmem:[#allocation2 + $0x158] sm:$0xff]  ;;  %v474_v26 = vld [vmem:[#allocation2 + $0x180] sm:$0xff]  ;;  %v431_v5 = vld [vmem:[#allocation2 + $0x28] sm:$0xff] }
  0xff   : > { %1812 = vmatprep.subr.bf16.mxu1 %v7176_v38  ;;  %v7228_v38 = vld [vmem:[%s8366_s10 + $0x3c0] ss:$24 sps:$4 sm:$0xff]  }
 0x100   : > { %v477_v27 = vld [vmem:[#allocation2 + $0x198] sm:$0xff] }
 0x101   : > { %1467 = vmatpush1.bf16.msra.mxu0 %v7178_v39  ;;  %v7246_v39 = vld [vmem:[%s8366_s10 + $0x398] ss:$24 sps:$4 sm:$0xff]   ;;  %v8636_v30 = vpack.c.bf16 %v477_v27, %v474_v26 }
 0x102   : > { %1813 = vmatpush1.bf16.msra.mxu1 %v7179_v40  ;;  %1468 = vmatprep.subr.bf16.mxu0 %v7180_v41  ;;  %v444_v40 = vld [vmem:[#allocation2 + $0x90] sm:$0xff] }
 0x103   : > { %1814 = vmatprep.subr.bf16.mxu1 %v7182_v42  ;;  %v7233_v41 = vld [vmem:[%s8366_s10 + $0x3f4] ss:$24 sps:$4 sm:$0xff]   ;;  %v7270_v27 = vld [vmem:[%s8366_s10 + $0x70] ss:$24 sps:$4 sm:$0xff]  }
 0x104   : > { %v7251_v42 = vld [vmem:[%s8366_s10 + $0x3cc] ss:$24 sps:$4 sm:$0xff]  }
 0x105   : > { %1469 = vmatpush1.bf16.msra.mxu0 %v7184_v43  ;;  %v447_v43 = vld [vmem:[#allocation2 + $0xa8] sm:$0xff] }
 0x106   : > { %1815 = vmatpush1.bf16.msra.mxu1 %v7185_v44  ;;  %1470 = vmatprep.subr.bf16.mxu0 %v7186_v45  ;;  %v451_v44 = vld [vmem:[#allocation2 + $0xc8] sm:$0xff]  ;;  %v454_v45 = vld [vmem:[#allocation2 + $0xe0] sm:$0xff] }
 0x107   : > { %1816 = vmatprep.subr.bf16.mxu1 %v7188_v46  ;;  %v7231_v46 = vld [vmem:[%s8366_s10 + $0x3f0] ss:$24 sps:$4 sm:$0xff]  }
 0x109   : > { %1471 = vmatpush1.bf16.msra.mxu0 %v7190_v48  ;;  %v7239_v48 = vld [vmem:[%s8366_s10 + $0x424] ss:$24 sps:$4 sm:$0xff]  }
 0x10a   : > { %1817 = vmatpush1.bf16.msra.mxu1 %v7191_v50  ;;  %1472 = vmatprep.subr.bf16.mxu0 %v7192_v52  ;;  %v8587_v50 = vpack.c.bf16 %v447_v43, %v444_v40  ;;  %v8589_v52 = vpack.c.bf16 %v454_v45, %v451_v44  ;;  %v486_v40 = vld [vmem:[#allocation2 + $0x1e0] sm:$0xff]  ;;  %v496_v43 = vld [vmem:[#allocation2 + $0x230] sm:$0xff] }
 0x10b   : > { %1818 = vmatprep.subr.bf16.mxu1 %v7194_v53  ;;  %v7237_v53 = vld [vmem:[%s8366_s10 + $0x420] ss:$24 sps:$4 sm:$0xff]  }
 0x10d   : > { %1473 = vmatpush1.bf16.msra.mxu0 %v7196_v54  ;;  %v7255_v54 = vld [vmem:[%s8366_s10 + $0x3f8] ss:$24 sps:$4 sm:$0xff]  }
 0x10e   : > { %1819 = vmatpush1.bf16.msra.mxu1 %v7197_v55  ;;  %1474 = vmatprep.subr.bf16.mxu0 %v7198_v56  ;;  %v7254_v55 = vld [vmem:[%s8366_s10 + $0x454] ss:$24 sps:$4 sm:$0xff]  }
 0x10f   : > { %1820 = vmatprep.subr.bf16.mxu1 %v7200_v57  ;;  %v7260_v56 = vld [vmem:[%s8366_s10 + $0x42c] ss:$24 sps:$4 sm:$0xff]  }
 0x110   : > { %v450_v57 = vld [vmem:[#allocation2 + $0xc0] sm:$0xff] }
 0x111   : > { %1475 = vmatpush1.bf16.msra.mxu0 %v7202_v58  ;;  %v453_v58 = vld [vmem:[#allocation2 + $0xd8] sm:$0xff] }
 0x112   : > { %1821 = vmatpush1.bf16.msra.mxu1 %v7203_v59  ;;  %1476 = vmatprep.subr.bf16.mxu0 %v7204_v60  ;;  %v457_v59 = vld [vmem:[#allocation2 + $0xf8] sm:$0xff]  ;;  %v460_v60 = vld [vmem:[#allocation2 + $0x110] sm:$0xff] }
 0x113   : > { %1822 = vmatprep.subr.bf16.mxu1 %v7206_v61  ;;  %v7252_v61 = vld [vmem:[%s8366_s10 + $0x450] ss:$24 sps:$4 sm:$0xff]  }
 0x115   : > { %1477 = vmatpush1.bf16.msra.mxu0 %v7208_v62  ;;  %v7258_v62 = vld [vmem:[%s8366_s10 + $0x428] ss:$24 sps:$4 sm:$0xff]  }
 0x116   : > { %1823 = vmatpush1.bf16.msra.mxu1 %v7209_v63  ;;  %1478 = vmatprep.subr.bf16.mxu0 %v7210_v0  ;;  %v7263_v63 = vld [vmem:[%s8366_s10 + $0x45c] ss:$24 sps:$4 sm:$0xff]  }
 0x117   : > { %1824 = vmatprep.subr.bf16.mxu1 %v7212_v1  ;;  %v7266_v0 = vld [vmem:[%s8366_s10 + $0x14] ss:$24 sps:$4 sm:$0xff]   ;;  %v8603_v1 = vpack.c.bf16 %v453_v58, %v450_v57  ;;  %v505_v57 = vld [vmem:[#allocation2 + $0x278] sm:$0xff] }
 0x118   : > { %v508_v58 = vld [vmem:[#allocation2 + $0x290] sm:$0xff] }
 0x119   : > { %1479 = vmatpush1.bf16.msra.mxu0 %v7214_v2  ;;  %v8605_v2 = vpack.c.bf16 %v460_v60, %v457_v59  ;;  %v8670_v60 = vpack.c.bf16 %v508_v58, %v505_v57  ;;  %v7282_v58 = vld [vmem:[%s8366_s10 + $0x130] ss:$24 sps:$4 sm:$0xff]  }
 0x11a   : > { %1825 = vmatpush1.bf16.msra.mxu1 %v7215_v3  ;;  %1621 = vmatprep.subr.bf16.mxu0 %v7218_v6  ;;  %v7261_v3 = vld [vmem:[%s8366_s10 + $0x458] ss:$24 sps:$4 sm:$0xff]   ;;  %v463_v6 = vld [vmem:[#allocation2 + $0x128] sm:$0xff] }
 0x11b   : > { %1967 = vmatprep.subr.bf16.mxu1 %v7236_v15  ;;  %v472_v15 = vld [vmem:[#allocation2 + $0x170] sm:$0xff] }
 0x11c   : > { %1481 = vmatmul.mubr.bf16.vlgmr.msra.gmra.mrb[0].mxu0 %v8540_v9 }
 0x11d   : > { %1827 = vmatmul.mubr.bf16.vlgmr.msra.gmra.mrb[0].mxu1 %v8540_v9  ;;  %1622 = vmatpush1.bf16.msra.mxu0 %v7216_v10  ;;  %v8614_v10 = vpack.c.bf16 %v466_v7, %v463_v6  ;;  %v7264_v6 = vld [vmem:[%s8366_s10 + $0x10] ss:$24 sps:$4 sm:$0xff]  }
 0x11e   : > { %1490 = vmatprep.mubr.bf16.mxu0 %v8543_v11  ;;  %1836 = vmatprep.mubr.bf16.mxu1 %v8543_v11 }
 0x11f   : > { %1623 = vmatprep.subr.bf16.mxu0 %v7221_v12  ;;  %1968 = vmatpush1.bf16.msra.mxu1 %v7234_v17  ;;  %v462_v12 = vld [vmem:[#allocation2 + $0x120] sm:$0xff]  ;;  %v8622_v17 = vpack.c.bf16 %v472_v15, %v469_v14 }
 0x120   : > { %1969 = vmatprep.subr.bf16.mxu1 %v7242_v21  ;;  %v478_v21 = vld [vmem:[#allocation2 + $0x1a0] sm:$0xff] }
 0x121   : > { %1624 = vmatpush1.bf16.msra.mxu0 %v7219_v16  ;;  %v8620_v16 = vpack.c.bf16 %v465_v13, %v462_v12  ;;  %v7269_v12 = vld [vmem:[%s8366_s10 + $0x44] ss:$24 sps:$4 sm:$0xff]   ;;  %v7315_v13 = vld [vmem:[%s8375_s11] ss:$12 sps:$4 sm:$0xff]  }
 0x122   : > { %1625 = vmatprep.subr.bf16.mxu0 %v7224_v20  ;;  %v475_v20 = vld [vmem:[#allocation2 + $0x188] sm:$0xff]  ;;  %v7267_v14 = vld [vmem:[%s8366_s10 + $0x40] ss:$24 sps:$4 sm:$0xff]  }
 0x123   : > { %1970 = vmatpush1.bf16.msra.mxu1 %v7240_v25  ;;  %v8630_v25 = vpack.c.bf16 %v478_v21, %v475_v20  ;;  %v434_v15 = vld [vmem:[#allocation2 + $0x40] sm:$0xff]  ;;  %v7323_v20 = vld [vmem:[%s8375_s11 + $0x1c] ss:$12 sps:$4 sm:$0xff]  }
 0x124   : > { %1491 = vmatmul.mubr.bf16.gmra.mrb[4].mxu0 %v8555_v22  ;;  %1971 = vmatprep.subr.bf16.mxu1 %v7245_v29  ;;  %v484_v29 = vld [vmem:[#allocation2 + $0x1d0] sm:$0xff] }
 0x125   : > { %1837 = vmatmul.mubr.bf16.gmra.mrb[4].mxu1 %v8555_v22  ;;  %1500 = vmatprep.mubr.bf16.mxu0 %v8557_v23  ;;  %v7321_v21 = vld [vmem:[%s8375_s11 + $0x18] ss:$12 sps:$4 sm:$0xff]  }
 0x126   : > { %1846 = vmatprep.mubr.bf16.mxu1 %v8557_v23  ;;  %1626 = vmatpush1.bf16.msra.mxu0 %v7222_v24  ;;  %v8628_v24 = vpack.c.bf16 %v471_v19, %v468_v18  ;;  %v437_v18 = vld [vmem:[#allocation2 + $0x58] sm:$0xff]  ;;  %v7272_v19 = vld [vmem:[%s8366_s10 + $0x74] ss:$24 sps:$4 sm:$0xff]  }
 0x127   : > { %1627 = vmatprep.subr.bf16.mxu0 %v7227_v28  ;;  %1972 = vmatpush1.bf16.msra.mxu1 %v7243_v33  ;;  %v481_v28 = vld [vmem:[#allocation2 + $0x1b8] sm:$0xff]  ;;  %v483_v33 = vld [vmem:[#allocation2 + $0x1c8] sm:$0xff]  ;;  %v8696_v26 = vpack.c.bf16 %v437_v18, %v434_v15  ;;  %v7339_v18 = vld [vmem:[%s8375_s11 + $0x78] ss:$12 sps:$4 sm:$0xff]  }
 0x128   : > { %1973 = vmatprep.subr.bf16.mxu1 %v7248_v35  ;;  %v8638_v31 = vpack.c.bf16 %v484_v29, %v481_v28  ;;  %v490_v35 = vld [vmem:[#allocation2 + $0x200] sm:$0xff]  ;;  %v7324_v29 = vld [vmem:[%s8375_s11 + $0x30] ss:$12 sps:$4 sm:$0xff]  }
 0x129   : > { %v7275_v28 = vld [vmem:[%s8366_s10 + $0xa4] ss:$24 sps:$4 sm:$0xff]  }
 0x12a   : > { %1628 = vmatpush1.bf16.msra.mxu0 %v7225_v32  ;;  %v480_v32 = vld [vmem:[#allocation2 + $0x1b0] sm:$0xff]  ;;  %v7293_v15 = vld [vmem:[%s8366_s10 + $0x1c4] ss:$24 sps:$4 sm:$0xff]  }
 0x12b   : > { %1629 = vmatprep.subr.bf16.mxu0 %v7230_v34  ;;  %1974 = vmatpush1.bf16.msra.mxu1 %v7246_v39  ;;  %v487_v34 = vld [vmem:[#allocation2 + $0x1e8] sm:$0xff] }
 0x12c   : > { %1501 = vmatmul.mubr.bf16.gmra.mrb[8].mxu0 %v8571_v36  ;;  %1975 = vmatprep.subr.bf16.mxu1 %v7251_v42  ;;  %v8646_v39 = vpack.c.bf16 %v490_v35, %v487_v34  ;;  %v493_v42 = vld [vmem:[#allocation2 + $0x218] sm:$0xff]  ;;  %v443_v34 = vld [vmem:[#allocation2 + $0x88] sm:$0xff] }
 0x12d   : > { %1847 = vmatmul.mubr.bf16.gmra.mrb[8].mxu1 %v8571_v36  ;;  %1510 = vmatprep.mubr.bf16.mxu0 %v8573_v37  ;;  %v8654_v45 = vpack.c.bf16 %v496_v43, %v493_v42  ;;  %v7273_v35 = vld [vmem:[%s8366_s10 + $0xa0] ss:$24 sps:$4 sm:$0xff]   ;;  %v7276_v42 = vld [vmem:[%s8366_s10 + $0xd0] ss:$24 sps:$4 sm:$0xff]   ;;  %v7281_v43 = vld [vmem:[%s8366_s10 + $0x104] ss:$24 sps:$4 sm:$0xff]  }
 0x12e   : > { %1856 = vmatprep.mubr.bf16.mxu1 %v8573_v37  ;;  %1630 = vmatpush1.bf16.msra.mxu0 %v7228_v38  ;;  %v8644_v38 = vpack.c.bf16 %v483_v33, %v480_v32  ;;  %v7326_v32 = vld [vmem:[%s8375_s11 + $0x34] ss:$12 sps:$4 sm:$0xff]   ;;  %v440_v33 = vld [vmem:[#allocation2 + $0x70] sm:$0xff] }
 0x12f   : > { %1631 = vmatprep.subr.bf16.mxu0 %v7233_v41  ;;  %1976 = vmatpush1.bf16.msra.mxu1 %v7249_v47  ;;  %v489_v41 = vld [vmem:[#allocation2 + $0x1f8] sm:$0xff]  ;;  %v495_v47 = vld [vmem:[#allocation2 + $0x228] sm:$0xff] }
 0x130   : > { %1977 = vmatprep.subr.bf16.mxu1 %v7257_v49  ;;  %v8652_v44 = vpack.c.bf16 %v489_v41, %v486_v40  ;;  %v502_v49 = vld [vmem:[#allocation2 + $0x260] sm:$0xff]  ;;  %v7278_v40 = vld [vmem:[%s8366_s10 + $0xd4] ss:$24 sps:$4 sm:$0xff]   ;;  %v8708_v41 = vpack.c.bf16 %v443_v34, %v440_v33  ;;  %v7294_v34 = vld [vmem:[%s8366_s10 + $0x1f0] ss:$24 sps:$4 sm:$0xff]  }
 0x132   : > { %1632 = vmatpush1.bf16.msra.mxu0 %v7231_v46  ;;  %v492_v46 = vld [vmem:[#allocation2 + $0x210] sm:$0xff] }
 0x133   : > { %1633 = vmatprep.subr.bf16.mxu0 %v7239_v48  ;;  %1978 = vmatpush1.bf16.msra.mxu1 %v7255_v54  ;;  %v499_v48 = vld [vmem:[#allocation2 + $0x248] sm:$0xff] }
 0x134   : > { %1511 = vmatmul.mubr.bf16.gmra.mrb[12].mxu0 %v8587_v50  ;;  %1979 = vmatprep.subr.bf16.mxu1 %v7260_v56  ;;  %v8662_v54 = vpack.c.bf16 %v502_v49, %v499_v48  ;;  %v501_v56 = vld [vmem:[#allocation2 + $0x258] sm:$0xff]  ;;  %v446_v48 = vld [vmem:[#allocation2 + $0xa0] sm:$0xff] }
 0x135   : > { %1857 = vmatmul.mubr.bf16.gmra.mrb[12].mxu1 %v8587_v50  ;;  %1520 = vmatprep.mubr.bf16.mxu0 %v8589_v52  ;;  %v449_v49 = vld [vmem:[#allocation2 + $0xb8] sm:$0xff] }
 0x136   : > { %1866 = vmatprep.mubr.bf16.mxu1 %v8589_v52  ;;  %1634 = vmatpush1.bf16.msra.mxu0 %v7237_v53  ;;  %v8660_v53 = vpack.c.bf16 %v495_v47, %v492_v46  ;;  %v7330_v46 = vld [vmem:[%s8375_s11 + $0x48] ss:$12 sps:$4 sm:$0xff]   ;;  %v7332_v47 = vld [vmem:[%s8375_s11 + $0x4c] ss:$12 sps:$4 sm:$0xff]   ;;  %v8720_v57 = vpack.c.bf16 %v449_v49, %v446_v48 }
 0x137   : > { %1635 = vmatprep.subr.bf16.mxu0 %v7254_v55  ;;  %1980 = vmatpush1.bf16.msra.mxu1 %v7258_v62  ;;  %v498_v55 = vld [vmem:[#allocation2 + $0x240] sm:$0xff]  ;;  %v507_v62 = vld [vmem:[#allocation2 + $0x288] sm:$0xff] }
 0x138   : > { %1981 = vmatprep.subr.bf16.mxu1 %v7263_v63  ;;  %v8668_v59 = vpack.c.bf16 %v501_v56, %v498_v55  ;;  %v7279_v55 = vld [vmem:[%s8366_s10 + $0x100] ss:$24 sps:$4 sm:$0xff]   ;;  %v7284_v56 = vld [vmem:[%s8366_s10 + $0x134] ss:$24 sps:$4 sm:$0xff]  }
 0x139   : > { %v7302_v48 = vld [vmem:[%s8366_s10 + $0x254] ss:$24 sps:$4 sm:$0xff]  }
 0x13a   : > { %1636 = vmatpush1.bf16.msra.mxu0 %v7252_v61  ;;  %v504_v61 = vld [vmem:[#allocation2 + $0x270] sm:$0xff] }
 0x13b   : > { %2140 = vmatprep.subr.bf16.mxu0 %v7266_v0  ;;  %1982 = vmatpush1.bf16.msra.mxu1 %v7261_v3  ;;  %v8676_v63 = vpack.c.bf16 %v507_v62, %v504_v61  ;;  %v428_v0 = vld [vmem:[#allocation2 + $0x10] sm:$0xff]  ;;  %v7287_v61 = vld [vmem:[%s8366_s10 + $0x164] ss:$24 sps:$4 sm:$0xff]   ;;  %v7333_v62 = vld [vmem:[%s8375_s11 + $0x60] ss:$12 sps:$4 sm:$0xff]  }
 0x13c   : > { %1521 = vmatmul.mubr.bf16.gmra.mrb[16].mxu0 %v8603_v1  ;;  %v7317_v3 = vld [vmem:[%s8375_s11 + $0x4] ss:$12 sps:$4 sm:$0xff]   ;;  %v8684_v7 = vpack.c.bf16 %v431_v5, %v428_v0  ;;  %v455_v5 = vld [vmem:[#allocation2 + $0xe8] sm:$0xff] }
 0x13d   : > { %1867 = vmatmul.mubr.bf16.gmra.mrb[16].mxu1 %v8603_v1  ;;  %1530 = vmatprep.mubr.bf16.mxu0 %v8605_v2  ;;  %v7335_v0 = vld [vmem:[%s8375_s11 + $0x64] ss:$12 sps:$4 sm:$0xff]  }
 0x13e   : > { %1876 = vmatprep.mubr.bf16.mxu1 %v8605_v2  ;;  %4454 = vmatprep.subr.bf16.mxu1 %v7317_v3  ;;  %v452_v3 = vld [vmem:[#allocation2 + $0xd0] sm:$0xff] }
 0x144   : > { %1531 = vmatmul.mubr.bf16.gmra.mrb[20].mxu0 %v8612_v8 }
 0x145   : > { %1877 = vmatmul.mubr.bf16.gmra.mrb[20].mxu1 %v8612_v8  ;;  %1540 = vmatprep.mubr.bf16.mxu0 %v8614_v10 }
 0x146   : > { %1886 = vmatprep.mubr.bf16.mxu1 %v8614_v10 }
 0x14c   : > { %1541 = vmatmul.mubr.bf16.gmra.mrb[24].mxu0 %v8620_v16 }
 0x14d   : > { %1887 = vmatmul.mubr.bf16.gmra.mrb[24].mxu1 %v8620_v16  ;;  %1550 = vmatprep.mubr.bf16.mxu0 %v8622_v17 }
 0x14e   : > { %1896 = vmatprep.mubr.bf16.mxu1 %v8622_v17 }
 0x154   : > { %1551 = vmatmul.mubr.bf16.gmra.mrb[28].mxu0 %v8628_v24 }
 0x155   : > { %1897 = vmatmul.mubr.bf16.gmra.mrb[28].mxu1 %v8628_v24  ;;  %1560 = vmatprep.mubr.bf16.mxu0 %v8630_v25 }
 0x156   : > { %1906 = vmatprep.mubr.bf16.mxu1 %v8630_v25 }
 0x15c   : > { %1561 = vmatmul.mubr.bf16.gmra.mrb[32].mxu0 %v8636_v30 }
 0x15d   : > { %1907 = vmatmul.mubr.bf16.gmra.mrb[32].mxu1 %v8636_v30  ;;  %1570 = vmatprep.mubr.bf16.mxu0 %v8638_v31 }
 0x15e   : > { %1916 = vmatprep.mubr.bf16.mxu1 %v8638_v31 }
 0x164   : > { %1571 = vmatmul.mubr.bf16.gmra.mrb[36].mxu0 %v8644_v38 }
 0x165   : > { %1917 = vmatmul.mubr.bf16.gmra.mrb[36].mxu1 %v8644_v38  ;;  %1580 = vmatprep.mubr.bf16.mxu0 %v8646_v39 }
 0x166   : > { %1926 = vmatprep.mubr.bf16.mxu1 %v8646_v39 }
 0x16c   : > { %1581 = vmatmul.mubr.bf16.gmra.mrb[40].mxu0 %v8652_v44 }
 0x16d   : > { %1927 = vmatmul.mubr.bf16.gmra.mrb[40].mxu1 %v8652_v44  ;;  %1590 = vmatprep.mubr.bf16.mxu0 %v8654_v45 }
 0x16e   : > { %1936 = vmatprep.mubr.bf16.mxu1 %v8654_v45 }
 0x174   : > { %1591 = vmatmul.mubr.bf16.gmra.mrb[44].mxu0 %v8660_v53 }
 0x175   : > { %1937 = vmatmul.mubr.bf16.gmra.mrb[44].mxu1 %v8660_v53  ;;  %1600 = vmatprep.mubr.bf16.mxu0 %v8662_v54 }
 0x176   : > { %1946 = vmatprep.mubr.bf16.mxu1 %v8662_v54 }
 0x17c   : > { %1601 = vmatmul.mubr.bf16.gmra.mrb[48].mxu0 %v8668_v59 }
 0x17d   : > { %1947 = vmatmul.mubr.bf16.gmra.mrb[48].mxu1 %v8668_v59  ;;  %1610 = vmatprep.mubr.bf16.mxu0 %v8670_v60 }
 0x17e   : > { %1956 = vmatprep.mubr.bf16.mxu1 %v8670_v60 }
 0x184   : > { %1611 = vmatmul.mubr.bf16.gmra.mrb[52].mxu0 %v8676_v63 }
 0x185   : > { %1957 = vmatmul.mubr.bf16.gmra.mrb[52].mxu1 %v8676_v63  ;;  %1653 = vmatprep.mubr.bf16.mxu0 %v10931_v4 }
 0x186   : > { %1999 = vmatprep.mubr.bf16.mxu1 %v10931_v4 }
 0x18c   : > { %1654 = vmatmul.mubr.bf16.vlgmr.msra.gmra.mrb[0].mxu0 %v8684_v7 }
 0x18d   : > { %2000 = vmatmul.mubr.bf16.vlgmr.msra.gmra.mrb[0].mxu1 %v8684_v7  ;;  %2141 = vmatpush1.bf16.msra.mxu0 %v7264_v6  ;;  %v7285_v6 = vld [vmem:[%s8366_s10 + $0x160] ss:$24 sps:$4 sm:$0xff]  }
 0x18e   : > { %1663 = vmatprep.mubr.bf16.mxu0 %v10931_v4  ;;  %2009 = vmatprep.mubr.bf16.mxu1 %v10931_v4 }
 0x18f   : > { %2142 = vmatprep.subr.bf16.mxu0 %v7269_v12  ;;  %4455 = vmatpush1.bf16.msra.mxu1 %v7315_v13  ;;  %v7290_v12 = vld [vmem:[%s8366_s10 + $0x194] ss:$24 sps:$4 sm:$0xff]   ;;  %v8732_v13 = vpack.c.bf16 %v455_v5, %v452_v3  ;;  %v7303_v3 = vld [vmem:[%s8366_s10 + $0x280] ss:$24 sps:$4 sm:$0xff]  }
 0x190   : > { %4456 = vmatprep.subr.bf16.mxu1 %v7323_v20  ;;  %v458_v20 = vld [vmem:[#allocation2 + $0x100] sm:$0xff]  ;;  %v7308_v5 = vld [vmem:[%s8366_s10 + $0x2b4] ss:$24 sps:$4 sm:$0xff]  }
 0x191   : > { %2143 = vmatpush1.bf16.msra.mxu0 %v7267_v14  ;;  %v7288_v14 = vld [vmem:[%s8366_s10 + $0x190] ss:$24 sps:$4 sm:$0xff]  }
 0x192   : > { %2144 = vmatprep.subr.bf16.mxu0 %v7272_v19  ;;  %v7341_v19 = vld [vmem:[%s8375_s11 + $0x7c] ss:$12 sps:$4 sm:$0xff]  }
 0x193   : > { %4457 = vmatpush1.bf16.msra.mxu1 %v7321_v21  ;;  %v461_v21 = vld [vmem:[#allocation2 + $0x118] sm:$0xff] }
 0x194   : > { %1664 = vmatmul.mubr.bf16.gmra.mrb[4].mxu0 %v8696_v26  ;;  %4458 = vmatprep.subr.bf16.mxu1 %v7326_v32  ;;  %v7342_v32 = vld [vmem:[%s8375_s11 + $0x90] ss:$12 sps:$4 sm:$0xff]   ;;  %v8746_v33 = vpack.c.bf16 %v461_v21, %v458_v20  ;;  %v7309_v21 = vld [vmem:[%s8366_s10 + $0x2e0] ss:$24 sps:$4 sm:$0xff]  }
 0x195   : > { %2010 = vmatmul.mubr.bf16.gmra.mrb[4].mxu1 %v8696_v26  ;;  %1673 = vmatprep.mubr.bf16.mxu0 %v10931_v4  ;;  %v479_v20 = vld [vmem:[#allocation2 + $0x1a8] sm:$0xff] }
 0x196   : > { %2019 = vmatprep.mubr.bf16.mxu1 %v10931_v4  ;;  %2145 = vmatpush1.bf16.msra.mxu0 %v7270_v27  ;;  %v7344_v27 = vld [vmem:[%s8375_s11 + $0x94] ss:$12 sps:$4 sm:$0xff]  }
 0x197   : > { %2146 = vmatprep.subr.bf16.mxu0 %v7275_v28  ;;  %4459 = vmatpush1.bf16.msra.mxu1 %v7324_v29  ;;  %v7291_v28 = vld [vmem:[%s8366_s10 + $0x1c0] ss:$24 sps:$4 sm:$0xff]   ;;  %v7296_v29 = vld [vmem:[%s8366_s10 + $0x1f4] ss:$24 sps:$4 sm:$0xff]  }
 0x198   : > { %4460 = vmatprep.subr.bf16.mxu1 %v7332_v47  ;;  %v7297_v47 = vld [vmem:[%s8366_s10 + $0x220] ss:$24 sps:$4 sm:$0xff]  }
 0x19a   : > { %2147 = vmatpush1.bf16.msra.mxu0 %v7273_v35  ;;  %v7299_v35 = vld [vmem:[%s8366_s10 + $0x224] ss:$24 sps:$4 sm:$0xff]  }
 0x19b   : > { %2148 = vmatprep.subr.bf16.mxu0 %v7278_v40  ;;  %4461 = vmatpush1.bf16.msra.mxu1 %v7330_v46  ;;  %v7348_v40 = vld [vmem:[%s8375_s11 + $0xa8] ss:$12 sps:$4 sm:$0xff]   ;;  %v7350_v46 = vld [vmem:[%s8375_s11 + $0xac] ss:$12 sps:$4 sm:$0xff]  }
 0x19c   : > { %1674 = vmatmul.mubr.bf16.gmra.mrb[8].mxu0 %v8708_v41  ;;  %4462 = vmatprep.subr.bf16.mxu1 %v7335_v0  ;;  %v473_v0 = vld [vmem:[#allocation2 + $0x178] sm:$0xff] }
 0x19d   : > { %2020 = vmatmul.mubr.bf16.gmra.mrb[8].mxu1 %v8708_v41  ;;  %1683 = vmatprep.mubr.bf16.mxu0 %v10931_v4 }
 0x19e   : > { %2029 = vmatprep.mubr.bf16.mxu1 %v10931_v4  ;;  %2149 = vmatpush1.bf16.msra.mxu0 %v7276_v42  ;;  %v464_v42 = vld [vmem:[#allocation2 + $0x130] sm:$0xff] }
 0x19f   : > { %2150 = vmatprep.subr.bf16.mxu0 %v7281_v43  ;;  %4463 = vmatpush1.bf16.msra.mxu1 %v7333_v62  ;;  %v467_v43 = vld [vmem:[#allocation2 + $0x148] sm:$0xff]  ;;  %v470_v62 = vld [vmem:[#allocation2 + $0x160] sm:$0xff] }
 0x1a0   : > { %4464 = vmatprep.subr.bf16.mxu1 %v7341_v19  ;;  %v8758_v49 = vpack.c.bf16 %v467_v43, %v464_v42  ;;  %v476_v19 = vld [vmem:[#allocation2 + $0x190] sm:$0xff]  ;;  %v7368_v43 = vld [vmem:[%s8375_s11 + $0x10c] ss:$12 sps:$4 sm:$0xff]  }
 0x1a1   : > { %v7366_v42 = vld [vmem:[%s8375_s11 + $0x108] ss:$12 sps:$4 sm:$0xff]  }
 0x1a2   : > { %2151 = vmatpush1.bf16.msra.mxu0 %v7279_v55  ;;  %v7300_v55 = vld [vmem:[%s8366_s10 + $0x250] ss:$24 sps:$4 sm:$0xff]  }
 0x1a3   : > { %2152 = vmatprep.subr.bf16.mxu0 %v7284_v56  ;;  %4465 = vmatpush1.bf16.msra.mxu1 %v7339_v18  ;;  %v7305_v56 = vld [vmem:[%s8366_s10 + $0x284] ss:$24 sps:$4 sm:$0xff]   ;;  %v7359_v18 = vld [vmem:[%s8375_s11 + $0xdc] ss:$12 sps:$4 sm:$0xff]  }
 0x1a4   : > { %1684 = vmatmul.mubr.bf16.gmra.mrb[12].mxu0 %v8720_v57  ;;  %4466 = vmatprep.subr.bf16.mxu1 %v7344_v27  ;;  %v7314_v27 = vld [vmem:[%s8366_s10 + $0x314] ss:$24 sps:$4 sm:$0xff]  }
 0x1a5   : > { %2030 = vmatmul.mubr.bf16.gmra.mrb[12].mxu1 %v8720_v57  ;;  %1693 = vmatprep.mubr.bf16.mxu0 %v10931_v4 }
 0x1a6   : > { %2039 = vmatprep.mubr.bf16.mxu1 %v10931_v4  ;;  %2153 = vmatpush1.bf16.msra.mxu0 %v7282_v58  ;;  %v7351_v58 = vld [vmem:[%s8375_s11 + $0xc0] ss:$12 sps:$4 sm:$0xff]  }
 0x1a7   : > { %2154 = vmatprep.subr.bf16.mxu0 %v7287_v61  ;;  %4467 = vmatpush1.bf16.msra.mxu1 %v7342_v32  ;;  %v7353_v61 = vld [vmem:[%s8375_s11 + $0xc4] ss:$12 sps:$4 sm:$0xff]   ;;  %v7362_v32 = vld [vmem:[%s8375_s11 + $0xf4] ss:$12 sps:$4 sm:$0xff]  }
 0x1a8   : > { %4468 = vmatprep.subr.bf16.mxu1 %v7350_v46  ;;  %v488_v46 = vld [vmem:[#allocation2 + $0x1f0] sm:$0xff] }
 0x1aa   : > { %2155 = vmatpush1.bf16.msra.mxu0 %v7285_v6  ;;  %v8770_v6 = vpack.c.bf16 %v473_v0, %v470_v62  ;;  %v500_v0 = vld [vmem:[#allocation2 + $0x250] sm:$0xff] }
 0x1ab   : > { %2156 = vmatprep.subr.bf16.mxu0 %v7290_v12  ;;  %4469 = vmatpush1.bf16.msra.mxu1 %v7348_v40  ;;  %v7306_v12 = vld [vmem:[%s8366_s10 + $0x2b0] ss:$24 sps:$4 sm:$0xff]  }
 0x1ac   : > { %1694 = vmatmul.mubr.bf16.gmra.mrb[16].mxu0 %v8732_v13  ;;  %4470 = vmatprep.subr.bf16.mxu1 %v7353_v61  ;;  %10982 = vst [vmem:[#allocation17_spill] sm:$0xff] %v8770_v6  ;;  %v497_v61 = vld [vmem:[#allocation2 + $0x238] sm:$0xff] }
 0x1ad   : > { %2040 = vmatmul.mubr.bf16.gmra.mrb[16].mxu1 %v8732_v13  ;;  %1703 = vmatprep.mubr.bf16.mxu0 %v10931_v4 }
 0x1ae   : > { %2049 = vmatprep.mubr.bf16.mxu1 %v10931_v4  ;;  %2157 = vmatpush1.bf16.msra.mxu0 %v7288_v14  ;;  %v7311_v14 = vld [vmem:[%s8366_s10 + $0x2e4] ss:$24 sps:$4 sm:$0xff]  }
 0x1af   : > { %2158 = vmatprep.subr.bf16.mxu0 %v7293_v15  ;;  %4471 = vmatpush1.bf16.msra.mxu1 %v7351_v58  ;;  %v7357_v15 = vld [vmem:[%s8375_s11 + $0xd8] ss:$12 sps:$4 sm:$0xff]  }
 0x1b0   : > { %4472 = vmatprep.subr.bf16.mxu1 %v7359_v18  ;;  %v494_v58 = vld [vmem:[#allocation2 + $0x220] sm:$0xff] }
 0x1b1   : > { %v8806_v62 = vpack.c.bf16 %v497_v61, %v494_v58  ;;  %v7372_v58 = vld [vmem:[%s8366_s10 + $0x460] ss:$24 sps:$4 sm:$0xff]  }
 0x1b2   : > { %2159 = vmatpush1.bf16.msra.mxu0 %v7291_v28  ;;  %v8782_v28 = vpack.c.bf16 %v479_v20, %v476_v19  ;;  %v7375_v19 = vld [vmem:[%s8375_s11 + $0x138] ss:$12 sps:$4 sm:$0xff]   ;;  %v7380_v20 = vld [vmem:[%s8375_s11 + $0x154] ss:$12 sps:$4 sm:$0xff]  }
 0x1b3   : > { %2160 = vmatprep.subr.bf16.mxu0 %v7296_v29  ;;  %4473 = vmatpush1.bf16.msra.mxu1 %v7357_v15  ;;  %v7360_v29 = vld [vmem:[%s8375_s11 + $0xf0] ss:$12 sps:$4 sm:$0xff]   ;;  %10986 = vst [vmem:[#allocation21_spill] sm:$0xff] %v8806_v62 }
 0x1b4   : > { %1704 = vmatmul.mubr.bf16.gmra.mrb[20].mxu0 %v8746_v33  ;;  %10983 = vst [vmem:[#allocation18_spill] sm:$0xff] %v8782_v28  ;;  %4474 = vmatprep.subr.bf16.mxu1 %v7362_v32  ;;  %v7377_v15 = vld [vmem:[%s8375_s11 + $0x13c] ss:$12 sps:$4 sm:$0xff]   ;;  %v7318_v32 = vld [vmem:[%s8366_s10 + $0x340] ss:$24 sps:$4 sm:$0xff]  }
 0x1b5   : > { %2050 = vmatmul.mubr.bf16.gmra.mrb[20].mxu1 %v8746_v33  ;;  %1713 = vmatprep.mubr.bf16.mxu0 %v10931_v4 }
 0x1b6   : > { %2059 = vmatprep.mubr.bf16.mxu1 %v10931_v4  ;;  %2161 = vmatpush1.bf16.msra.mxu0 %v7294_v34  ;;  %v482_v34 = vld [vmem:[#allocation2 + $0x1c0] sm:$0xff] }
 0x1b7   : > { %2162 = vmatprep.subr.bf16.mxu0 %v7299_v35  ;;  %v485_v35 = vld [vmem:[#allocation2 + $0x1d8] sm:$0xff]  ;;  %4475 = vmatpush1.bf16.msra.mxu1 %v7360_v29 }
 0x1b8   : > { %v8790_v40 = vpack.c.bf16 %v485_v35, %v482_v34  ;;  %4476 = vmatprep.subr.bf16.mxu1 %v7368_v43  ;;  %v7320_v29 = vld [vmem:[%s8366_s10 + $0x344] ss:$24 sps:$4 sm:$0xff]   ;;  %v7329_v34 = vld [vmem:[%s8366_s10 + $0x374] ss:$24 sps:$4 sm:$0xff]   ;;  %v7327_v35 = vld [vmem:[%s8366_s10 + $0x370] ss:$24 sps:$4 sm:$0xff]  }
 0x1b9   : > { %v7338_v43 = vld [vmem:[%s8366_s10 + $0x3a4] ss:$24 sps:$4 sm:$0xff]  }
 0x1ba   : > { %2163 = vmatpush1.bf16.msra.mxu0 %v7297_v47  ;;  %10984 = vst [vmem:[#allocation19_spill] sm:$0xff] %v8790_v40  ;;  %v491_v47 = vld [vmem:[#allocation2 + $0x208] sm:$0xff] }
 0x1bb   : > { %2164 = vmatprep.subr.bf16.mxu0 %v7302_v48  ;;  %4477 = vmatpush1.bf16.msra.mxu1 %v7366_v42  ;;  %v8798_v48 = vpack.c.bf16 %v491_v47, %v488_v46  ;;  %v7381_v42 = vld [vmem:[%s8375_s11 + $0x168] ss:$12 sps:$4 sm:$0xff]   ;;  %v7345_v46 = vld [vmem:[%s8366_s10 + $0x3d0] ss:$24 sps:$4 sm:$0xff]   ;;  %v7356_v47 = vld [vmem:[%s8366_s10 + $0x404] ss:$24 sps:$4 sm:$0xff]  }
 0x1bc   : > { %1714 = vmatmul.mubr.bf16.gmra.mrb[24].mxu0 %v8758_v49 }
 0x1bd   : > { %2060 = vmatmul.mubr.bf16.gmra.mrb[24].mxu1 %v8758_v49  ;;  %1723 = vmatprep.mubr.bf16.mxu0 %v10931_v4  ;;  %10985 = vst [vmem:[#allocation20_spill] sm:$0xff] %v8798_v48 }
 0x1be   : > { %2069 = vmatprep.mubr.bf16.mxu1 %v10931_v4  ;;  %2165 = vmatpush1.bf16.msra.mxu0 %v7300_v55  ;;  %v7369_v55 = vld [vmem:[%s8375_s11 + $0x120] ss:$12 sps:$4 sm:$0xff]  }
 0x1bf   : > { %2166 = vmatprep.subr.bf16.mxu0 %v7305_v56  ;;  %v7371_v56 = vld [vmem:[%s8375_s11 + $0x124] ss:$12 sps:$4 sm:$0xff]  }
 0x1c0   : > { %4478 = vmatprep.subr.bf16.mxu1 %v7371_v56  ;;  %v7374_v56 = vld [vmem:[%s8366_s10 + $0x464] ss:$24 sps:$4 sm:$0xff]  }
 0x1c1   : > { %4479 = vmatpush1.bf16.msra.mxu1 %v7369_v55  ;;  %v7363_v55 = vld [vmem:[%s8366_s10 + $0x430] ss:$24 sps:$4 sm:$0xff]  }
 0x1c2   : > { %2167 = vmatpush1.bf16.msra.mxu0 %v7303_v3  ;;  %v503_v3 = vld [vmem:[#allocation2 + $0x268] sm:$0xff]  ;;  %4480 = vmatprep.subr.bf16.mxu1 %v7377_v15 }
 0x1c3   : > { %2168 = vmatprep.subr.bf16.mxu0 %v7308_v5  ;;  %v8812_v5 = vpack.c.bf16 %v503_v3, %v500_v0 }
 0x1c4   : > { %1724 = vmatmul.mubr.bf16.gmra.mrb[28].mxu0 %v8770_v6 }
 0x1c5   : > { %2070 = vmatmul.mubr.bf16.gmra.mrb[28].mxu1 %v8770_v6  ;;  %1733 = vmatprep.mubr.bf16.mxu0 %v10931_v4  ;;  %10987 = vst [vmem:[#allocation22_spill] sm:$0xff] %v8812_v5 }
 0x1c6   : > { %2079 = vmatprep.mubr.bf16.mxu1 %v10931_v4  ;;  %2169 = vmatpush1.bf16.msra.mxu0 %v7306_v12  ;;  %v506_v12 = vld [vmem:[#allocation2 + $0x280] sm:$0xff] }
 0x1c7   : > { %2170 = vmatprep.subr.bf16.mxu0 %v7311_v14  ;;  %v509_v14 = vld [vmem:[#allocation2 + $0x298] sm:$0xff]  ;;  %4481 = vmatpush1.bf16.msra.mxu1 %v7375_v19 }
 0x1c8   : > { %v8819_v18 = vpack.c.bf16 %v509_v14, %v506_v12  ;;  %4482 = vmatprep.subr.bf16.mxu1 %v7380_v20 }
 0x1ca   : > { %2171 = vmatpush1.bf16.msra.mxu0 %v7309_v21  ;;  %10988 = vst [vmem:[#allocation23_spill] sm:$0xff] %v8819_v18  ;;  %v7378_v21 = vld [vmem:[%s8375_s11 + $0x150] ss:$12 sps:$4 sm:$0xff]  }
 0x1cb   : > { %2313 = vmatprep.subr.bf16.mxu0 %v7314_v27  ;;  %4483 = vmatpush1.bf16.msra.mxu1 %v7378_v21  ;;  %v7312_v27 = vld [vmem:[%s8366_s10 + $0x310] ss:$24 sps:$4 sm:$0xff]  }
 0x1cc   : > { %1734 = vmatmul.mubr.bf16.gmra.mrb[32].mxu0 %v8782_v28 }
 0x1cd   : > { %2080 = vmatmul.mubr.bf16.gmra.mrb[32].mxu1 %v8782_v28  ;;  %1743 = vmatprep.mubr.bf16.mxu0 %v10931_v4 }
 0x1ce   : > { %2089 = vmatprep.mubr.bf16.mxu1 %v10931_v4 }
 0x1d4   : > { %1744 = vmatmul.mubr.bf16.gmra.mrb[36].mxu0 %v8790_v40 }
 0x1d5   : > { %2090 = vmatmul.mubr.bf16.gmra.mrb[36].mxu1 %v8790_v40  ;;  %1753 = vmatprep.mubr.bf16.mxu0 %v10931_v4 }
 0x1d6   : > { %2099 = vmatprep.mubr.bf16.mxu1 %v10931_v4 }
 0x1dc   : > { %1754 = vmatmul.mubr.bf16.gmra.mrb[40].mxu0 %v8798_v48 }
 0x1dd   : > { %2100 = vmatmul.mubr.bf16.gmra.mrb[40].mxu1 %v8798_v48  ;;  %1763 = vmatprep.mubr.bf16.mxu0 %v10931_v4 }
 0x1de   : > { %2109 = vmatprep.mubr.bf16.mxu1 %v10931_v4 }
 0x1e4   : > { %1764 = vmatmul.mubr.bf16.gmra.mrb[44].mxu0 %v8806_v62 }
 0x1e5   : > { %2110 = vmatmul.mubr.bf16.gmra.mrb[44].mxu1 %v8806_v62  ;;  %1773 = vmatprep.mubr.bf16.mxu0 %v10931_v4  ;;  %v7390_v62 = vld [vmem:[%s8375_s11 + $0x1b0] ss:$12 sps:$4 sm:$0xff]  }
 0x1e6   : > { %2119 = vmatprep.mubr.bf16.mxu1 %v10931_v4 }
 0x1ec   : > { %1774 = vmatmul.mubr.bf16.gmra.mrb[48].mxu0 %v8812_v5 }
 0x1ed   : > { %2120 = vmatmul.mubr.bf16.gmra.mrb[48].mxu1 %v8812_v5  ;;  %1783 = vmatprep.mubr.bf16.mxu0 %v10931_v4 }
 0x1ee   : > { %2129 = vmatprep.mubr.bf16.mxu1 %v10931_v4 }
 0x1f4   : > { %1784 = vmatmul.mubr.bf16.gmra.mrb[52].mxu0 %v8819_v18 }
 0x1f5   : > { %2130 = vmatmul.mubr.bf16.gmra.mrb[52].mxu1 %v8819_v18  ;;  %2172 = vmatprep.mubr.bf16.mxu0 %v8519_v51  ;;  %v7383_v51 = vld [vmem:[%s8375_s11 + $0x16c] ss:$12 sps:$4 sm:$0xff]  }
 0x1f6   : > { %4484 = vmatprep.subr.bf16.mxu1 %v7383_v51 }
 0x1f7   : > { %4485 = vmatpush1.bf16.msra.mxu1 %v7381_v42 }
 0x1fc   : > { %2173 = vmatmul.mubr.bf16.vlgmr.msra.gmra.mrb[56].mxu0 %v8540_v9  ;;  %v7336_v9 = vld [vmem:[%s8366_s10 + $0x3a0] ss:$24 sps:$4 sm:$0xff]  }
 0x1fd   : > { %2314 = vmatpush1.bf16.msra.mxu0 %v7312_v27  ;;  %2182 = vmatprep.mubr.bf16.mxu0 %v8543_v11  ;;  %v7347_v11 = vld [vmem:[%s8366_s10 + $0x3d4] ss:$24 sps:$4 sm:$0xff]  }
 0x1fe   : > { %2315 = vmatprep.subr.bf16.mxu0 %v7320_v29 }
 0x201   : > { %2316 = vmatpush1.bf16.msra.mxu0 %v7318_v32 }
 0x202   : > { %2317 = vmatprep.subr.bf16.mxu0 %v7329_v34 }
 0x204   : > { %2183 = vmatmul.mubr.bf16.gmra.mrb[60].mxu0 %v8555_v22  ;;  %v7354_v22 = vld [vmem:[%s8366_s10 + $0x400] ss:$24 sps:$4 sm:$0xff]  }
 0x205   : > { %2192 = vmatprep.mubr.bf16.mxu0 %v8557_v23  ;;  %2318 = vmatpush1.bf16.msra.mxu0 %v7327_v35  ;;  %v7365_v23 = vld [vmem:[%s8366_s10 + $0x434] ss:$24 sps:$4 sm:$0xff]  }
 0x206   : > { %2319 = vmatprep.subr.bf16.mxu0 %v7338_v43 }
 0x209   : > { %2320 = vmatpush1.bf16.msra.mxu0 %v7336_v9 }
 0x20a   : > { %2321 = vmatprep.subr.bf16.mxu0 %v7347_v11 }
 0x20c   : > { %2193 = vmatmul.mubr.bf16.gmra.mrb[64].mxu0 %v8571_v36  ;;  %v7386_v36 = vld [vmem:[%s8375_s11 + $0x184] ss:$12 sps:$4 sm:$0xff]  }
 0x20d   : > { %2202 = vmatprep.mubr.bf16.mxu0 %v8573_v37  ;;  %2322 = vmatpush1.bf16.msra.mxu0 %v7345_v46  ;;  %v698_v37 = vlaneseq }
 0x20e   : > { %2323 = vmatprep.subr.bf16.mxu0 %v7356_v47  ;;  %4627 = vmatprep.subr.bf16.mxu1 %v7386_v36 }
 0x211   : > { %2324 = vmatpush1.bf16.msra.mxu0 %v7354_v22 }
 0x212   : > { %2325 = vmatprep.subr.bf16.mxu0 %v7365_v23 }
 0x214   : > { %2203 = vmatmul.mubr.bf16.gmra.mrb[68].mxu0 %v8587_v50  ;;  %v8868_v50 = vshrl.u32 %v698_v37, 7 }
 0x215   : > { %2212 = vmatprep.mubr.bf16.mxu0 %v8589_v52  ;;  %2326 = vmatpush1.bf16.msra.mxu0 %v7363_v55 }
 0x216   : > { %2327 = vmatprep.subr.bf16.mxu0 %v7374_v56  ;;  %10989 = vst [vmem:[#allocation24_spill] sm:$0xff] %v8868_v50  ;;  %v10930_v52 = vsub.s32 0, %v8868_v50 }
 0x219   : > { %2328 = vmatpush1.bf16.msra.mxu0 %v7372_v58 }
 0x21c   : > { %2213 = vmatmul.mubr.bf16.gmra.mrb[72].mxu0 %v8603_v1  ;;  %v10928_v1 = vsub.s32 2, %v8868_v50 }
 0x21d   : > { %2222 = vmatprep.mubr.bf16.mxu0 %v8605_v2  ;;  %v696_v2 = vld [vmem:[%s289_s8] sm:$0x3f] }
 0x224   : > { %2223 = vmatmul.mubr.bf16.gmra.mrb[76].mxu0 %v8612_v8  ;;  %v10929_v8 = vsub.s32 1, %v8868_v50 }
 0x225   : > { %2232 = vmatprep.mubr.bf16.mxu0 %v8614_v10  ;;  %v712_v10 = vsub.s32 3, %v8868_v50 }
 0x22c   : > { %2233 = vmatmul.mubr.bf16.gmra.mrb[80].mxu0 %v8620_v16  ;;  %v8880_v16 = vrot.slane %v696_v2, %v10930_v52 }
 0x22d   : > { %2242 = vmatprep.mubr.bf16.mxu0 %v8622_v17  ;;  %v8884_v17 = vrot.slane %v696_v2, %v10928_v1 }
 0x234   : > { %2243 = vmatmul.mubr.bf16.gmra.mrb[84].mxu0 %v8628_v24  ;;  %v8888_v24 = vrot.slane %v696_v2, %v10929_v8 }
 0x235   : > { %2252 = vmatprep.mubr.bf16.mxu0 %v8630_v25  ;;  %v8890_v25 = vrot.slane %v696_v2, %v712_v10 }
 0x23c   : > { %2253 = vmatmul.mubr.bf16.gmra.mrb[88].mxu0 %v8636_v30 }
 0x23d   : > { %2262 = vmatprep.mubr.bf16.mxu0 %v8638_v31 }
 0x244   : > { %2263 = vmatmul.mubr.bf16.gmra.mrb[92].mxu0 %v8644_v38 }
 0x245   : > { %2272 = vmatprep.mubr.bf16.mxu0 %v8646_v39 }
 0x24c   : > { %2273 = vmatmul.mubr.bf16.gmra.mrb[96].mxu0 %v8652_v44 }
 0x24d   : > { %2282 = vmatprep.mubr.bf16.mxu0 %v8654_v45 }
 0x254   : > { %2283 = vmatmul.mubr.bf16.gmra.mrb[100].mxu0 %v8660_v53 }
 0x255   : > { %2292 = vmatprep.mubr.bf16.mxu0 %v8662_v54 }
 0x25c   : > { %2293 = vmatmul.mubr.bf16.gmra.mrb[104].mxu0 %v8668_v59 }
 0x25d   : > { %2302 = vmatprep.mubr.bf16.mxu0 %v8670_v60 }
 0x25f   : > { %v1655_v30 = vpop.f32.mrb[0].mxu0 }
 0x260   : > { %v2001_v31 = vpop.f32.mrb[0].mxu1  ;;  %v6579_v38 = vadd.f32 %v1655_v30, %v8880_v16  ;;  %v1657_v44 = vpop.f32.mrb[1].mxu0 }
 0x261   : > { %v6635_v39 = vadd.f32 %v2001_v31, %v8884_v17  ;;  %v2003_v45 = vpop.f32.mrb[1].mxu1  ;;  %v6580_v53 = vadd.f32 %v1657_v44, %v8888_v24  ;;  %v1659_v59 = vpop.f32.mrb[2].mxu0 }
 0x262   : > { %v6636_v54 = vadd.f32 %v2003_v45, %v8890_v25  ;;  %v2005_v61 = vpop.f32.mrb[2].mxu1  ;;  %v2654_v0 = vmul.f32 0.70710677, %v6579_v38  ;;  %v6581_v60 = vadd.f32 %v1659_v59, %v8880_v16  ;;  %v1661_v19 = vpop.f32.mrb[3].mxu0  ;;  %v2486_v58 = vmul.f32 0.5, %v6579_v38 }
 0x263   : > { %v2656_v3 = vmul.f32 0.70710677, %v6635_v39  ;;  %v2655_v12 = vmul.f32 0.70710677, %v6580_v53  ;;  %v6637_v15 = vadd.f32 %v2005_v61, %v8884_v17  ;;  %v2007_v20 = vpop.f32.mrb[3].mxu1  ;;  %v6582_v21 = vadd.f32 %v1661_v19, %v8888_v24 }
 0x264   : > { %v2657_v14 = vmul.f32 0.70710677, %v6636_v54  ;;  %7528 = verf.f32 %v2654_v0  ;;  %2303 = vmatmul.mubr.bf16.gmra.mrb[108].mxu0 %v8676_v63  ;;  %v6638_v27 = vadd.f32 %v2007_v20, %v8890_v25  ;;  %v2660_v29 = vmul.f32 0.70710677, %v6581_v60 }
 0x265   : > { %7530 = verf.f32 %v2656_v3  ;;  %2345 = vmatprep.mubr.bf16.mxu0 %v10931_v4  ;;  %v2662_v32 = vmul.f32 0.70710677, %v6637_v15  ;;  %v2661_v34 = vmul.f32 0.70710677, %v6582_v21  ;;  %v2488_v36 = vmul.f32 0.5, %v6635_v39 }
 0x266   : > { %7532 = verf.f32 %v2655_v12  ;;  %v2663_v35 = vmul.f32 0.70710677, %v6638_v27  ;;  %v8907_v10 = vmul.f32 0.5, %v6580_v53  ;;  %v8914_v39 = vmul.f32 0.5, %v6636_v54 }
 0x267   : > { %7534 = verf.f32 %v2657_v14  ;;  %v1665_v51 = vpop.f32.mrb[4].mxu0  ;;  %v2492_v61 = vmul.f32 0.5, %v6581_v60  ;;  %v2494_v53 = vmul.f32 0.5, %v6637_v15 }
 0x268   : > { %7536 = verf.f32 %v2660_v29  ;;  %v6583_v42 = vadd.f32 %v1665_v51, %v8880_v16  ;;  %v2011_v43 = vpop.f32.mrb[4].mxu1  ;;  %v1667_v9 = vpop.f32.mrb[5].mxu0 }
 0x269   : > { %7538 = verf.f32 %v2662_v32  ;;  %v6639_v63 = vadd.f32 %v2011_v43, %v8884_v17  ;;  %v6584_v11 = vadd.f32 %v1667_v9, %v8888_v24  ;;  %v2013_v46 = vpop.f32.mrb[5].mxu1  ;;  %v1669_v47 = vpop.f32.mrb[6].mxu0  ;;  %v8917_v32 = vmul.f32 0.5, %v6582_v21 }
 0x26a   : > { %7540 = verf.f32 %v2661_v34  ;;  %v2666_v22 = vmul.f32 0.70710677, %v6583_v42  ;;  %v6640_v23 = vadd.f32 %v2013_v46, %v8890_v25  ;;  %v2015_v55 = vpop.f32.mrb[6].mxu1  ;;  %v1671_v56 = vpop.f32.mrb[7].mxu0  ;;  %v6585_v44 = vadd.f32 %v1669_v47, %v8880_v16 }
 0x26b   : > { %7542 = verf.f32 %v2663_v35  ;;  %v2668_v37 = vmul.f32 0.70710677, %v6639_v63  ;;  %v2017_v2 = vpop.f32.mrb[7].mxu1  ;;  %v2667_v30 = vmul.f32 0.70710677, %v6584_v11  ;;  %v6641_v45 = vadd.f32 %v2015_v55, %v8884_v17 }
 0x26c   : > { %7544 = verf.f32 %v2666_v22  ;;  %v2669_v31 = vmul.f32 0.70710677, %v6640_v23  ;;  %2346 = vmatmul.mubr.bf16.vlgmr.msra.gmra.mrb[56].mxu0 %v8684_v7  ;;  %v6586_v59 = vadd.f32 %v1671_v56, %v8888_v24  ;;  %v2672_v12 = vmul.f32 0.70710677, %v6585_v44 }
 0x26d   : > { %7546 = verf.f32 %v2668_v37  ;;  %2355 = vmatprep.mubr.bf16.mxu0 %v10931_v4  ;;  %v6642_v7 = vadd.f32 %v2017_v2, %v8890_v25  ;;  %v8919_v34 = vmul.f32 0.5, %v6638_v27  ;;  %v2674_v51 = vmul.f32 0.70710677, %v6641_v45 }
 0x26e   : > { %v7529_v38 = vpop.eup %7528  ;;  %7548 = verf.f32 %v2667_v30  ;;  %v8921_v60 = vmul.f32 0.5, %v6583_v42  ;;  %v8923_v15 = vmul.f32 0.5, %v6639_v63  ;;  %v2673_v43 = vmul.f32 0.70710677, %v6586_v59 }
 0x26f   : > { %v7531_v0 = vpop.eup %7530  ;;  %v2990_v3 = vadd.f32 1.0, %v7529_v38  ;;  %7550 = verf.f32 %v2669_v31  ;;  %v1675_v14 = vpop.f32.mrb[8].mxu0  ;;  %v8927_v22 = vmul.f32 0.5, %v6584_v11  ;;  %v8929_v55 = vmul.f32 0.5, %v6640_v23 }
 0x270   : > { %v2021_v19 = vpop.f32.mrb[8].mxu1  ;;  %v7533_v20 = vpop.eup %7532  ;;  %v2992_v29 = vadd.f32 1.0, %v7531_v0  ;;  %7552 = verf.f32 %v2672_v12  ;;  %v8931_v21 = vmul.f32 0.5, %v6585_v44  ;;  %v8933_v27 = vmul.f32 0.5, %v6641_v45  ;;  %v7414_v45 = vld [vmem:[%s8375_s11 + $0xc8] ss:$12 sps:$4 sm:$0xff]  }
 0x271   : > { %v1677_v54 = vpop.f32.mrb[9].mxu0  ;;  %v7535_v35 = vpop.eup %7534  ;;  %v3158_v37 = vmul.f32 %v2990_v3, %v2486_v58  ;;  %v2991_v2 = vadd.f32 1.0, %v7533_v20  ;;  %v2675_v31 = vmul.f32 0.70710677, %v6642_v7  ;;  %7554 = verf.f32 %v2674_v51  ;;  %v7415_v12 = vld [vmem:[%s8375_s11 + $0x8] ss:$12 sps:$4 sm:$0xff]   ;;  %6279 = vmatprep.subr.bf16.mxu0 %v7414_v45 }
 0x272   : > { %v2023_v9 = vpop.f32.mrb[9].mxu1  ;;  %v8925_v46 = vpop.f32.mrb[10].mxu0  ;;  %v3160_v0 = vmul.f32 %v2992_v29, %v2488_v36  ;;  %v6587_v44 = vadd.f32 %v1675_v14, %v8880_v16  ;;  %v2993_v8 = vadd.f32 1.0, %v7535_v35  ;;  %7556 = verf.f32 %v2673_v43  ;;  %6280 = vmatpush3.bf16.msra.mxu0 %v7415_v12 }
 0x273   : > { %v7537_v47 = vpop.eup %7536  ;;  %v2025_v42 = vpop.f32.mrb[10].mxu1  ;;  %v6643_v58 = vadd.f32 %v2021_v19, %v8884_v17  ;;  %7558 = verf.f32 %v2675_v31  ;;  %v6588_v29 = vadd.f32 %v1677_v54, %v8888_v24  ;;  %v7419_v19 = vld [vmem:[%s8375_s11 + $0xe0] ss:$12 sps:$4 sm:$0xff]  }
 0x274   : > { %v8935_v56 = vpop.f32.mrb[11].mxu0  ;;  %v7539_v63 = vpop.eup %7538  ;;  %v2996_v30 = vadd.f32 1.0, %v7537_v47  ;;  %2356 = vmatmul.mubr.bf16.gmra.mrb[60].mxu0 %v8696_v26  ;;  %v2678_v36 = vmul.f32 0.70710677, %v6587_v44  ;;  %v8948_v47 = vmul.f32 0.5, %v6586_v59  ;;  %v8962_v59 = vmul.f32 %v2991_v2, %v8907_v10  ;;  %6281 = vmatprep.subr.bf16.mxu0 %v7419_v19 }
 0x275   : > { %v8937_v38 = vpop.f32.mrb[11].mxu1  ;;  %v7541_v11 = vpop.eup %7540  ;;  %v2998_v23 = vadd.f32 1.0, %v7539_v63  ;;  %2365 = vmatprep.mubr.bf16.mxu0 %v10931_v4  ;;  %v2679_v12 = vmul.f32 0.70710677, %v6588_v29  ;;  %v6645_v4 = vadd.f32 %v2025_v42, %v8884_v17  ;;  %v8985_v19 = vmul.f32 0.5, %v6643_v58 }
 0x276   : > { %v7543_v1 = vpop.eup %7542  ;;  %v3164_v52 = vmul.f32 %v2996_v30, %v2492_v61  ;;  %v2997_v51 = vadd.f32 1.0, %v7541_v11  ;;  %v8955_v30 = vmul.f32 0.5, %v6642_v7  ;;  %7560 = verf.f32 %v2678_v36 }
 0x277   : > { %v7545_v3 = vpop.eup %7544  ;;  %v3166_v20 = vmul.f32 %v2998_v23, %v2494_v53  ;;  %v1685_v61 = vpop.f32.mrb[12].mxu0  ;;  %v2999_v53 = vadd.f32 1.0, %v7543_v1  ;;  %v8967_v11 = vmul.f32 0.5, %v6587_v44  ;;  %v2680_v23 = vmul.f32 0.70710677, %v6643_v58 }
 0x278   : > { %v7547_v14 = vpop.eup %7546  ;;  %v8946_v26 = vpack.c.bf16 %v3164_v52, %v3158_v37  ;;  %v8950_v35 = vpop.f32.mrb[12].mxu1  ;;  %v8965_v37 = vmul.f32 %v2993_v8, %v8914_v39  ;;  %v3002_v7 = vadd.f32 1.0, %v7545_v3  ;;  %v3165_v39 = vmul.f32 %v2997_v51, %v8917_v32 }
 0x279   : > { %v7549_v43 = vpop.eup %7548  ;;  %v8953_v63 = vpack.c.bf16 %v3166_v20, %v3160_v0  ;;  %v8957_v54 = vpop.f32.mrb[13].mxu0  ;;  %v3004_v45 = vadd.f32 1.0, %v7547_v14  ;;  %v6644_v20 = vadd.f32 %v2023_v9, %v8890_v25  ;;  %v6589_v44 = vadd.f32 %v8925_v46, %v8880_v16  ;;  %v7420_v9 = vld [vmem:[%s8375_s11 + $0x20] ss:$12 sps:$4 sm:$0xff]  }
 0x27a   : > { %10990 = vst [vmem:[#allocation25_spill] sm:$0xff] %v8946_v26  ;;  %v8959_v31 = vpop.f32.mrb[13].mxu1  ;;  %v7551_v52 = vpop.eup %7550  ;;  %10992 = vst [vmem:[#allocation27_spill] sm:$0xff] %v8965_v37  ;;  %v3003_v2 = vadd.f32 1.0, %v7549_v43  ;;  %v8983_v3 = vmul.f32 %v2999_v53, %v8919_v34  ;;  %7562 = verf.f32 %v2680_v23  ;;  %v10994_v51 = vmov 0   ;;  %6282 = vmatpush3.bf16.msra.mxu0 %v7420_v9 }
 0x27b   : > { %10991 = vst [vmem:[#allocation26_spill] sm:$0xff] %v8953_v63  ;;  %v8969_v0 = vpop.f32.mrb[14].mxu0  ;;  %v8971_v1 = vpop.f32.mrb[14].mxu1  ;;  %v3005_v14 = vadd.f32 1.0, %v7551_v52  ;;  %7564 = verf.f32 %v2679_v12  ;;  %v2681_v63 = vmul.f32 0.70710677, %v6644_v20  ;;  %v8991_v42 = vmul.f32 %v3002_v7, %v8921_v60 }
 0x27c   : > { %v8974_v36 = vpop.f32.mrb[15].mxu0  ;;  %v8976_v10 = vpop.f32.mrb[15].mxu1  ;;  %10993 = vst [vmem:[#allocation28_spill] sm:$0xff] %v8983_v3  ;;  %2366 = vmatmul.mubr.bf16.gmra.mrb[64].mxu0 %v8708_v41  ;;  %v2684_v32 = vmul.f32 0.70710677, %v6589_v44  ;;  %v8994_v34 = vmul.f32 %v3004_v45, %v8923_v15  ;;  %v8996_v58 = vmul.f32 0.5, %v6588_v29  ;;  %v8999_v53 = vmul.f32 %v3003_v2, %v8927_v22 }
 0x27d   : > { %v7553_v8 = vpop.eup %7552  ;;  %2375 = vmatprep.mubr.bf16.mxu0 %v10994_v51  ;;  %v2686_v43 = vmul.f32 0.70710677, %v6645_v4  ;;  %7566 = verf.f32 %v2681_v63  ;;  %v6590_v52 = vadd.f32 %v8935_v56, %v8888_v24  ;;  %v6646_v60 = vadd.f32 %v8937_v38, %v8890_v25  ;;  %v7421_v29 = vld [vmem:[%s8375_s11 + $0xf8] ss:$12 sps:$4 sm:$0xff]  }
 0x27e   : > { %v3008_v50 = vadd.f32 1.0, %v7553_v8  ;;  %v7555_v46 = vpop.eup %7554  ;;  %10995 = vst [vmem:[#allocation29_spill] sm:$0xff] %v8994_v34  ;;  %v9011_v45 = vmul.f32 %v3005_v14, %v8929_v55  ;;  %v9013_v12 = vmul.f32 0.5, %v6644_v20  ;;  %7568 = verf.f32 %v2684_v32  ;;  %v7422_v8 = vld [vmem:[%s8375_s11 + $0x38] ss:$12 sps:$4 sm:$0xff]   ;;  %6283 = vmatprep.subr.bf16.mxu0 %v7421_v29 }
 0x27f   : > { %v7557_v41 = vpop.eup %7556  ;;  %v9005_v23 = vpop.f32.mrb[16].mxu0  ;;  %v6591_v22 = vadd.f32 %v1685_v61, %v8880_v16  ;;  %v3010_v2 = vadd.f32 1.0, %v7555_v46  ;;  %v9024_v9 = vmul.f32 0.5, %v6589_v44  ;;  %v2685_v34 = vmul.f32 0.70710677, %v6590_v52  ;;  %6284 = vmatpush3.bf16.msra.mxu0 %v7422_v8 }
 0x280   : > { %v9007_v15 = vpop.f32.mrb[16].mxu1  ;;  %v7559_v7 = vpop.eup %7558  ;;  %10996 = vst [vmem:[#allocation30_spill] sm:$0xff] %v9011_v45  ;;  %v9022_v38 = vmul.f32 %v3008_v50, %v8931_v21  ;;  %v3009_v61 = vadd.f32 1.0, %v7557_v41  ;;  %7570 = verf.f32 %v2686_v43  ;;  %v2687_v14 = vmul.f32 0.70710677, %v6646_v60 }
 0x281   : > { %v9016_v63 = vpop.f32.mrb[17].mxu0  ;;  %v9018_v56 = vpop.f32.mrb[17].mxu1  ;;  %v2690_v32 = vmul.f32 0.70710677, %v6591_v22  ;;  %v3011_v50 = vadd.f32 1.0, %v7559_v7  ;;  %7572 = verf.f32 %v2685_v34  ;;  %v6647_v21 = vadd.f32 %v8950_v35, %v8884_v17 }
 0x282   : > { %v9026_v3 = vpop.f32.mrb[18].mxu0  ;;  %v9028_v55 = vpop.f32.mrb[18].mxu1  ;;  %v6592_v44 = vadd.f32 %v8957_v54, %v8888_v24  ;;  %7574 = verf.f32 %v2687_v14  ;;  %v6648_v43 = vadd.f32 %v8959_v31, %v8890_v25  ;;  %v9041_v41 = vpack.c.bf16 %v3165_v39, %v8962_v59  ;;  %v7384_v34 = vld [vmem:[%s8375_s11 + $0x180] ss:$12 sps:$4 sm:$0xff]   ;;  %v7426_v35 = vld [vmem:[%s8375_s11 + $0x110] ss:$12 sps:$4 sm:$0xff]  }
 0x283   : > { %v7561_v20 = vpop.eup %7560  ;;  %v9030_v45 = vpop.f32.mrb[19].mxu0  ;;  %v6593_v29 = vadd.f32 %v8969_v0, %v8880_v16  ;;  %v9048_v8 = vmul.f32 0.5, %v6645_v4  ;;  %7576 = verf.f32 %v2690_v32  ;;  %v2692_v54 = vmul.f32 0.70710677, %v6647_v21  ;;  %v7389_v14 = vld [vmem:[%s8375_s11 + $0x19c] ss:$12 sps:$4 sm:$0xff]   ;;  %6285 = vmatprep.subr.bf16.mxu0 %v7426_v35 }
 0x284   : > { %v9036_v46 = vpop.f32.mrb[19].mxu1  ;;  %10997 = vst [vmem:[#allocation31_spill] sm:$0xff] %v9041_v41  ;;  %2376 = vmatmul.mubr.bf16.gmra.mrb[68].mxu0 %v8720_v57  ;;  %v3014_v7 = vadd.f32 1.0, %v7561_v20  ;;  %v7563_v31 = vpop.eup %7562  ;;  %v9053_v59 = vmul.f32 %v3010_v2, %v8933_v27  ;;  %v9056_v39 = vmul.f32 %v3009_v61, %v8948_v47  ;;  %v9058_v0 = vmul.f32 0.5, %v6590_v52  ;;  %4486 = vmatprep.mubr.bf16.mxu1 %v9041_v41  ;;  %v7387_v57 = vld [vmem:[%s8375_s11 + $0x198] ss:$12 sps:$4 sm:$0xff]  }
 0x285   : > { %2385 = vmatprep.mubr.bf16.mxu0 %v10994_v51  ;;  %v2691_v37 = vmul.f32 0.70710677, %v6592_v44  ;;  %v7565_v4 = vpop.eup %7564  ;;  %v9062_v20 = vmul.f32 0.5, %v6646_v60  ;;  %v9064_v32 = vmul.f32 0.5, %v6591_v22  ;;  %7578 = verf.f32 %v2692_v54  ;;  %4487 = vmatmul.mubr.bf16.vlgmr.msra.gmra.mrb[56].mxu1 %v8946_v26  ;;  %v7427_v35 = vld [vmem:[%s8375_s11 + $0x50] ss:$12 sps:$4 sm:$0xff]  }
 0x286   : > { %10998 = vst [vmem:[#allocation32_spill] sm:$0xff] %v9053_v59  ;;  %v2693_v18 = vmul.f32 0.70710677, %v6648_v43  ;;  %v9072_v52 = vmul.f32 %v3011_v50, %v8955_v30  ;;  %v2696_v2 = vmul.f32 0.70710677, %v6593_v29  ;;  %v6649_v60 = vadd.f32 %v8971_v1, %v8884_v17  ;;  %4628 = vmatpush1.bf16.msra.mxu1 %v7384_v34  ;;  %6286 = vmatpush3.bf16.msra.mxu0 %v7427_v35 }
 0x287   : > { %v9067_v27 = vpop.f32.mrb[20].mxu0  ;;  %7580 = verf.f32 %v2691_v37  ;;  %v7567_v54 = vpop.eup %7566  ;;  %v9082_v59 = vmul.f32 %v3014_v7, %v8967_v11  ;;  %v9084_v26 = vmul.f32 0.5, %v6647_v21  ;;  %v6594_v30 = vadd.f32 %v8974_v36, %v8888_v24  ;;  %4629 = vmatprep.subr.bf16.mxu1 %v7389_v14  ;;  %v7392_v1 = vld [vmem:[%s8375_s11 + $0x1b4] ss:$12 sps:$4 sm:$0xff]  }
 0x288   : > { %v9069_v47 = vpop.f32.mrb[20].mxu1  ;;  %10999 = vst [vmem:[#allocation33_spill] sm:$0xff] %v9072_v52  ;;  %v9076_v22 = vpop.f32.mrb[21].mxu0  ;;  %v6650_v37 = vadd.f32 %v8976_v10, %v8890_v25  ;;  %v3016_v41 = vadd.f32 1.0, %v7563_v31  ;;  %v3015_v5 = vadd.f32 1.0, %v7565_v4  ;;  %7582 = verf.f32 %v2693_v18 }
 0x289   : > { %v9078_v61 = vpop.f32.mrb[21].mxu1  ;;  %v9091_v50 = vpop.f32.mrb[22].mxu0  ;;  %v2698_v11 = vmul.f32 0.70710677, %v6649_v60  ;;  %v9099_v36 = vmul.f32 0.5, %v6592_v44  ;;  %v9101_v10 = vmul.f32 0.5, %v6648_v43  ;;  %7584 = verf.f32 %v2696_v2 }
 0x28a   : > { %v9093_v34 = vpop.f32.mrb[22].mxu1  ;;  %v7569_v52 = vpop.eup %7568  ;;  %v2697_v14 = vmul.f32 0.70710677, %v6594_v30  ;;  %v3017_v31 = vadd.f32 1.0, %v7567_v54  ;;  %v9104_v4 = vmul.f32 0.5, %v6593_v29  ;;  %4630 = vmatpush1.bf16.msra.mxu1 %v7387_v57  ;;  %v6595_v43 = vadd.f32 %v9005_v23, %v8880_v16 }
 0x28b   : > { %v9095_v21 = vpop.f32.mrb[23].mxu0  ;;  %v9097_v7 = vpop.f32.mrb[23].mxu1  ;;  %7586 = verf.f32 %v2698_v11  ;;  %v2699_v18 = vmul.f32 0.70710677, %v6650_v37  ;;  %v7428_v35 = vld [vmem:[%s8375_s11 + $0x128] ss:$12 sps:$4 sm:$0xff]   ;;  %v6651_v2 = vadd.f32 %v9007_v15, %v8884_v17  ;;  %4631 = vmatprep.subr.bf16.mxu1 %v7392_v1  ;;  %v9119_v11 = vmul.f32 %v3015_v5, %v8996_v58 }
 0x28c   : > { %11000 = vst [vmem:[#allocation34_spill] sm:$0xff] %v9097_v7  ;;  %v7571_v48 = vpop.eup %7570  ;;  %2386 = vmatmul.mubr.bf16.gmra.mrb[72].mxu0 %v8732_v13  ;;  %v3020_v40 = vadd.f32 1.0, %v7569_v52  ;;  %7588 = verf.f32 %v2697_v14  ;;  %v7395_v54 = vld [vmem:[%s8375_s11 + $0x1cc] ss:$12 sps:$4 sm:$0xff]   ;;  %v7432_v29 = vld [vmem:[%s8375_s11 + $0x68] ss:$12 sps:$4 sm:$0xff]   ;;  %v9116_v13 = vmul.f32 %v3016_v41, %v8985_v19  ;;  %v6596_v23 = vadd.f32 %v9016_v63, %v8888_v24  ;;  %6287 = vmatprep.subr.bf16.mxu0 %v7428_v35 }
 0x28d   : > { %v7573_v44 = vpop.eup %7572  ;;  %2395 = vmatprep.mubr.bf16.mxu0 %v10994_v51  ;;  %7590 = verf.f32 %v2699_v18  ;;  %v7393_v52 = vld [vmem:[%s8375_s11 + $0x1c8] ss:$12 sps:$4 sm:$0xff]   ;;  %v3022_v1 = vadd.f32 1.0, %v7571_v48  ;;  %v9124_v14 = vmul.f32 0.5, %v6649_v60  ;;  %v9126_v28 = vmul.f32 0.5, %v6594_v30  ;;  %6288 = vmatpush3.bf16.msra.mxu0 %v7432_v29 }
 0x28e   : > { %v7575_v57 = vpop.eup %7574  ;;  %11001 = vst [vmem:[#allocation35_spill] sm:$0xff] %v9116_v13  ;;  %v2702_v6 = vmul.f32 0.70710677, %v6595_v43  ;;  %v7398_v19 = vld [vmem:[%s8375_s11 + $0x1e4] ss:$12 sps:$4 sm:$0xff]   ;;  %v9132_v5 = vmul.f32 %v3017_v31, %v9013_v12  ;;  %v3021_v58 = vadd.f32 1.0, %v7573_v44  ;;  %4632 = vmatpush1.bf16.msra.mxu1 %v7390_v62  ;;  %v9141_v30 = vmul.f32 %v3020_v40, %v9024_v9 }
 0x28f   : > { %v7577_v15 = vpop.eup %7576  ;;  %v9128_v7 = vpop.f32.mrb[24].mxu0  ;;  %v9134_v41 = vmul.f32 0.5, %v6650_v37  ;;  %v2704_v63 = vmul.f32 0.70710677, %v6651_v2  ;;  %v2703_v35 = vmul.f32 0.70710677, %v6596_v23  ;;  %v6652_v12 = vadd.f32 %v9018_v56, %v8890_v25  ;;  %4633 = vmatprep.subr.bf16.mxu1 %v7395_v54 }
 0x290   : > { %11002 = vst [vmem:[#allocation36_spill] sm:$0xff] %v9132_v5  ;;  %v9136_v18 = vpop.f32.mrb[24].mxu1  ;;  %v9138_v48 = vpop.f32.mrb[25].mxu0  ;;  %7592 = verf.f32 %v2702_v6  ;;  %v7433_v62 = vld [vmem:[%s8375_s11 + $0x140] ss:$12 sps:$4 sm:$0xff]   ;;  %v3023_v29 = vadd.f32 1.0, %v7575_v57  ;;  %v9152_v40 = vpack.c.bf16 %v9056_v39, %v8999_v53  ;;  %v9160_v54 = vmul.f32 %v3022_v1, %v9048_v8 }
 0x291   : > { %v7579_v60 = vpop.eup %7578  ;;  %v9145_v31 = vpop.f32.mrb[25].mxu1  ;;  %v3026_v13 = vadd.f32 1.0, %v7577_v15  ;;  %7594 = verf.f32 %v2704_v63  ;;  %v7434_v56 = vld [vmem:[%s8375_s11 + $0x80] ss:$12 sps:$4 sm:$0xff]   ;;  %6289 = vmatprep.subr.bf16.mxu0 %v7433_v62  ;;  %v2705_v63 = vmul.f32 0.70710677, %v6652_v12  ;;  %v6653_v8 = vadd.f32 %v9028_v55, %v8884_v17 }
 0x292   : > { %v9147_v37 = vpop.f32.mrb[26].mxu0  ;;  %v7581_v44 = vpop.eup %7580  ;;  %11004 = vst [vmem:[#allocation38_spill] sm:$0xff] %v9152_v40  ;;  %11006 = vst [vmem:[#allocation40_spill] sm:$0xff] %v9160_v54  ;;  %v3028_v5 = vadd.f32 1.0, %v7579_v60  ;;  %7596 = verf.f32 %v2703_v35  ;;  %v7396_v15 = vld [vmem:[%s8375_s11 + $0x1e0] ss:$12 sps:$4 sm:$0xff]   ;;  %4496 = vmatprep.mubr.bf16.mxu1 %v9152_v40  ;;  %4634 = vmatpush1.bf16.msra.mxu1 %v7393_v52  ;;  %v9174_v60 = vmul.f32 %v3021_v58, %v9058_v0 }
 0x293   : > { %11003 = vst [vmem:[#allocation37_spill] sm:$0xff] %v9147_v37  ;;  %v9154_v6 = vpop.f32.mrb[26].mxu1  ;;  %v9156_v9 = vpop.f32.mrb[27].mxu0  ;;  %v9162_v37 = vmul.f32 0.5, %v6595_v43  ;;  %v3027_v39 = vadd.f32 1.0, %v7581_v44  ;;  %v9176_v35 = vmul.f32 0.5, %v6651_v2  ;;  %v9182_v44 = vpack.c.bf16 %v9022_v38, %v8991_v42  ;;  %4635 = vmatprep.subr.bf16.mxu1 %v7398_v19  ;;  %6290 = vmatpush3.bf16.msra.mxu0 %v7434_v56 }
 0x294   : > { %11005 = vst [vmem:[#allocation39_spill] sm:$0xff] %v9156_v9  ;;  %v9164_v57 = vpop.f32.mrb[27].mxu1  ;;  %v7583_v53 = vpop.eup %7582  ;;  %v6597_v9 = vadd.f32 %v9026_v3, %v8880_v16  ;;  %v7438_v43 = vld [vmem:[%s8375_s11 + $0x158] ss:$12 sps:$4 sm:$0xff]   ;;  %v9178_v62 = vmul.f32 0.5, %v6596_v23  ;;  %2396 = vmatmul.mubr.bf16.gmra.mrb[76].mxu0 %v8746_v33  ;;  %v9187_v52 = vmul.f32 %v3023_v29, %v9062_v20  ;;  %v9190_v54 = vmul.f32 %v3026_v13, %v9064_v32 }
 0x295   : > { %v7585_v1 = vpop.eup %7584  ;;  %11007 = vst [vmem:[#allocation41_spill] sm:$0xff] %v9182_v44  ;;  %v7401_v3 = vld [vmem:[%s8375_s11 + $0x1fc] ss:$12 sps:$4 sm:$0xff]   ;;  %v9192_v0 = vmul.f32 0.5, %v6652_v12  ;;  %2405 = vmatprep.mubr.bf16.mxu0 %v10994_v51  ;;  %v7439_v23 = vld [vmem:[%s8375_s11 + $0x98] ss:$12 sps:$4 sm:$0xff]   ;;  %v9197_v38 = vmul.f32 %v3028_v5, %v9084_v26  ;;  %4497 = vmatmul.mubr.bf16.gmra.mrb[60].mxu1 %v9182_v44  ;;  %v6598_v20 = vadd.f32 %v9030_v45, %v8888_v24  ;;  %7598 = verf.f32 %v2705_v63 }
 0x296   : > { %v7587_v55 = vpop.eup %7586  ;;  %11008 = vst [vmem:[#allocation42_spill] sm:$0xff] %v9187_v52  ;;  %v2708_v2 = vmul.f32 0.70710677, %v6597_v9  ;;  %v3029_v33 = vadd.f32 1.0, %v7583_v53  ;;  %v2710_v19 = vmul.f32 0.70710677, %v6653_v8  ;;  %6291 = vmatprep.subr.bf16.mxu0 %v7438_v43  ;;  %v9207_v12 = vmul.f32 %v3027_v39, %v9099_v36  ;;  %4636 = vmatpush1.bf16.msra.mxu1 %v7396_v15 }
 0x297   : > { %v7589_v42 = vpop.eup %7588  ;;  %11009 = vst [vmem:[#allocation43_spill] sm:$0xff] %v9197_v38  ;;  %v9202_v32 = vpop.f32.mrb[28].mxu0  ;;  %v6654_v26 = vadd.f32 %v9036_v46, %v8890_v25  ;;  %v9213_v5 = vadd.f32 %v9067_v27, %v8880_v16  ;;  %v7399_v56 = vld [vmem:[%s8375_s11 + $0x1f8] ss:$12 sps:$4 sm:$0xff]   ;;  %v7404_v53 = vld [vmem:[%s8375_s11 + $0x214] ss:$12 sps:$4 sm:$0xff]   ;;  %4637 = vmatprep.subr.bf16.mxu1 %v7401_v3  ;;  %6292 = vmatpush3.bf16.msra.mxu0 %v7439_v23 }
 0x298   : > { %v9204_v13 = vpop.f32.mrb[28].mxu1  ;;  %v7591_v58 = vpop.eup %7590  ;;  %v3032_v43 = vadd.f32 1.0, %v7585_v1  ;;  %v3034_v38 = vadd.f32 1.0, %v7587_v55  ;;  %v3033_v52 = vadd.f32 1.0, %v7589_v42  ;;  %7600 = verf.f32 %v2708_v2 }
 0x299   : > { %v9215_v29 = vpop.f32.mrb[29].mxu0  ;;  %v9217_v45 = vpop.f32.mrb[29].mxu1  ;;  %v3035_v46 = vadd.f32 1.0, %v7591_v58  ;;  %7602 = verf.f32 %v2710_v19  ;;  %v2709_v27 = vmul.f32 0.70710677, %v6598_v20  ;;  %v9228_v1 = vmul.f32 %v3029_v33, %v9101_v10 }
 0x29a   : > { %v9221_v36 = vpop.f32.mrb[30].mxu0  ;;  %v9223_v39 = vpop.f32.mrb[30].mxu1  ;;  %v2711_v15 = vmul.f32 0.70710677, %v6654_v26  ;;  %v9230_v55 = vmul.f32 0.5, %v6597_v9  ;;  %v6655_v3 = vadd.f32 %v9069_v47, %v8884_v17  ;;  %v9237_v58 = vmul.f32 0.5, %v6653_v8  ;;  %4638 = vmatpush1.bf16.msra.mxu1 %v7399_v56 }
 0x29b   : > { %v9225_v63 = vpop.f32.mrb[31].mxu0  ;;  %v7593_v44 = vpop.eup %7592  ;;  %11010 = vst [vmem:[#allocation44_spill] sm:$0xff] %v9228_v1  ;;  %v2714_v2 = vmul.f32 0.70710677, %v9213_v5  ;;  %7604 = verf.f32 %v2709_v27  ;;  %v6600_v23 = vadd.f32 %v9076_v22, %v8888_v24  ;;  %v6656_v10 = vadd.f32 %v9078_v61, %v8890_v25  ;;  %v7402_v9 = vld [vmem:[%s8375_s11 + $0x210] ss:$12 sps:$4 sm:$0xff]   ;;  %4639 = vmatprep.subr.bf16.mxu1 %v7404_v53 }
 0x29c   : > { %v9235_v42 = vpop.f32.mrb[31].mxu1  ;;  %v7595_v19 = vpop.eup %7594  ;;  %v7440_v33 = vld [vmem:[%s8375_s11 + $0x170] ss:$12 sps:$4 sm:$0xff]   ;;  %v9246_v47 = vmul.f32 %v3032_v43, %v9104_v4  ;;  %v9249_v40 = vmul.f32 %v3034_v38, %v9124_v14  ;;  %7606 = verf.f32 %v2711_v15  ;;  %v2716_v8 = vmul.f32 0.70710677, %v6655_v3  ;;  %2406 = vmatmul.mubr.bf16.gmra.mrb[80].mxu0 %v8758_v49 }
 0x29d   : > { %11011 = vst [vmem:[#allocation45_spill] sm:$0xff] %v9235_v42  ;;  %v7597_v1 = vpop.eup %7596  ;;  %v7407_v22 = vld [vmem:[%s8375_s11 + $0x22c] ss:$12 sps:$4 sm:$0xff]   ;;  %v7441_v27 = vld [vmem:[%s8375_s11 + $0xb0] ss:$12 sps:$4 sm:$0xff]   ;;  %v9255_v61 = vmul.f32 %v3033_v52, %v9126_v28  ;;  %v9258_v56 = vmul.f32 %v3035_v46, %v9134_v41  ;;  %v9260_v42 = vmul.f32 0.5, %v6598_v20  ;;  %2415 = vmatprep.mubr.bf16.mxu0 %v10994_v51  ;;  %6293 = vmatprep.subr.bf16.mxu0 %v7440_v33  ;;  %7608 = verf.f32 %v2714_v2 }
 0x29e   : > { %11012 = vst [vmem:[#allocation46_spill] sm:$0xff] %v9249_v40  ;;  %v9262_v4 = vmul.f32 0.5, %v6654_v26  ;;  %v7405_v14 = vld [vmem:[%s8375_s11 + $0x228] ss:$12 sps:$4 sm:$0xff]   ;;  %v3038_v38 = vadd.f32 1.0, %v7593_v44  ;;  %v3040_v43 = vadd.f32 1.0, %v7595_v19  ;;  %6294 = vmatpush3.bf16.msra.mxu0 %v7441_v27  ;;  %7610 = verf.f32 %v2716_v8  ;;  %4640 = vmatpush1.bf16.msra.mxu1 %v7402_v9 }
 0x29f   : > { %11013 = vst [vmem:[#allocation47_spill] sm:$0xff] %v9258_v56  ;;  %v2715_v49 = vmul.f32 0.70710677, %v6600_v23  ;;  %v9266_v53 = vpop.f32.mrb[32].mxu0  ;;  %v3039_v28 = vadd.f32 1.0, %v7597_v1  ;;  %v9272_v52 = vpack.c.bf16 %v9174_v60, %v9119_v11  ;;  %v6601_v44 = vadd.f32 %v9091_v50, %v8880_v16  ;;  %4641 = vmatprep.subr.bf16.mxu1 %v7407_v22  ;;  %v7599_v19 = vpop.eup %7598 }
 0x2a0   : > { %v9268_v15 = vpop.f32.mrb[32].mxu1  ;;  %v2717_v41 = vmul.f32 0.70710677, %v6656_v10  ;;  %v9274_v20 = vpop.f32.mrb[33].mxu0  ;;  %v6657_v46 = vadd.f32 %v9093_v34, %v8884_v17  ;;  %v9284_v1 = vpack.c.bf16 %v9141_v30, %v9082_v59  ;;  %v7410_v60 = vld [vmem:[%s8375_s11 + $0x244] ss:$12 sps:$4 sm:$0xff]   ;;  %v6602_v50 = vadd.f32 %v9095_v21, %v8888_v24 }
 0x2a1   : > { %11014 = vst [vmem:[#allocation48_spill] sm:$0xff] %v9272_v52  ;;  %v9276_v26 = vpop.f32.mrb[33].mxu1  ;;  %7612 = verf.f32 %v2715_v49  ;;  %v9286_v2 = vpop.f32.mrb[34].mxu0  ;;  %v9292_v9 = vmul.f32 0.5, %v9213_v5  ;;  %4506 = vmatprep.mubr.bf16.mxu1 %v9272_v52  ;;  %v11016_v59 = vld [vmem:[#allocation34_spill] sm:$0xff]  ;;  %v9304_v22 = vmul.f32 %v3038_v38, %v9162_v37  ;;  %v9306_v27 = vmul.f32 0.5, %v6655_v3 }
 0x2a2   : > { %11015 = vst [vmem:[#allocation49_spill] sm:$0xff] %v9284_v1  ;;  %v9288_v11 = vpop.f32.mrb[34].mxu1  ;;  %7614 = verf.f32 %v2717_v41  ;;  %v6658_v34 = vadd.f32 %v11016_v59, %v8890_v25  ;;  %v9299_v30 = vpop.f32.mrb[35].mxu0  ;;  %v9308_v5 = vmul.f32 0.5, %v6600_v23  ;;  %v2720_v49 = vmul.f32 0.70710677, %v6601_v44  ;;  %4507 = vmatmul.mubr.bf16.gmra.mrb[64].mxu1 %v9284_v1 }
 0x2a3   : > { %11017 = vst [vmem:[#allocation34_spill] sm:$0xff] %v9299_v30  ;;  %v9301_v33 = vpop.f32.mrb[35].mxu1  ;;  %v7601_v8 = vpop.eup %7600  ;;  %v7408_v21 = vld [vmem:[%s8375_s11 + $0x240] ss:$12 sps:$4 sm:$0xff]   ;;  %v9313_v59 = vmul.f32 %v3040_v43, %v9176_v35  ;;  %v9315_v40 = vmul.f32 0.5, %v6656_v10  ;;  %4642 = vmatpush1.bf16.msra.mxu1 %v7405_v14  ;;  %v9318_v37 = vmul.f32 %v3039_v28, %v9178_v62  ;;  %v3041_v3 = vadd.f32 1.0, %v7599_v19 }
 0x2a4   : > { %11018 = vst [vmem:[#allocation50_spill] sm:$0xff] %v9301_v33  ;;  %v7603_v41 = vpop.eup %7602  ;;  %v2722_v56 = vmul.f32 0.70710677, %v6657_v46  ;;  %v2721_v52 = vmul.f32 0.70710677, %v6602_v50  ;;  %7616 = verf.f32 %v2720_v49  ;;  %v11020_v38 = vld [vmem:[#allocation17_spill] sm:$0xff]  ;;  %4643 = vmatprep.subr.bf16.mxu1 %v7410_v60  ;;  %v6603_v10 = vadd.f32 %v9128_v7, %v8880_v16 }
 0x2a5   : > { %11019 = vst [vmem:[#allocation51_spill] sm:$0xff] %v9313_v59  ;;  %v2723_v23 = vmul.f32 0.70710677, %v6658_v34  ;;  %2416 = vmatmul.mubr.bf16.gmra.mrb[84].mxu0 %v11020_v38  ;;  %v7413_v1 = vld [vmem:[%s8375_s11 + $0x25c] ss:$12 sps:$4 sm:$0xff]   ;;  %v7605_v33 = vpop.eup %7604  ;;  %v3044_v35 = vadd.f32 1.0, %v7601_v8  ;;  %v6659_v14 = vadd.f32 %v9136_v18, %v8884_v17  ;;  %v6604_v60 = vadd.f32 %v9138_v48, %v8888_v24 }
 0x2a6   : > { %7618 = verf.f32 %v2722_v56  ;;  %2425 = vmatprep.mubr.bf16.mxu0 %v10994_v51  ;;  %v7411_v62 = vld [vmem:[%s8375_s11 + $0x258] ss:$12 sps:$4 sm:$0xff]   ;;  %v7607_v43 = vpop.eup %7606  ;;  %v3046_v28 = vadd.f32 1.0, %v7603_v41  ;;  %v9328_v19 = vmul.f32 0.5, %v6601_v44  ;;  %v7418_v8 = vld [vmem:[%s8375_s11 + $0x274] ss:$12 sps:$4 sm:$0xff]   ;;  %v9339_v18 = vadd.f32 %v9145_v31, %v8890_v25 }
 0x2a7   : > { %7620 = verf.f32 %v2721_v52  ;;  %v9332_v49 = vpop.f32.mrb[36].mxu0  ;;  %v3045_v7 = vadd.f32 1.0, %v7605_v33  ;;  %v2726_v38 = vmul.f32 0.70710677, %v6603_v10  ;;  %4644 = vmatpush1.bf16.msra.mxu1 %v7408_v21  ;;  %v7609_v52 = vpop.eup %7608  ;;  %v9346_v48 = vmul.f32 %v3041_v3, %v9192_v0 }
 0x2a8   : > { %11021 = vst [vmem:[#allocation17_spill] sm:$0xff] %v9332_v49  ;;  %v9334_v56 = vpop.f32.mrb[36].mxu1  ;;  %7622 = verf.f32 %v2723_v23  ;;  %v9341_v59 = vpop.f32.mrb[37].mxu0  ;;  %v3047_v41 = vadd.f32 1.0, %v7607_v43  ;;  %v9348_v49 = vmul.f32 0.5, %v6657_v46  ;;  %4645 = vmatprep.subr.bf16.mxu1 %v7413_v1  ;;  %v9355_v30 = vmul.f32 %v3044_v35, %v9230_v55 }
 0x2a9   : > { %11022 = vst [vmem:[#allocation52_spill] sm:$0xff] %v9334_v56  ;;  %11023 = vst [vmem:[#allocation53_spill] sm:$0xff] %v9341_v59  ;;  %v9343_v44 = vpop.f32.mrb[37].mxu1  ;;  %v2728_v56 = vmul.f32 0.70710677, %v6659_v14  ;;  %v9350_v33 = vpop.f32.mrb[38].mxu0  ;;  %7624 = verf.f32 %v2726_v38  ;;  %v9366_v43 = vmul.f32 %v3046_v28, %v9237_v58  ;;  %v9376_v38 = vpack.c.bf16 %v9255_v61, %v9207_v12 }
 0x2aa   : > { %11024 = vst [vmem:[#allocation54_spill] sm:$0xff] %v9346_v48  ;;  %v9352_v23 = vpop.f32.mrb[38].mxu1  ;;  %v7611_v31 = vpop.eup %7610  ;;  %v9357_v59 = vmul.f32 0.5, %v6602_v50  ;;  %v9359_v21 = vmul.f32 0.5, %v6658_v34  ;;  %v9368_v48 = vmul.f32 0.5, %v6603_v10  ;;  %v9371_v50 = vmul.f32 %v3045_v7, %v9260_v42  ;;  %v11029_v28 = vld [vmem:[#allocation37_spill] sm:$0xff] }
 0x2ab   : > { %v9361_v0 = vpop.f32.mrb[39].mxu0  ;;  %v9363_v3 = vpop.f32.mrb[39].mxu1  ;;  %11026 = vst [vmem:[#allocation56_spill] sm:$0xff] %v9366_v43  ;;  %7626 = verf.f32 %v2728_v56  ;;  %v2727_v1 = vmul.f32 0.70710677, %v6604_v60  ;;  %v3050_v34 = vadd.f32 1.0, %v7609_v52  ;;  %4646 = vmatpush1.bf16.msra.mxu1 %v7411_v62  ;;  %v9379_v58 = vmul.f32 %v3047_v41, %v9262_v4  ;;  %4516 = vmatprep.mubr.bf16.mxu1 %v9376_v38 }
 0x2ac   : > { %11025 = vst [vmem:[#allocation55_spill] sm:$0xff] %v9363_v3  ;;  %v7613_v46 = vpop.eup %7612  ;;  %v2729_v35 = vmul.f32 0.70710677, %v9339_v18  ;;  %11027 = vst [vmem:[#allocation57_spill] sm:$0xff] %v9376_v38  ;;  %v9381_v10 = vmul.f32 0.5, %v6659_v14  ;;  %v6605_v56 = vadd.f32 %v11029_v28, %v8880_v16  ;;  %v6661_v42 = vadd.f32 %v9154_v6, %v8884_v17  ;;  %v11030_v7 = vld [vmem:[#allocation18_spill] sm:$0xff]  ;;  %4647 = vmatprep.subr.bf16.mxu1 %v7418_v8 }
 0x2ad   : > { %v7615_v55 = vpop.eup %7614  ;;  %11028 = vst [vmem:[#allocation58_spill] sm:$0xff] %v9379_v58  ;;  %2426 = vmatmul.mubr.bf16.gmra.mrb[88].mxu0 %v11030_v7  ;;  %v7416_v52 = vld [vmem:[%s8375_s11 + $0x270] ss:$12 sps:$4 sm:$0xff]   ;;  %v3052_v43 = vadd.f32 1.0, %v7611_v31  ;;  %v9389_v3 = vmul.f32 0.5, %v6604_v60  ;;  %v9394_v12 = vpack.c.bf16 %v9246_v47, %v9190_v54  ;;  %v11032_v61 = vld [vmem:[#allocation39_spill] sm:$0xff]  ;;  %7628 = verf.f32 %v2727_v1 }
 0x2ae   : > { %v6606_v4 = vadd.f32 %v11032_v61, %v8888_v24  ;;  %2435 = vmatprep.mubr.bf16.mxu0 %v10994_v51  ;;  %v7425_v14 = vld [vmem:[%s8375_s11 + $0x28c] ss:$12 sps:$4 sm:$0xff]   ;;  %v7617_v6 = vpop.eup %7616  ;;  %v3051_v62 = vadd.f32 1.0, %v7613_v46  ;;  %v3053_v41 = vadd.f32 1.0, %v7615_v55  ;;  %v2732_v8 = vmul.f32 0.70710677, %v6605_v56 }
 0x2af   : > { %11031 = vst [vmem:[#allocation37_spill] sm:$0xff] %v9394_v12  ;;  %v9400_v31 = vpop.f32.mrb[40].mxu0  ;;  %v9405_v54 = vmul.f32 %v3050_v34, %v9292_v9  ;;  %7630 = verf.f32 %v2729_v35  ;;  %v2734_v47 = vmul.f32 0.70710677, %v6661_v42  ;;  %4517 = vmatmul.mubr.bf16.gmra.mrb[68].mxu1 %v9394_v12  ;;  %v3056_v58 = vadd.f32 1.0, %v7617_v6 }
 0x2b0   : > { %v9402_v60 = vpop.f32.mrb[40].mxu1  ;;  %v7619_v28 = vpop.eup %7618  ;;  %v2733_v7 = vmul.f32 0.70710677, %v6606_v4  ;;  %7632 = verf.f32 %v2732_v8  ;;  %v6662_v46 = vadd.f32 %v9164_v57, %v8890_v25  ;;  %v6607_v1 = vadd.f32 %v9202_v32, %v8880_v16  ;;  %4648 = vmatpush1.bf16.msra.mxu1 %v7416_v52  ;;  %v7423_v9 = vld [vmem:[%s8375_s11 + $0x288] ss:$12 sps:$4 sm:$0xff]  }
 0x2b1   : > { %v7621_v61 = vpop.eup %7620  ;;  %v9412_v55 = vpop.f32.mrb[41].mxu0  ;;  %v9418_v35 = vmul.f32 %v3052_v43, %v9306_v27  ;;  %v9421_v6 = vmul.f32 0.5, %v9339_v18  ;;  %7634 = verf.f32 %v2734_v47  ;;  %v6663_v57 = vadd.f32 %v9204_v13, %v8884_v17  ;;  %4649 = vmatprep.subr.bf16.mxu1 %v7425_v14  ;;  %v7431_v12 = vld [vmem:[%s8375_s11 + $0x2a4] ss:$12 sps:$4 sm:$0xff]  }
 0x2b2   : > { %v9414_v38 = vpop.f32.mrb[41].mxu1  ;;  %v7623_v34 = vpop.eup %7622  ;;  %v9431_v52 = vmul.f32 %v3051_v62, %v9308_v5  ;;  %v3058_v27 = vadd.f32 1.0, %v7619_v28  ;;  %v9436_v18 = vmul.f32 0.5, %v6605_v56  ;;  %7636 = verf.f32 %v2733_v7  ;;  %v11038_v56 = vld [vmem:[#allocation19_spill] sm:$0xff]  ;;  %v7429_v28 = vld [vmem:[%s8375_s11 + $0x2a0] ss:$12 sps:$4 sm:$0xff]  }
 0x2b3   : > { %11033 = vst [vmem:[#allocation18_spill] sm:$0xff] %v9414_v38  ;;  %11034 = vst [vmem:[#allocation39_spill] sm:$0xff] %v9418_v35  ;;  %v9425_v8 = vpop.f32.mrb[42].mxu0  ;;  %v9427_v32 = vpop.f32.mrb[42].mxu1  ;;  %v9434_v38 = vmul.f32 %v3053_v41, %v9315_v40  ;;  %v3057_v35 = vadd.f32 1.0, %v7621_v61  ;;  %v9443_v5 = vmul.f32 %v3056_v58, %v9328_v19  ;;  %v3059_v40 = vadd.f32 1.0, %v7623_v34 }
 0x2b4   : > { %11035 = vst [vmem:[#allocation59_spill] sm:$0xff] %v9425_v8  ;;  %11036 = vst [vmem:[#allocation60_spill] sm:$0xff] %v9427_v32  ;;  %v9438_v43 = vpop.f32.mrb[43].mxu0  ;;  %v9440_v47 = vpop.f32.mrb[43].mxu1  ;;  %v2735_v32 = vmul.f32 0.70710677, %v6662_v46  ;;  %4650 = vmatpush1.bf16.msra.mxu1 %v7423_v9  ;;  %v6608_v7 = vadd.f32 %v9215_v29, %v8888_v24  ;;  %v6664_v61 = vadd.f32 %v9217_v45, %v8890_v25 }
 0x2b5   : > { %11037 = vst [vmem:[#allocation61_spill] sm:$0xff] %v9434_v38  ;;  %v7625_v13 = vpop.eup %7624  ;;  %v2738_v14 = vmul.f32 0.70710677, %v6607_v1  ;;  %v9445_v62 = vmul.f32 0.5, %v6661_v42  ;;  %v9447_v41 = vmul.f32 0.5, %v6606_v4  ;;  %2436 = vmatmul.mubr.bf16.gmra.mrb[92].mxu0 %v11038_v56  ;;  %4651 = vmatprep.subr.bf16.mxu1 %v7431_v12  ;;  %v9459_v42 = vpack.c.bf16 %v9371_v50, %v9318_v37 }
 0x2b6   : > { %v7627_v8 = vpop.eup %7626  ;;  %7638 = verf.f32 %v2735_v32  ;;  %v2740_v38 = vmul.f32 0.70710677, %v6663_v57  ;;  %2445 = vmatprep.mubr.bf16.mxu0 %v10994_v51  ;;  %v7437_v19 = vld [vmem:[%s8375_s11 + $0x2bc] ss:$12 sps:$4 sm:$0xff]   ;;  %v3062_v58 = vadd.f32 1.0, %v7625_v13  ;;  %v6609_v4 = vadd.f32 %v9221_v36, %v8880_v16 }
 0x2b7   : > { %7640 = verf.f32 %v2738_v14  ;;  %11039 = vst [vmem:[#allocation19_spill] sm:$0xff] %v9459_v42  ;;  %v9463_v9 = vpop.f32.mrb[44].mxu0  ;;  %v9468_v45 = vmul.f32 %v3058_v27, %v9348_v49  ;;  %v9471_v34 = vmul.f32 %v3057_v35, %v9357_v59  ;;  %v3064_v12 = vadd.f32 1.0, %v7627_v8  ;;  %v7435_v50 = vld [vmem:[%s8375_s11 + $0x2b8] ss:$12 sps:$4 sm:$0xff]   ;;  %v7629_v14 = vpop.eup %7628  ;;  %4526 = vmatprep.mubr.bf16.mxu1 %v9459_v42 }
 0x2b8   : > { %v9465_v29 = vpop.f32.mrb[44].mxu1  ;;  %v9473_v32 = vmul.f32 0.5, %v6662_v46  ;;  %v9475_v13 = vpop.f32.mrb[45].mxu0  ;;  %v9481_v36 = vmul.f32 %v3059_v40, %v9359_v21  ;;  %v9483_v56 = vmul.f32 0.5, %v6607_v1  ;;  %v2741_v49 = vmul.f32 0.70710677, %v6664_v61  ;;  %4652 = vmatpush1.bf16.msra.mxu1 %v7429_v28 }
 0x2b9   : > { %11040 = vst [vmem:[#allocation62_spill] sm:$0xff] %v9465_v29  ;;  %11041 = vst [vmem:[#allocation63_spill] sm:$0xff] %v9468_v45  ;;  %v9477_v37 = vpop.f32.mrb[45].mxu1  ;;  %v2739_v29 = vmul.f32 0.70710677, %v6608_v7  ;;  %v7631_v59 = vpop.eup %7630  ;;  %v9486_v46 = vmul.f32 0.5, %v6663_v57  ;;  %7642 = verf.f32 %v2740_v38  ;;  %v6665_v8 = vadd.f32 %v9223_v39, %v8884_v17  ;;  %4653 = vmatprep.subr.bf16.mxu1 %v7437_v19 }
 0x2ba   : > { %11042 = vst [vmem:[#allocation64_spill] sm:$0xff] %v9481_v36  ;;  %v2744_v35 = vmul.f32 0.70710677, %v6609_v4  ;;  %v9490_v27 = vpop.f32.mrb[46].mxu0  ;;  %v9492_v21 = vpop.f32.mrb[46].mxu1  ;;  %v9495_v40 = vmul.f32 %v3062_v58, %v9368_v48  ;;  %v9499_v28 = vpack.c.bf16 %v9355_v30, %v9304_v22  ;;  %v6610_v38 = vadd.f32 %v9225_v63, %v8888_v24  ;;  %v11047_v30 = vld [vmem:[#allocation20_spill] sm:$0xff] }
 0x2bb   : > { %v7633_v1 = vpop.eup %7632  ;;  %7644 = verf.f32 %v2739_v29  ;;  %v9503_v57 = vpop.f32.mrb[47].mxu0  ;;  %v7444_v45 = vld [vmem:[%s8375_s11 + $0x2d4] ss:$12 sps:$4 sm:$0xff]   ;;  %v9509_v19 = vmul.f32 %v3064_v12, %v9381_v10  ;;  %v3063_v42 = vadd.f32 1.0, %v7629_v14  ;;  %v2746_v48 = vmul.f32 0.70710677, %v6665_v8 }
 0x2bc   : > { %11043 = vst [vmem:[#allocation65_spill] sm:$0xff] %v9499_v28  ;;  %11044 = vst [vmem:[#allocation66_spill] sm:$0xff] %v9503_v57  ;;  %v9505_v39 = vpop.f32.mrb[47].mxu1  ;;  %v7635_v36 = vpop.eup %7634  ;;  %7646 = verf.f32 %v2741_v49  ;;  %v3065_v58 = vadd.f32 1.0, %v7631_v59  ;;  %v9511_v29 = vmul.f32 0.5, %v6608_v7  ;;  %4527 = vmatmul.mubr.bf16.gmra.mrb[72].mxu1 %v9499_v28  ;;  %v9515_v57 = vmul.f32 0.5, %v6664_v61 }
 0x2bd   : > { %11045 = vst [vmem:[#allocation67_spill] sm:$0xff] %v9505_v39  ;;  %11046 = vst [vmem:[#allocation68_spill] sm:$0xff] %v9509_v19  ;;  %7648 = verf.f32 %v2744_v35  ;;  %v2745_v63 = vmul.f32 0.70710677, %v6610_v38  ;;  %2446 = vmatmul.mubr.bf16.gmra.mrb[96].mxu0 %v11047_v30  ;;  %v7637_v22 = vpop.eup %7636  ;;  %v3068_v39 = vadd.f32 1.0, %v7633_v1  ;;  %v11048_v10 = vld [vmem:[#allocation45_spill] sm:$0xff]  ;;  %4654 = vmatpush1.bf16.msra.mxu1 %v7435_v50  ;;  %v6611_v49 = vadd.f32 %v9266_v53, %v8880_v16 }
 0x2be   : > { %7650 = verf.f32 %v2746_v48  ;;  %v6666_v12 = vadd.f32 %v11048_v10, %v8890_v25  ;;  %2455 = vmatprep.mubr.bf16.mxu0 %v10994_v51  ;;  %v7442_v7 = vld [vmem:[%s8375_s11 + $0x2d0] ss:$12 sps:$4 sm:$0xff]   ;;  %v3070_v14 = vadd.f32 1.0, %v7635_v36  ;;  %v6667_v59 = vadd.f32 %v9268_v15, %v8884_v17  ;;  %4655 = vmatprep.subr.bf16.mxu1 %v7444_v45  ;;  %v7447_v1 = vld [vmem:[%s8375_s11 + $0x2ec] ss:$12 sps:$4 sm:$0xff]  }
 0x2bf   : > { %7652 = verf.f32 %v2745_v63  ;;  %v9525_v35 = vpop.f32.mrb[48].mxu0  ;;  %v9531_v30 = vmul.f32 %v3063_v42, %v9389_v3  ;;  %v9533_v50 = vmul.f32 0.5, %v6609_v4  ;;  %v6612_v63 = vadd.f32 %v9274_v20, %v8888_v24 }
 0x2c0   : > { %v9527_v61 = vpop.f32.mrb[48].mxu1  ;;  %v7639_v48 = vpop.eup %7638  ;;  %v2747_v36 = vmul.f32 0.70710677, %v6666_v12  ;;  %v9542_v19 = vmul.f32 %v3065_v58, %v9421_v6  ;;  %v3069_v45 = vadd.f32 1.0, %v7637_v22  ;;  %v9544_v28 = vmul.f32 0.5, %v6665_v8 }
 0x2c1   : > { %11049 = vst [vmem:[#allocation20_spill] sm:$0xff] %v9527_v61  ;;  %v9537_v53 = vpop.f32.mrb[49].mxu0  ;;  %v9539_v10 = vpop.f32.mrb[49].mxu1  ;;  %v2750_v3 = vmul.f32 0.70710677, %v6611_v49  ;;  %v9549_v4 = vmul.f32 %v3068_v39, %v9436_v18  ;;  %v9551_v61 = vmul.f32 0.5, %v6610_v38  ;;  %4656 = vmatpush1.bf16.msra.mxu1 %v7442_v7  ;;  %v9558_v6 = vmul.f32 %v3070_v14, %v9445_v62 }
 0x2c2   : > { %11050 = vst [vmem:[#allocation45_spill] sm:$0xff] %v9537_v53  ;;  %11051 = vst [vmem:[#allocation69_spill] sm:$0xff] %v9539_v10  ;;  %v7641_v15 = vpop.eup %7640  ;;  %v9546_v42 = vpop.f32.mrb[50].mxu0  ;;  %7654 = verf.f32 %v2747_v36  ;;  %v2752_v20 = vmul.f32 0.70710677, %v6667_v59  ;;  %v3071_v8 = vadd.f32 1.0, %v7639_v48  ;;  %4657 = vmatprep.subr.bf16.mxu1 %v7447_v1  ;;  %v6668_v36 = vadd.f32 %v9276_v26, %v8890_v25 }
 0x2c3   : > { %11052 = vst [vmem:[#allocation70_spill] sm:$0xff] %v9542_v19  ;;  %v9553_v10 = vpop.f32.mrb[50].mxu1  ;;  %v9555_v53 = vpop.f32.mrb[51].mxu0  ;;  %11053 = vst [vmem:[#allocation71_spill] sm:$0xff] %v9558_v6  ;;  %7656 = verf.f32 %v2750_v3  ;;  %v2751_v58 = vmul.f32 0.70710677, %v6612_v63  ;;  %v9567_v19 = vpack.c.bf16 %v9471_v34, %v9431_v52  ;;  %v9571_v14 = vmul.f32 %v3069_v45, %v9447_v41 }
 0x2c4   : > { %v9560_v22 = vpop.f32.mrb[51].mxu1  ;;  %v7445_v18 = vld [vmem:[%s8375_s11 + $0x2e8] ss:$12 sps:$4 sm:$0xff]   ;;  %v7643_v38 = vpop.eup %7642  ;;  %v3074_v39 = vadd.f32 1.0, %v7641_v15  ;;  %7658 = verf.f32 %v2752_v20  ;;  %v7450_v7 = vld [vmem:[%s8375_s11 + $0x304] ss:$12 sps:$4 sm:$0xff]   ;;  %v6613_v1 = vadd.f32 %v9286_v2, %v8880_v16  ;;  %v6669_v15 = vadd.f32 %v9288_v11, %v8884_v17 }
 0x2c5   : > { %11054 = vst [vmem:[#allocation72_spill] sm:$0xff] %v9567_v19  ;;  %v7645_v62 = vpop.eup %7644  ;;  %v9573_v48 = vmul.f32 0.5, %v6666_v12  ;;  %v11055_v3 = vld [vmem:[#allocation21_spill] sm:$0xff]  ;;  %v9580_v20 = vmul.f32 0.5, %v6611_v49  ;;  %v9582_v52 = vmul.f32 0.5, %v6667_v59  ;;  %4536 = vmatprep.mubr.bf16.mxu1 %v9567_v19  ;;  %v9587_v41 = vpack.c.bf16 %v9443_v5, %v9405_v54  ;;  %4658 = vmatpush1.bf16.msra.mxu1 %v7445_v18  ;;  %v11060_v18 = vld [vmem:[#allocation34_spill] sm:$0xff] }
 0x2c6   : > { %2456 = vmatmul.mubr.bf16.gmra.mrb[100].mxu0 %v11055_v3  ;;  %v7647_v26 = vpop.eup %7646  ;;  %v2753_v34 = vmul.f32 0.70710677, %v6668_v36  ;;  %v3076_v12 = vadd.f32 1.0, %v7643_v38  ;;  %v9590_v45 = vmul.f32 0.5, %v6612_v63  ;;  %7660 = verf.f32 %v2751_v58  ;;  %4800 = vmatprep.subr.bf16.mxu1 %v7450_v7 }
 0x2c7   : > { %11056 = vst [vmem:[#allocation21_spill] sm:$0xff] %v9587_v41  ;;  %2465 = vmatprep.mubr.bf16.mxu0 %v10994_v51  ;;  %v7649_v2 = vpop.eup %7648  ;;  %v2756_v11 = vmul.f32 0.70710677, %v6613_v1  ;;  %v9592_v3 = vpop.f32.mrb[52].mxu0  ;;  %v9595_v59 = vmul.f32 %v3071_v8, %v9473_v32  ;;  %v9598_v6 = vmul.f32 %v3074_v39, %v9483_v56  ;;  %v2758_v54 = vmul.f32 0.70710677, %v6669_v15  ;;  %4537 = vmatmul.mubr.bf16.gmra.mrb[76].mxu1 %v9587_v41 }
 0x2c8   : > { %v7651_v49 = vpop.eup %7650  ;;  %7662 = verf.f32 %v2753_v34  ;;  %v9601_v5 = vpop.f32.mrb[52].mxu1  ;;  %v3075_v38 = vadd.f32 1.0, %v7645_v62  ;;  %v3077_v19 = vadd.f32 1.0, %v7647_v26  ;;  %v6614_v32 = vadd.f32 %v11060_v18, %v8888_v24  ;;  %v11067_v18 = vld [vmem:[#allocation17_spill] sm:$0xff] }
 0x2c9   : > { %11057 = vst [vmem:[#allocation73_spill] sm:$0xff] %v9595_v59  ;;  %11058 = vst [vmem:[#allocation74_spill] sm:$0xff] %v9601_v5  ;;  %v9603_v63 = vpop.f32.mrb[53].mxu0  ;;  %v7653_v58 = vpop.eup %7652  ;;  %7664 = verf.f32 %v2756_v11  ;;  %v3080_v39 = vadd.f32 1.0, %v7649_v2  ;;  %v3082_v34 = vadd.f32 1.0, %v7651_v49  ;;  %v11063_v59 = vld [vmem:[#allocation50_spill] sm:$0xff]  ;;  %v9618_v62 = vmul.f32 %v3076_v12, %v9486_v46 }
 0x2ca   : > { %11059 = vst [vmem:[#allocation75_spill] sm:$0xff] %v9603_v63  ;;  %v9607_v8 = vpop.f32.mrb[53].mxu1  ;;  %v9609_v56 = vpop.f32.mrb[54].mxu0  ;;  %7666 = verf.f32 %v2758_v54  ;;  %v6670_v41 = vadd.f32 %v11063_v59, %v8890_v25  ;;  %v9620_v26 = vmul.f32 0.5, %v6668_v36  ;;  %v2757_v11 = vmul.f32 0.70710677, %v6614_v32 }
 0x2cb   : > { %11061 = vst [vmem:[#allocation34_spill] sm:$0xff] %v9607_v8  ;;  %11062 = vst [vmem:[#allocation76_spill] sm:$0xff] %v9609_v56  ;;  %v9613_v5 = vpop.f32.mrb[54].mxu1  ;;  %v9615_v7 = vpop.f32.mrb[55].mxu0  ;;  %v6615_v8 = vadd.f32 %v11067_v18, %v8880_v16  ;;  %v3081_v49 = vadd.f32 1.0, %v7653_v58  ;;  %v9626_v54 = vmul.f32 0.5, %v6613_v1  ;;  %v9631_v46 = vmul.f32 %v3075_v38, %v9511_v29 }
 0x2cc   : > { %11064 = vst [vmem:[#allocation50_spill] sm:$0xff] %v9613_v5  ;;  %11065 = vst [vmem:[#allocation77_spill] sm:$0xff] %v9615_v7  ;;  %v9624_v56 = vpop.f32.mrb[55].mxu1  ;;  %v7655_v2 = vpop.eup %7654  ;;  %v2759_v59 = vmul.f32 0.70710677, %v6670_v41  ;;  %v11069_v5 = vld [vmem:[#allocation52_spill] sm:$0xff]  ;;  %7668 = verf.f32 %v2757_v11  ;;  %v9640_v1 = vmul.f32 %v3080_v39, %v9533_v50  ;;  %v9643_v58 = vmul.f32 %v3082_v34, %v9544_v28 }
 0x2cd   : > { %11066 = vst [vmem:[#allocation78_spill] sm:$0xff] %v9618_v62  ;;  %11068 = vst [vmem:[#allocation17_spill] sm:$0xff] %v9624_v56  ;;  %v6671_v63 = vadd.f32 %v11069_v5, %v8884_v17  ;;  %v7657_v7 = vpop.eup %7656  ;;  %v9633_v36 = vmul.f32 0.5, %v6669_v15  ;;  %v2762_v12 = vmul.f32 0.70710677, %v6615_v8  ;;  %v11070_v62 = vld [vmem:[#allocation22_spill] sm:$0xff]  ;;  %v9637_v56 = vmul.f32 %v3077_v19, %v9515_v57 }
 0x2ce   : > { %2466 = vmatmul.mubr.bf16.gmra.mrb[104].mxu0 %v11070_v62  ;;  %v7659_v18 = vpop.eup %7658  ;;  %v3083_v29 = vadd.f32 1.0, %v7655_v2  ;;  %v9646_v15 = vmul.f32 0.5, %v6614_v32  ;;  %7670 = verf.f32 %v2759_v59  ;;  %v11071_v38 = vld [vmem:[#allocation53_spill] sm:$0xff]  ;;  %v9651_v11 = vmul.f32 %v3081_v49, %v9551_v61 }
 0x2cf   : > { %v2764_v5 = vmul.f32 0.70710677, %v6671_v63  ;;  %2475 = vmatprep.mubr.bf16.mxu0 %v10994_v51  ;;  %v6616_v62 = vadd.f32 %v11071_v38, %v8888_v24  ;;  %v3086_v57 = vadd.f32 1.0, %v7657_v7  ;;  %7672 = verf.f32 %v2762_v12 }
 0x2d0   : > { %v6672_v19 = vadd.f32 %v9343_v44, %v8890_v25  ;;  %v7661_v28 = vpop.eup %7660  ;;  %v3088_v50 = vadd.f32 1.0, %v7659_v18  ;;  %v9657_v51 = vpack.c.bf16 %v9571_v14, %v9531_v30  ;;  %v9659_v34 = vmul.f32 0.5, %v6670_v41 }
 0x2d1   : > { %7674 = verf.f32 %v2764_v5  ;;  %v2763_v39 = vmul.f32 0.70710677, %v6616_v62  ;;  %v9661_v2 = vmul.f32 0.5, %v6615_v8  ;;  %v6617_v7 = vadd.f32 %v9350_v33, %v8880_v16 }
 0x2d2   : > { %v7663_v32 = vpop.eup %7662  ;;  %v2765_v61 = vmul.f32 0.70710677, %v6672_v19  ;;  %v9666_v44 = vmul.f32 %v3083_v29, %v9573_v48  ;;  %v9668_v59 = vmul.f32 0.5, %v6671_v63  ;;  %4546 = vmatprep.mubr.bf16.mxu1 %v9657_v51  ;;  %v6673_v30 = vadd.f32 %v9352_v23, %v8884_v17  ;;  %v11072_v23 = vld [vmem:[#allocation23_spill] sm:$0xff] }
 0x2d3   : > { %v7665_v49 = vpop.eup %7664  ;;  %v9675_v14 = vpack.c.bf16 %v9549_v4, %v9495_v40  ;;  %v9678_v8 = vmul.f32 %v3086_v57, %v9580_v20  ;;  %v3087_v33 = vadd.f32 1.0, %v7661_v28  ;;  %7676 = verf.f32 %v2763_v39  ;;  %v11073_v4 = vld [vmem:[#allocation55_spill] sm:$0xff] }
 0x2d4   : > { %v7667_v41 = vpop.eup %7666  ;;  %v2768_v12 = vmul.f32 0.70710677, %v6617_v7  ;;  %v9681_v48 = vmul.f32 %v3088_v50, %v9582_v52  ;;  %v3089_v63 = vadd.f32 1.0, %v7663_v32  ;;  %7678 = verf.f32 %v2765_v61  ;;  %v11074_v29 = vld [vmem:[#allocation31_spill] sm:$0xff] }
 0x2d5   : > { %v2770_v18 = vmul.f32 0.70710677, %v6673_v30  ;;  %4547 = vmatmul.mubr.bf16.gmra.mrb[80].mxu1 %v9675_v14  ;;  %v3092_v5 = vadd.f32 1.0, %v7665_v49  ;;  %v6618_v40 = vadd.f32 %v9361_v0, %v8888_v24  ;;  %v6674_v20 = vadd.f32 %v11073_v4, %v8890_v25 }
 0x2d6   : > { %2476 = vmatmul.mubr.bf16.gmra.mrb[108].mxu0 %v11072_v23  ;;  %7680 = verf.f32 %v2768_v12  ;;  %v7669_v38 = vpop.eup %7668  ;;  %v3094_v52 = vadd.f32 1.0, %v7667_v41  ;;  %v9690_v57 = vmul.f32 0.5, %v6616_v62  ;;  %v6619_v28 = vadd.f32 %v9400_v31, %v8880_v16 }
 0x2d7   : > { %5005 = vmatprep.mubr.bf16.mxu0 %v11074_v29  ;;  %v6675_v50 = vadd.f32 %v9402_v60, %v8884_v17  ;;  %v9697_v39 = vmul.f32 %v3087_v33, %v9590_v45  ;;  %v9699_v32 = vmul.f32 0.5, %v6672_v19  ;;  %7682 = verf.f32 %v2770_v18 }
 0x2d8   : > { %v2769_v0 = vmul.f32 0.70710677, %v6618_v40  ;;  %v7671_v61 = vpop.eup %7670  ;;  %v9702_v49 = vmul.f32 %v3089_v63, %v9620_v26  ;;  %v9704_v41 = vmul.f32 0.5, %v6617_v7  ;;  %v2771_v62 = vmul.f32 0.70710677, %v6674_v20 }
 0x2d9   : > { %v2774_v12 = vmul.f32 0.70710677, %v6619_v28  ;;  %v7673_v23 = vpop.eup %7672  ;;  %v9707_v31 = vmul.f32 %v3092_v5, %v9626_v54  ;;  %v3093_v60 = vadd.f32 1.0, %v7669_v38  ;;  %v9709_v4 = vmul.f32 0.5, %v6673_v30  ;;  %v11075_v54 = vld [vmem:[#allocation18_spill] sm:$0xff]  ;;  %v11077_v38 = vld [vmem:[#allocation25_spill] sm:$0xff] }
 0x2da   : > { %7684 = verf.f32 %v2769_v0  ;;  %v9712_v19 = vmul.f32 %v3094_v52, %v9633_v36  ;;  %v9714_v33 = vmul.f32 0.5, %v6618_v40  ;;  %v2776_v26 = vmul.f32 0.70710677, %v6675_v50  ;;  %v11076_v36 = vld [vmem:[#allocation59_spill] sm:$0xff] }
 0x2db   : > { %v7675_v45 = vpop.eup %7674  ;;  %7686 = verf.f32 %v2771_v62  ;;  %v3095_v7 = vadd.f32 1.0, %v7671_v61  ;;  %v6620_v63 = vadd.f32 %v9412_v55, %v8888_v24  ;;  %v6676_v18 = vadd.f32 %v11075_v54, %v8890_v25 }
 0x2dc   : > { %7688 = verf.f32 %v2774_v12  ;;  %v3098_v5 = vadd.f32 1.0, %v7673_v23  ;;  %v9720_v30 = vmul.f32 0.5, %v6674_v20  ;;  %v9724_v29 = vpack.c.bf16 %v9651_v11, %v9631_v46  ;;  %v11078_v12 = vld [vmem:[#allocation38_spill] sm:$0xff] }
 0x2dd   : > { %v6621_v40 = vadd.f32 %v11076_v36, %v8880_v16  ;;  %v7677_v52 = vpop.eup %7676  ;;  %v3261_v0 = vmul.f32 %v3093_v60, %v9646_v15  ;;  %v3100_v61 = vadd.f32 1.0, %v7675_v45  ;;  %v9730_v55 = vmul.f32 0.5, %v6619_v28  ;;  %v11079_v15 = vld [vmem:[#allocation60_spill] sm:$0xff] }
 0x2de   : > { %5006 = vmatmul.mubr.bf16.vlgmr.msra.gmra.mrb[112].mxu0 %v11077_v38  ;;  %v2775_v62 = vmul.f32 0.70710677, %v6620_v63  ;;  %v7679_v20 = vpop.eup %7678  ;;  %v9733_v23 = vmul.f32 0.5, %v6675_v50  ;;  %7690 = verf.f32 %v2776_v26  ;;  %v2777_v46 = vmul.f32 0.70710677, %v6676_v18  ;;  %4556 = vmatprep.mubr.bf16.mxu1 %v9724_v29 }
 0x2df   : > { %5013 = vmatprep.mubr.bf16.mxu0 %v11078_v12  ;;  %v2780_v11 = vmul.f32 0.70710677, %v6621_v40  ;;  %v9737_v36 = vmul.f32 %v3095_v7, %v9659_v34  ;;  %v6677_v28 = vadd.f32 %v11079_v15, %v8884_v17  ;;  %v9743_v60 = vpack.c.bf16 %v9640_v1, %v9598_v6  ;;  %v11082_v15 = vld [vmem:[#allocation41_spill] sm:$0xff] }
 0x2e0   : > { %v7681_v54 = vpop.eup %7680  ;;  %7692 = verf.f32 %v2775_v62  ;;  %v9746_v50 = vmul.f32 %v3098_v5, %v9661_v2  ;;  %v3099_v45 = vadd.f32 1.0, %v7677_v52  ;;  %v6622_v26 = vadd.f32 %v9438_v43, %v8888_v24 }
 0x2e1   : > { %11080 = vst [vmem:[#allocation52_spill] sm:$0xff] %v9743_v60  ;;  %7694 = verf.f32 %v2777_v46  ;;  %v7683_v38 = vpop.eup %7682  ;;  %v9751_v34 = vmul.f32 %v3100_v61, %v9668_v59  ;;  %v3101_v7 = vadd.f32 1.0, %v7679_v20  ;;  %v2782_v62 = vmul.f32 0.70710677, %v6677_v28  ;;  %4557 = vmatmul.mubr.bf16.gmra.mrb[84].mxu1 %v9743_v60  ;;  %v11081_v59 = vld [vmem:[#allocation62_spill] sm:$0xff] }
 0x2e2   : > { %7696 = verf.f32 %v2780_v11  ;;  %v3104_v12 = vadd.f32 1.0, %v7681_v54  ;;  %v9754_v6 = vmul.f32 0.5, %v6620_v63  ;;  %v2781_v1 = vmul.f32 0.70710677, %v6622_v26 }
 0x2e3   : > { %v6678_v2 = vadd.f32 %v9440_v47, %v8890_v25  ;;  %v9758_v52 = vmul.f32 0.5, %v6676_v18  ;;  %7698 = verf.f32 %v2782_v62  ;;  %v6623_v43 = vadd.f32 %v9463_v9, %v8880_v16 }
 0x2e4   : > { %v7685_v5 = vpop.eup %7684  ;;  %v6679_v61 = vadd.f32 %v11081_v59, %v8884_v17  ;;  %v9765_v46 = vmul.f32 %v3099_v45, %v9690_v57  ;;  %v3106_v63 = vadd.f32 1.0, %v7683_v38  ;;  %v9767_v11 = vmul.f32 0.5, %v6621_v40  ;;  %v11083_v59 = vld [vmem:[#allocation48_spill] sm:$0xff] }
 0x2e5   : > { %v7687_v20 = vpop.eup %7686  ;;  %v2783_v54 = vmul.f32 0.70710677, %v6678_v2  ;;  %v9771_v18 = vmul.f32 %v3101_v7, %v9699_v32  ;;  %v9773_v62 = vmul.f32 0.5, %v6677_v28  ;;  %7700 = verf.f32 %v2781_v1 }
 0x2e6   : > { %5014 = vmatmul.mubr.bf16.gmra.mrb[116].mxu0 %v11082_v15  ;;  %v7689_v47 = vpop.eup %7688  ;;  %v2786_v9 = vmul.f32 0.70710677, %v6623_v43  ;;  %v9777_v57 = vmul.f32 %v3104_v12, %v9704_v41  ;;  %v9779_v40 = vmul.f32 0.5, %v6622_v26  ;;  %v2788_v45 = vmul.f32 0.70710677, %v6679_v61 }
 0x2e7   : > { %5021 = vmatprep.mubr.bf16.mxu0 %v11083_v59  ;;  %7702 = verf.f32 %v2783_v54  ;;  %v3105_v38 = vadd.f32 1.0, %v7685_v5  ;;  %v3107_v15 = vadd.f32 1.0, %v7687_v20  ;;  %v6624_v32 = vadd.f32 %v9475_v13, %v8888_v24  ;;  %v7478_v26 = vld [vmem:[%s8375_s11 + $0x248] ss:$12 sps:$4 sm:$0xff]  }
 0x2e8   : > { %7704 = verf.f32 %v2786_v9  ;;  %v7691_v28 = vpop.eup %7690  ;;  %v9784_v7 = vmul.f32 %v3106_v63, %v9709_v4  ;;  %v3110_v1 = vadd.f32 1.0, %v7689_v47  ;;  %v6680_v59 = vadd.f32 %v9477_v37, %v8890_v25  ;;  %v7479_v12 = vld [vmem:[%s8375_s11 + $0x188] ss:$12 sps:$4 sm:$0xff]   ;;  %6379 = vmatprep.subr.bf16.mxu0 %v7478_v26 }
 0x2e9   : > { %v9789_v41 = vpack.c.bf16 %v3261_v0, %v9697_v39  ;;  %v9793_v20 = vmul.f32 0.5, %v6678_v2  ;;  %v9795_v54 = vmul.f32 0.5, %v6623_v43  ;;  %v2787_v13 = vmul.f32 0.70710677, %v6624_v32  ;;  %v7483_v0 = vld [vmem:[%s8375_s11 + $0x260] ss:$12 sps:$4 sm:$0xff]   ;;  %6380 = vmatpush3.bf16.msra.mxu0 %v7479_v12 }
 0x2ea   : > { %v7693_v5 = vpop.eup %7692  ;;  %v6625_v4 = vadd.f32 %v9490_v27, %v8880_v16  ;;  %v9799_v47 = vmul.f32 0.5, %v6679_v61  ;;  %7706 = verf.f32 %v2788_v45  ;;  %v2789_v37 = vmul.f32 0.70710677, %v6680_v59  ;;  %6381 = vmatprep.subr.bf16.mxu0 %v7483_v0 }
 0x2eb   : > { %11084 = vst [vmem:[#allocation22_spill] sm:$0xff] %v9789_v41  ;;  %v7695_v63 = vpop.eup %7694  ;;  %4566 = vmatprep.mubr.bf16.mxu1 %v9789_v41  ;;  %v6681_v39 = vadd.f32 %v9492_v21, %v8884_v17  ;;  %v3273_v43 = vmul.f32 %v3105_v38, %v9714_v33  ;;  %v9807_v9 = vmul.f32 %v3107_v15, %v9720_v30  ;;  %7708 = verf.f32 %v2787_v13  ;;  %v11085_v41 = vld [vmem:[#allocation49_spill] sm:$0xff] }
 0x2ec   : > { %v7697_v2 = vpop.eup %7696  ;;  %v2792_v27 = vmul.f32 0.70710677, %v6625_v4  ;;  %v9810_v61 = vmul.f32 %v3110_v1, %v9730_v55  ;;  %v3112_v45 = vadd.f32 1.0, %v7691_v28  ;;  %v3111_v60 = vadd.f32 1.0, %v7693_v5  ;;  %v11087_v38 = vld [vmem:[#allocation57_spill] sm:$0xff]  ;;  %v11088_v28 = vld [vmem:[#allocation66_spill] sm:$0xff] }
 0x2ed   : > { %7710 = verf.f32 %v2789_v37  ;;  %v7699_v21 = vpop.eup %7698  ;;  %v3113_v26 = vadd.f32 1.0, %v7695_v63  ;;  %v2794_v33 = vmul.f32 0.70710677, %v6681_v39  ;;  %v9815_v30 = vpack.c.bf16 %v9707_v31, %v9678_v8  ;;  %v11090_v31 = vld [vmem:[#allocation20_spill] sm:$0xff] }
 0x2ee   : > { %5022 = vmatmul.mubr.bf16.gmra.mrb[120].mxu0 %v11085_v41  ;;  %7712 = verf.f32 %v2792_v27  ;;  %v3116_v15 = vadd.f32 1.0, %v7697_v2  ;;  %v9818_v55 = vmul.f32 0.5, %v6624_v32  ;;  %v6626_v1 = vadd.f32 %v11088_v28, %v8888_v24  ;;  %v11089_v41 = vld [vmem:[#allocation67_spill] sm:$0xff]  ;;  %v7484_v32 = vld [vmem:[%s8375_s11 + $0x1a0] ss:$12 sps:$4 sm:$0xff]  }
 0x2ef   : > { %11086 = vst [vmem:[#allocation53_spill] sm:$0xff] %v9815_v30  ;;  %5029 = vmatprep.mubr.bf16.mxu0 %v11087_v38  ;;  %v6682_v12 = vadd.f32 %v11089_v41, %v8890_v25  ;;  %v7701_v5 = vpop.eup %7700  ;;  %v3118_v13 = vadd.f32 1.0, %v7699_v21  ;;  %7714 = verf.f32 %v2794_v33  ;;  %4567 = vmatmul.mubr.bf16.gmra.mrb[88].mxu1 %v9815_v30  ;;  %v6627_v8 = vadd.f32 %v9525_v35, %v8880_v16  ;;  %v7485_v33 = vld [vmem:[%s8375_s11 + $0x278] ss:$12 sps:$4 sm:$0xff]  }
 0x2f0   : > { %v6683_v63 = vadd.f32 %v11090_v31, %v8884_v17  ;;  %v9831_v0 = vmul.f32 %v3112_v45, %v9733_v23  ;;  %v9833_v2 = vmul.f32 0.5, %v6680_v59  ;;  %v9835_v27 = vmul.f32 0.5, %v6625_v4  ;;  %6382 = vmatpush3.bf16.msra.mxu0 %v7484_v32  ;;  %v7486_v30 = vld [vmem:[%s8375_s11 + $0x1b8] ss:$12 sps:$4 sm:$0xff]  }
 0x2f1   : > { %v7703_v37 = vpop.eup %7702  ;;  %v2793_v21 = vmul.f32 0.70710677, %v6626_v1  ;;  %v9839_v28 = vmul.f32 %v3111_v60, %v9754_v6  ;;  %v9842_v35 = vmul.f32 %v3113_v26, %v9758_v52  ;;  %v9844_v41 = vmul.f32 0.5, %v6681_v39  ;;  %6383 = vmatprep.subr.bf16.mxu0 %v7485_v33  ;;  %v11093_v32 = vld [vmem:[#allocation45_spill] sm:$0xff] }
 0x2f2   : > { %11091 = vst [vmem:[#allocation23_spill] sm:$0xff] %v9831_v0  ;;  %v7705_v38 = vpop.eup %7704  ;;  %v2795_v31 = vmul.f32 0.70710677, %v6682_v12  ;;  %v9848_v23 = vmul.f32 %v3116_v15, %v9767_v11  ;;  %v3117_v59 = vadd.f32 1.0, %v7701_v5  ;;  %v2798_v4 = vmul.f32 0.70710677, %v6627_v8 }
 0x2f3   : > { %11092 = vst [vmem:[#allocation55_spill] sm:$0xff] %v9842_v35  ;;  %7716 = verf.f32 %v2793_v21  ;;  %v9851_v45 = vmul.f32 %v3118_v13, %v9773_v62  ;;  %v3119_v60 = vadd.f32 1.0, %v7703_v37  ;;  %v9853_v6 = vmul.f32 0.5, %v6626_v1  ;;  %v11094_v11 = vld [vmem:[#allocation69_spill] sm:$0xff]  ;;  %v7490_v21 = vld [vmem:[%s8375_s11 + $0x290] ss:$12 sps:$4 sm:$0xff]  }
 0x2f4   : > { %v2800_v52 = vmul.f32 0.70710677, %v6683_v63  ;;  %v7707_v39 = vpop.eup %7706  ;;  %v3122_v26 = vadd.f32 1.0, %v7705_v38  ;;  %7718 = verf.f32 %v2795_v31  ;;  %v6628_v0 = vadd.f32 %v11093_v32, %v8888_v24  ;;  %v11095_v5 = vld [vmem:[#allocation37_spill] sm:$0xff]  ;;  %v11096_v13 = vld [vmem:[#allocation19_spill] sm:$0xff]  ;;  %6384 = vmatpush3.bf16.msra.mxu0 %v7486_v30 }
 0x2f5   : > { %v6684_v15 = vadd.f32 %v11094_v11, %v8890_v25  ;;  %v7709_v33 = vpop.eup %7708  ;;  %v9861_v35 = vmul.f32 0.5, %v6682_v12  ;;  %7720 = verf.f32 %v2798_v4  ;;  %v9864_v62 = vpack.c.bf16 %v3273_v43, %v9765_v46  ;;  %6385 = vmatprep.subr.bf16.mxu0 %v7490_v21  ;;  %v7492_v11 = vld [vmem:[%s8375_s11 + $0x2a8] ss:$12 sps:$4 sm:$0xff]  }
 0x2f6   : > { %5030 = vmatmul.mubr.bf16.gmra.mrb[124].mxu0 %v11095_v5  ;;  %v6629_v1 = vadd.f32 %v9546_v42, %v8880_v16  ;;  %v9870_v38 = vmul.f32 %v3117_v59, %v9779_v40  ;;  %v9872_v31 = vmul.f32 0.5, %v6627_v8  ;;  %v9874_v12 = vmul.f32 0.5, %v6683_v63  ;;  %v7491_v59 = vld [vmem:[%s8375_s11 + $0x1d0] ss:$12 sps:$4 sm:$0xff]  }
 0x2f7   : > { %5037 = vmatprep.mubr.bf16.mxu0 %v11096_v13  ;;  %v7711_v37 = vpop.eup %7710  ;;  %v2799_v4 = vmul.f32 0.70710677, %v6628_v0  ;;  %v3124_v43 = vadd.f32 1.0, %v7707_v39  ;;  %v3123_v32 = vadd.f32 1.0, %v7709_v33  ;;  %7722 = verf.f32 %v2800_v52  ;;  %4576 = vmatprep.mubr.bf16.mxu1 %v9864_v62 }
 0x2f8   : > { %v7713_v46 = vpop.eup %7712  ;;  %v2804_v42 = vmul.f32 0.70710677, %v6629_v1  ;;  %v9878_v30 = vmul.f32 %v3119_v60, %v9793_v20  ;;  %v9881_v40 = vmul.f32 %v3122_v26, %v9795_v54  ;;  %v2801_v8 = vmul.f32 0.70710677, %v6684_v15  ;;  %6386 = vmatpush3.bf16.msra.mxu0 %v7491_v59  ;;  %v11101_v59 = vld [vmem:[#allocation72_spill] sm:$0xff] }
 0x2f9   : > { %v6685_v63 = vadd.f32 %v9553_v10, %v8884_v17  ;;  %v7715_v5 = vpop.eup %7714  ;;  %v9887_v39 = vmul.f32 0.5, %v6628_v0  ;;  %7724 = verf.f32 %v2799_v4  ;;  %v9891_v52 = vpack.c.bf16 %v9777_v57, %v9746_v50  ;;  %v7496_v10 = vld [vmem:[%s8375_s11 + $0x1e8] ss:$12 sps:$4 sm:$0xff]   ;;  %6387 = vmatprep.subr.bf16.mxu0 %v7492_v11  ;;  %v7497_v57 = vld [vmem:[%s8375_s11 + $0x2c0] ss:$12 sps:$4 sm:$0xff]  }
 0x2fa   : > { %v6630_v20 = vadd.f32 %v9555_v53, %v8888_v24  ;;  %v3125_v54 = vadd.f32 1.0, %v7711_v37  ;;  %v3128_v60 = vadd.f32 1.0, %v7713_v46  ;;  %v9895_v26 = vmul.f32 0.5, %v6684_v15  ;;  %v11098_v37 = vld [vmem:[#allocation74_spill] sm:$0xff] }
 0x2fb   : > { %11097 = vst [vmem:[#allocation31_spill] sm:$0xff] %v9891_v52  ;;  %7726 = verf.f32 %v2804_v42  ;;  %v9899_v21 = vmul.f32 %v3124_v43, %v9799_v47  ;;  %v2806_v0 = vmul.f32 0.70710677, %v6685_v63  ;;  %4577 = vmatmul.mubr.bf16.gmra.mrb[92].mxu1 %v9891_v52  ;;  %v6686_v50 = vadd.f32 %v9560_v22, %v8890_v25  ;;  %v11099_v47 = vld [vmem:[#allocation65_spill] sm:$0xff]  ;;  %v11100_v42 = vld [vmem:[#allocation75_spill] sm:$0xff] }
 0x2fc   : > { %v2805_v33 = vmul.f32 0.70710677, %v6630_v20  ;;  %v3130_v13 = vadd.f32 1.0, %v7715_v5  ;;  %7728 = verf.f32 %v2801_v8  ;;  %v6631_v15 = vadd.f32 %v9592_v3, %v8880_v16  ;;  %6388 = vmatpush3.bf16.msra.mxu0 %v7496_v10 }
 0x2fd   : > { %v7717_v53 = vpop.eup %7716  ;;  %v6687_v4 = vadd.f32 %v11098_v37, %v8884_v17  ;;  %v2636_v46 = vmul.f32 0.5, %v6629_v1  ;;  %7730 = verf.f32 %v2806_v0  ;;  %v2807_v43 = vmul.f32 0.70710677, %v6686_v50  ;;  %6389 = vmatprep.subr.bf16.mxu0 %v7497_v57 }
 0x2fe   : > { %5038 = vmatmul.mubr.bf16.gmra.mrb[128].mxu0 %v11099_v47  ;;  %v9912_v22 = vadd.f32 %v11100_v42, %v8888_v24  ;;  %v7719_v11 = vpop.eup %7718  ;;  %v3291_v8 = vmul.f32 %v3123_v32, %v9818_v55  ;;  %v9917_v3 = vmul.f32 %v3125_v54, %v9833_v2  ;;  %7732 = verf.f32 %v2805_v33  ;;  %v7498_v42 = vld [vmem:[%s8375_s11 + $0x200] ss:$12 sps:$4 sm:$0xff]  }
 0x2ff   : > { %5045 = vmatprep.mubr.bf16.mxu0 %v11101_v59  ;;  %v2810_v5 = vmul.f32 0.70710677, %v6631_v15  ;;  %v7721_v37 = vpop.eup %7720  ;;  %v3296_v1 = vmul.f32 %v3128_v60, %v9835_v27  ;;  %v3129_v0 = vadd.f32 1.0, %v7717_v53  ;;  %v9920_v47 = vmul.f32 0.5, %v6685_v63  ;;  %v11102_v63 = vld [vmem:[#allocation34_spill] sm:$0xff] }
 0x300   : > { %7734 = verf.f32 %v2807_v43  ;;  %v9924_v59 = vmul.f32 %v3130_v13, %v9844_v41  ;;  %v9926_v55 = vmul.f32 0.5, %v6630_v20  ;;  %v2812_v2 = vmul.f32 0.70710677, %v6687_v4  ;;  %v11103_v20 = vld [vmem:[#allocation76_spill] sm:$0xff]  ;;  %6390 = vmatpush3.bf16.msra.mxu0 %v7498_v42  ;;  %v7503_v13 = vld [vmem:[%s8375_s11 + $0x218] ss:$12 sps:$4 sm:$0xff]  }
 0x301   : > { %7736 = verf.f32 %v2810_v5  ;;  %v7723_v32 = vpop.eup %7722  ;;  %v3131_v54 = vadd.f32 1.0, %v7719_v11  ;;  %v9928_v10 = vmul.f32 0.5, %v6686_v50  ;;  %v2811_v27 = vmul.f32 0.70710677, %v9912_v22  ;;  %v7502_v50 = vld [vmem:[%s8375_s11 + $0x2d8] ss:$12 sps:$4 sm:$0xff]  }
 0x302   : > { %v9933_v60 = vadd.f32 %v11102_v63, %v8890_v25  ;;  %v3134_v33 = vadd.f32 1.0, %v7721_v37  ;;  %v9935_v57 = vmul.f32 0.5, %v6631_v15  ;;  %v9939_v41 = vpack.c.bf16 %v9870_v38, %v9839_v28  ;;  %v11105_v42 = vld [vmem:[#allocation21_spill] sm:$0xff]  ;;  %6391 = vmatprep.subr.bf16.mxu0 %v7502_v50  ;;  %v7505_v50 = vld [vmem:[%s8375_s11 + $0x230] ss:$12 sps:$4 sm:$0xff]  }
 0x303   : > { %v6633_v53 = vadd.f32 %v11103_v20, %v8880_v16  ;;  %v7725_v43 = vpop.eup %7724  ;;  %v3297_v11 = vmul.f32 %v3129_v0, %v9853_v6  ;;  %v9946_v5 = vmul.f32 0.5, %v6687_v4  ;;  %7738 = verf.f32 %v2812_v2  ;;  %v11104_v16 = vld [vmem:[#allocation50_spill] sm:$0xff] }
 0x304   : > { %v2813_v15 = vmul.f32 0.70710677, %v9933_v60  ;;  %v3136_v63 = vadd.f32 1.0, %v7723_v32  ;;  %7740 = verf.f32 %v2811_v27  ;;  %4586 = vmatprep.mubr.bf16.mxu1 %v9939_v41  ;;  %v6689_v38 = vadd.f32 %v11104_v16, %v8884_v17  ;;  %v7504_v20 = vld [vmem:[%s8375_s11 + $0x2f0] ss:$12 sps:$4 sm:$0xff]   ;;  %6392 = vmatpush3.bf16.msra.mxu0 %v7503_v13  ;;  %v11108_v13 = vld [vmem:[#allocation27_spill] sm:$0xff] }
 0x305   : > { %v7727_v37 = vpop.eup %7726  ;;  %v2816_v28 = vmul.f32 0.70710677, %v6633_v53  ;;  %v9955_v52 = vmul.f32 %v3131_v54, %v9861_v35  ;;  %v9959_v4 = vpack.c.bf16 %v9848_v23, %v9810_v61  ;;  %v3302_v2 = vmul.f32 %v3134_v33, %v9872_v31  ;;  %v11106_v54 = vld [vmem:[#allocation77_spill] sm:$0xff]  ;;  %6393 = vmatprep.subr.bf16.mxu0 %v7504_v20 }
 0x306   : > { %5046 = vmatmul.mubr.bf16.gmra.mrb[132].mxu0 %v11105_v42  ;;  %v3140_v6 = vadd.f32 1.0, %v7727_v37  ;;  %7742 = verf.f32 %v2813_v15  ;;  %v7729_v0 = vpop.eup %7728  ;;  %v3135_v17 = vadd.f32 1.0, %v7725_v43  ;;  %v2818_v32 = vmul.f32 0.70710677, %v6689_v38  ;;  %v11107_v61 = vld [vmem:[#allocation17_spill] sm:$0xff]  ;;  %v11109_v43 = vld [vmem:[#allocation28_spill] sm:$0xff] }
 0x307   : > { %5053 = vmatprep.mubr.bf16.mxu0 %v9657_v51  ;;  %7744 = verf.f32 %v2816_v28  ;;  %v7731_v27 = vpop.eup %7730  ;;  %4587 = vmatmul.mubr.bf16.gmra.mrb[96].mxu1 %v9959_v4  ;;  %v9966_v15 = vadd.f32 %v11106_v54, %v8888_v24  ;;  %v9970_v23 = vadd.f32 %v11107_v61, %v8890_v25  ;;  %v9972_v51 = vpack.c.bf16 %v3297_v11, %v3291_v8  ;;  %v11112_v54 = vld [vmem:[#allocation29_spill] sm:$0xff]  ;;  %v11113_v61 = vld [vmem:[#allocation32_spill] sm:$0xff] }
 0x308   : > { %v3308_v35 = vmul.f32 %v3140_v6, %v2636_v46  ;;  %v7733_v31 = vpop.eup %7732  ;;  %v9976_v33 = vmul.f32 %v3136_v63, %v9874_v12  ;;  %7746 = verf.f32 %v2818_v32  ;;  %v9979_v46 = vpack.c.bf16 %v3296_v1, %v9881_v40  ;;  %6394 = vmatpush3.bf16.msra.mxu0 %v7505_v50  ;;  %v11110_v6 = vld [vmem:[#allocation30_spill] sm:$0xff] }
 0x309   : > { %v9983_v37 = vpack.c.bf16 %v11109_v43, %v11108_v13  ;;  %v3137_v28 = vadd.f32 1.0, %v7729_v0  ;;  %v3141_v25 = vadd.f32 1.0, %v7733_v31  ;;  %v2648_v16 = vmul.f32 0.5, %v6633_v53  ;;  %4596 = vmatprep.mubr.bf16.mxu1 %v9972_v51  ;;  %v11111_v0 = vld [vmem:[#allocation33_spill] sm:$0xff]  ;;  %v11116_v13 = vld [vmem:[#allocation35_spill] sm:$0xff]  ;;  %v11117_v43 = vld [vmem:[#allocation40_spill] sm:$0xff] }
 0x30a   : > { %v7735_v24 = vpop.eup %7734  ;;  %v2817_v8 = vmul.f32 0.70710677, %v9966_v15  ;;  %v3303_v12 = vmul.f32 %v3135_v17, %v9887_v39  ;;  %v3142_v63 = vadd.f32 1.0, %v7731_v27  ;;  %v2819_v40 = vmul.f32 0.70710677, %v9970_v23  ;;  %v11114_v39 = vld [vmem:[#allocation36_spill] sm:$0xff] }
 0x30b   : > { %v7737_v11 = vpop.eup %7736  ;;  %v9989_v1 = vpack.c.bf16 %v3308_v35, %v3302_v2  ;;  %v3309_v42 = vmul.f32 %v3141_v25, %v9926_v55  ;;  %v3143_v20 = vadd.f32 1.0, %v7735_v24  ;;  %v9994_v53 = vpack.c.bf16 %v11111_v0, %v11110_v6  ;;  %v11115_v17 = vld [vmem:[#allocation42_spill] sm:$0xff] }
 0x30c   : > { %7748 = verf.f32 %v2817_v8  ;;  %v3146_v32 = vadd.f32 1.0, %v7737_v11  ;;  %v9998_v31 = vpack.c.bf16 %v11113_v61, %v11112_v54  ;;  %v10002_v27 = vpack.c.bf16 %v11115_v17, %v11114_v39  ;;  %v11118_v11 = vld [vmem:[#allocation44_spill] sm:$0xff]  ;;  %v11121_v0 = vld [vmem:[#allocation46_spill] sm:$0xff] }
 0x30d   : > { %7750 = verf.f32 %v2819_v40  ;;  %v7739_v2 = vpop.eup %7738  ;;  %v3305_v55 = vmul.f32 %v3137_v28, %v9895_v26  ;;  %v2650_v35 = vmul.f32 0.5, %v6689_v38  ;;  %v10006_v50 = vpack.c.bf16 %v3309_v42, %v3303_v12  ;;  %v11119_v40 = vld [vmem:[#allocation47_spill] sm:$0xff]  ;;  %v11122_v26 = vld [vmem:[#allocation54_spill] sm:$0xff]  ;;  %v11125_v61 = vld [vmem:[#allocation56_spill] sm:$0xff] }
 0x30e   : > { %5054 = vmatmul.mubr.bf16.gmra.mrb[136].mxu0 %v9675_v14  ;;  %v10010_v24 = vpack.c.bf16 %v11117_v43, %v11116_v13  ;;  %v7741_v25 = vpop.eup %7740  ;;  %v3310_v8 = vmul.f32 %v3142_v63, %v9920_v47  ;;  %v10016_v6 = vpack.c.bf16 %v11119_v40, %v11118_v11  ;;  %v11120_v14 = vld [vmem:[#allocation43_spill] sm:$0xff]  ;;  %v11123_v38 = vld [vmem:[#allocation58_spill] sm:$0xff]  ;;  %v3311_v42 = vmul.f32 %v3143_v20, %v9928_v10  ;;  %v11126_v63 = vld [vmem:[#allocation61_spill] sm:$0xff] }
 0x30f   : > { %5061 = vmatprep.mubr.bf16.mxu0 %v9724_v29  ;;  %v10020_v54 = vpack.c.bf16 %v11121_v0, %v11120_v14  ;;  %v10024_v28 = vpack.c.bf16 %v11123_v38, %v11122_v26  ;;  %4597 = vmatmul.mubr.bf16.gmra.mrb[100].mxu1 %v9979_v46  ;;  %v11124_v29 = vld [vmem:[#allocation51_spill] sm:$0xff]  ;;  %v11127_v39 = vld [vmem:[#allocation64_spill] sm:$0xff]  ;;  %v3314_v14 = vmul.f32 %v3146_v32, %v9935_v57  ;;  %v3148_v0 = vadd.f32 1.0, %v7739_v2  ;;  %v11130_v10 = vld [vmem:[#allocation70_spill] sm:$0xff] }
 0x310   : > { %v7743_v12 = vpop.eup %7742  ;;  %v10030_v47 = vpack.c.bf16 %v11125_v61, %v11124_v29  ;;  %v10034_v17 = vpack.c.bf16 %v11127_v39, %v11126_v63  ;;  %v11128_v13 = vld [vmem:[#allocation39_spill] sm:$0xff]  ;;  %4606 = vmatprep.mubr.bf16.mxu1 %v10006_v50  ;;  %v11131_v20 = vld [vmem:[#allocation73_spill] sm:$0xff]  ;;  %v11132_v38 = vld [vmem:[#allocation68_spill] sm:$0xff]  ;;  %v10052_v39 = vpack.c.bf16 %v9666_v44, %v9637_v56  ;;  %v10060_v57 = vpack.c.bf16 %v9737_v36, %v9702_v49 }
 0x311   : > { %v11129_v43 = vld [vmem:[#allocation63_spill] sm:$0xff]  ;;  %v7745_v40 = vpop.eup %7744  ;;  %v10044_v26 = vpack.c.bf16 %v11131_v20, %v11130_v10  ;;  %v3147_v2 = vadd.f32 1.0, %v7741_v25  ;;  %v10064_v10 = vpack.c.bf16 %v9712_v19, %v9681_v48  ;;  %v10072_v56 = vpack.c.bf16 %v9784_v7, %v9751_v34 }
 0x312   : > { %v10038_v11 = vpack.c.bf16 %v11129_v43, %v11128_v13  ;;  %v11133_v29 = vld [vmem:[#allocation71_spill] sm:$0xff]  ;;  %v3152_v63 = vadd.f32 1.0, %v7745_v40  ;;  %v11134_v13 = vld [vmem:[#allocation78_spill] sm:$0xff]  ;;  %v7747_v32 = vpop.eup %7746  ;;  %v10068_v40 = vpack.c.bf16 %v9807_v9, %v9771_v18  ;;  %v3316_v48 = vmul.f32 %v3148_v0, %v9946_v5 }
 0x313   : > { %v10048_v61 = vpack.c.bf16 %v11133_v29, %v11132_v38  ;;  %v10056_v43 = vpack.c.bf16 %v9643_v58, %v11134_v13  ;;  %v3154_v44 = vadd.f32 1.0, %v7747_v32  ;;  %v11135_v20 = vld [vmem:[#allocation55_spill] sm:$0xff]  ;;  %v3149_v19 = vadd.f32 1.0, %v7743_v12  ;;  %v11137_v38 = vld [vmem:[#allocation52_spill] sm:$0xff]  ;;  %v11141_v13 = vld [vmem:[#allocation26_spill] sm:$0xff] }
 0x314   : > { %v3320_v58 = vmul.f32 %v3152_v63, %v2648_v16  ;;  %v10076_v49 = vpack.c.bf16 %v9878_v30, %v11135_v20  ;;  %v11136_v36 = vld [vmem:[#allocation23_spill] sm:$0xff]  ;;  %v10086_v18 = vpack.c.bf16 %v9955_v52, %v9917_v3  ;;  %v10090_v34 = vpack.c.bf16 %v9924_v59, %v9899_v21  ;;  %v11138_v16 = vld [vmem:[#allocation22_spill] sm:$0xff]  ;;  %v7453_v63 = vld [vmem:[%s8375_s11 + $0x31c] ss:$12 sps:$4 sm:$0xff]  }
 0x315   : > { %v10080_v25 = vpack.c.bf16 %v9851_v45, %v11136_v36  ;;  %v3322_v9 = vmul.f32 %v3154_v44, %v2650_v35  ;;  %v10095_v45 = vpack.c.bf16 %v3311_v42, %v3305_v55  ;;  %v10098_v5 = vpack.c.bf16 %v3310_v8, %v9976_v33  ;;  %v11140_v29 = vld [vmem:[#allocation31_spill] sm:$0xff]  ;;  %v7462_v44 = vld [vmem:[%s8375_s11 + $0x364] ss:$12 sps:$4 sm:$0xff]   ;;  %v7460_v20 = vld [vmem:[%s8375_s11 + $0x360] ss:$12 sps:$4 sm:$0xff]  }
 0x316   : > { %5062 = vmatmul.mubr.bf16.gmra.mrb[140].mxu0 %v11137_v38  ;;  %v7749_v7 = vpop.eup %7748  ;;  %v10092_v30 = vpack.c.bf16 %v3320_v58, %v3314_v14  ;;  %v2643_v0 = vmul.f32 0.5, %v9912_v22  ;;  %v2649_v52 = vmul.f32 0.5, %v9966_v15  ;;  %v2645_v21 = vmul.f32 0.5, %v9933_v60  ;;  %v11139_v60 = vld [vmem:[#allocation53_spill] sm:$0xff]  ;;  %v7459_v58 = vld [vmem:[%s8375_s11 + $0x34c] ss:$12 sps:$4 sm:$0xff]  }
 0x317   : > { %5069 = vmatprep.mubr.bf16.mxu0 %v11138_v16  ;;  %v7751_v12 = vpop.eup %7750  ;;  %v3153_v3 = vadd.f32 1.0, %v7749_v7  ;;  %v2651_v59 = vmul.f32 0.5, %v9970_v23  ;;  %4607 = vmatmul.mubr.bf16.gmra.mrb[104].mxu1 %v9989_v1  ;;  %v10105_v55 = vpack.c.bf16 %v3322_v9, %v3316_v48  ;;  %v7448_v23 = vld [vmem:[%s8375_s11 + $0x300] ss:$12 sps:$4 sm:$0xff]   ;;  %v7451_v32 = vld [vmem:[%s8375_s11 + $0x318] ss:$12 sps:$4 sm:$0xff]  }
 0x318   : > { %v3155_v35 = vadd.f32 1.0, %v7751_v12  ;;  %v3315_v42 = vmul.f32 %v3147_v2, %v2643_v0  ;;  %v3317_v8 = vmul.f32 %v3149_v19, %v2645_v21  ;;  %v7454_v2 = vld [vmem:[%s8375_s11 + $0x330] ss:$12 sps:$4 sm:$0xff]   ;;  %v7463_v48 = vld [vmem:[%s8375_s11 + $0x378] ss:$12 sps:$4 sm:$0xff]  }
 0x319   : > { %v3321_v33 = vmul.f32 %v3153_v3, %v2649_v52  ;;  %v7468_v38 = vld [vmem:[%s8375_s11 + $0x394] ss:$12 sps:$4 sm:$0xff]   ;;  %v7471_v16 = vld [vmem:[%s8375_s11 + $0x3ac] ss:$12 sps:$4 sm:$0xff]  }
 0x31a   : > { %v3323_v14 = vmul.f32 %v3155_v35, %v2651_v59  ;;  %v7469_v3 = vld [vmem:[%s8375_s11 + $0x3a8] ss:$12 sps:$4 sm:$0xff]   ;;  %v7474_v59 = vld [vmem:[%s8375_s11 + $0x3c4] ss:$12 sps:$4 sm:$0xff]  }
 0x31b   : > { %v3489_v22 = vpack.c.bf16 %v3321_v33, %v3315_v42 }
 0x31c   : > { %v10107_v15 = vpack.c.bf16 %v3323_v14, %v3317_v8 }
 0x31d   : > { %4616 = vmatprep.mubr.bf16.mxu1 %v3489_v22 }
 0x31e   : > { %5070 = vmatmul.mubr.bf16.gmra.mrb[144].mxu0 %v11139_v60  ;;  %v7472_v60 = vld [vmem:[%s8375_s11 + $0x3c0] ss:$12 sps:$4 sm:$0xff]  }
 0x31f   : > { %5077 = vmatprep.mubr.bf16.mxu0 %v9864_v62  ;;  %4617 = vmatmul.mubr.bf16.gmra.mrb[108].mxu1 %v10092_v30  ;;  %v7456_v62 = vld [vmem:[%s8375_s11 + $0x334] ss:$12 sps:$4 sm:$0xff]  }
 0x320   : > { %4659 = vmatprep.mubr.bf16.mxu1 %v9983_v37 }
 0x326   : > { %5078 = vmatmul.mubr.bf16.gmra.mrb[148].mxu0 %v11140_v29  ;;  %v7477_v29 = vld [vmem:[%s8375_s11 + $0x3dc] ss:$12 sps:$4 sm:$0xff]  }
 0x327   : > { %5085 = vmatprep.mubr.bf16.mxu0 %v9939_v41  ;;  %4660 = vmatmul.mubr.bf16.vlgmr.msra.gmra.mrb[56].mxu1 %v11141_v13  ;;  %v7457_v41 = vld [vmem:[%s8375_s11 + $0x348] ss:$12 sps:$4 sm:$0xff]  }
 0x328   : > { %4669 = vmatprep.mubr.bf16.mxu1 %v9994_v53  ;;  %4801 = vmatpush1.bf16.msra.mxu1 %v7448_v23 }
 0x329   : > { %4802 = vmatprep.subr.bf16.mxu1 %v7453_v63 }
 0x32c   : > { %4803 = vmatpush1.bf16.msra.mxu1 %v7451_v32 }
 0x32d   : > { %4804 = vmatprep.subr.bf16.mxu1 %v7456_v62 }
 0x32e   : > { %5086 = vmatmul.mubr.bf16.gmra.mrb[152].mxu0 %v9959_v4  ;;  %v7465_v4 = vld [vmem:[%s8375_s11 + $0x37c] ss:$12 sps:$4 sm:$0xff]  }
 0x32f   : > { %5093 = vmatprep.mubr.bf16.mxu0 %v9972_v51  ;;  %4670 = vmatmul.mubr.bf16.gmra.mrb[60].mxu1 %v9998_v31  ;;  %v11142_v51 = vld [vmem:[#allocation24_spill] sm:$0xff] }
 0x330   : > { %4679 = vmatprep.mubr.bf16.mxu1 %v10002_v27  ;;  %4805 = vmatpush1.bf16.msra.mxu1 %v7454_v2  ;;  %v716_v36 = vsub.s32 4, %v11142_v51  ;;  %v720_v19 = vsub.s32 5, %v11142_v51  ;;  %v7475_v2 = vld [vmem:[%s8375_s11 + $0x3d8] ss:$12 sps:$4 sm:$0xff]  }
 0x331   : > { %4806 = vmatprep.subr.bf16.mxu1 %v7459_v58 }
 0x334   : > { %4807 = vmatpush1.bf16.msra.mxu1 %v7457_v41 }
 0x335   : > { %4808 = vmatprep.subr.bf16.mxu1 %v7462_v44 }
 0x336   : > { %5094 = vmatmul.mubr.bf16.gmra.mrb[156].mxu0 %v9979_v46  ;;  %v7864_v46 = vld [vmem:[%s289_s8] sm:$0x3f] }
 0x337   : > { %5101 = vmatprep.mubr.bf16.mxu0 %v10006_v50  ;;  %4680 = vmatmul.mubr.bf16.gmra.mrb[64].mxu1 %v10010_v24  ;;  %v10141_v7 = vrot.slane %v7864_v46, %v716_v36  ;;  %v7466_v50 = vld [vmem:[%s8375_s11 + $0x390] ss:$12 sps:$4 sm:$0xff]   ;;  %v10145_v9 = vrot.slane %v7864_v46, %v720_v19  ;;  %v7489_v46 = vld [vmem:[%s8375_s11 + $0x40c] ss:$12 sps:$4 sm:$0xff]  }
 0x338   : > { %4689 = vmatprep.mubr.bf16.mxu1 %v10016_v6  ;;  %4809 = vmatpush1.bf16.msra.mxu1 %v7460_v20 }
 0x339   : > { %4810 = vmatprep.subr.bf16.mxu1 %v7465_v4 }
 0x33c   : > { %4811 = vmatpush1.bf16.msra.mxu1 %v7463_v48  ;;  %v7480_v48 = vld [vmem:[%s8375_s11 + $0x3f0] ss:$12 sps:$4 sm:$0xff]  }
 0x33d   : > { %4812 = vmatprep.subr.bf16.mxu1 %v7468_v38 }
 0x33e   : > { %5102 = vmatmul.mubr.bf16.gmra.mrb[160].mxu0 %v9989_v1 }
 0x33f   : > { %5109 = vmatprep.mubr.bf16.mxu0 %v3489_v22  ;;  %v2347_v12 = vpop.f32.mrb[56].mxu0  ;;  %4690 = vmatmul.mubr.bf16.gmra.mrb[68].mxu1 %v10020_v54 }
 0x340   : > { %v10150_v0 = vadd.f32 %v2347_v12, %v10141_v7  ;;  %v2349_v52 = vpop.f32.mrb[57].mxu0  ;;  %4699 = vmatprep.mubr.bf16.mxu1 %v10024_v28  ;;  %4813 = vmatpush1.bf16.msra.mxu1 %v7466_v50 }
 0x341   : > { %v10155_v21 = vadd.f32 %v2349_v52, %v10145_v9  ;;  %v2351_v1 = vpop.f32.mrb[58].mxu0  ;;  %4814 = vmatprep.subr.bf16.mxu1 %v7471_v16 }
 0x342   : > { %v2658_v35 = vmul.f32 0.70710677, %v10150_v0  ;;  %v6693_v42 = vadd.f32 %v2351_v1, %v10141_v7  ;;  %v2353_v33 = vpop.f32.mrb[59].mxu0 }
 0x343   : > { %v2659_v8 = vmul.f32 0.70710677, %v10155_v21  ;;  %v6694_v14 = vadd.f32 %v2353_v33, %v10145_v9  ;;  %v7495_v33 = vld [vmem:[%s8375_s11 + $0x424] ss:$12 sps:$4 sm:$0xff]  }
 0x344   : > { %7752 = verf.f32 %v2658_v35  ;;  %v2664_v22 = vmul.f32 0.70710677, %v6693_v42  ;;  %4815 = vmatpush1.bf16.msra.mxu1 %v7469_v3  ;;  %v7487_v3 = vld [vmem:[%s8375_s11 + $0x408] ss:$12 sps:$4 sm:$0xff]  }
 0x345   : > { %7754 = verf.f32 %v2659_v8  ;;  %v2665_v23 = vmul.f32 0.70710677, %v6694_v14  ;;  %4816 = vmatprep.subr.bf16.mxu1 %v7474_v59  ;;  %v2496_v8 = vmul.f32 0.5, %v6693_v42 }
 0x346   : > { %5110 = vmatmul.mubr.bf16.gmra.mrb[164].mxu0 %v10092_v30  ;;  %7756 = verf.f32 %v2664_v22 }
 0x347   : > { %5150 = vmatprep.mubr.bf16.mxu0 %v9983_v37  ;;  %7758 = verf.f32 %v2665_v23  ;;  %v2357_v63 = vpop.f32.mrb[60].mxu0  ;;  %4700 = vmatmul.mubr.bf16.gmra.mrb[72].mxu1 %v10030_v47  ;;  %v7482_v37 = vld [vmem:[%s8375_s11 + $0x3f4] ss:$12 sps:$4 sm:$0xff]  }
 0x348   : > { %v10168_v32 = vadd.f32 %v2357_v63, %v10141_v7  ;;  %v2359_v62 = vpop.f32.mrb[61].mxu0  ;;  %4709 = vmatprep.mubr.bf16.mxu1 %v10034_v17  ;;  %4817 = vmatpush1.bf16.msra.mxu1 %v7472_v60  ;;  %v2497_v63 = vmul.f32 0.5, %v6694_v14 }
 0x349   : > { %v10173_v30 = vadd.f32 %v2359_v62, %v10145_v9  ;;  %v2361_v58 = vpop.f32.mrb[62].mxu0  ;;  %4818 = vmatprep.subr.bf16.mxu1 %v7477_v29  ;;  %v2491_v29 = vmul.f32 0.5, %v10155_v21  ;;  %v7493_v21 = vld [vmem:[%s8375_s11 + $0x420] ss:$12 sps:$4 sm:$0xff]  }
 0x34a   : > { %v2670_v41 = vmul.f32 0.70710677, %v10168_v32  ;;  %v10178_v44 = vadd.f32 %v2361_v58, %v10141_v7  ;;  %v2363_v20 = vpop.f32.mrb[63].mxu0 }
 0x34b   : > { %v2671_v4 = vmul.f32 0.70710677, %v10173_v30  ;;  %v10182_v51 = vadd.f32 %v2363_v20, %v10145_v9 }
 0x34c   : > { %7760 = verf.f32 %v2670_v41  ;;  %v2676_v36 = vmul.f32 0.70710677, %v10178_v44  ;;  %4819 = vmatpush1.bf16.msra.mxu1 %v7475_v2 }
 0x34d   : > { %7762 = verf.f32 %v2671_v4  ;;  %v2677_v19 = vmul.f32 0.70710677, %v10182_v51  ;;  %4820 = vmatprep.subr.bf16.mxu1 %v7482_v37 }
 0x34e   : > { %5151 = vmatmul.mubr.bf16.vlgmr.msra.gmra.mrb[168].mxu0 %v11141_v13  ;;  %v7753_v38 = vpop.eup %7752  ;;  %7764 = verf.f32 %v2676_v36 }
 0x34f   : > { %5158 = vmatprep.mubr.bf16.mxu0 %v9994_v53  ;;  %v7755_v50 = vpop.eup %7754  ;;  %v2994_v16 = vadd.f32 1.0, %v7753_v38  ;;  %7766 = verf.f32 %v2677_v19  ;;  %v2367_v12 = vpop.f32.mrb[64].mxu0  ;;  %4710 = vmatmul.mubr.bf16.gmra.mrb[76].mxu1 %v10038_v11  ;;  %v2490_v53 = vmul.f32 0.5, %v10150_v0  ;;  %v7501_v38 = vld [vmem:[%s8375_s11 + $0x43c] ss:$12 sps:$4 sm:$0xff]  }
 0x350   : > { %v7757_v52 = vpop.eup %7756  ;;  %v2995_v1 = vadd.f32 1.0, %v7755_v50  ;;  %v10193_v59 = vadd.f32 %v2367_v12, %v10141_v7  ;;  %v2369_v13 = vpop.f32.mrb[65].mxu0  ;;  %4719 = vmatprep.mubr.bf16.mxu1 %v10044_v26  ;;  %4821 = vmatpush1.bf16.msra.mxu1 %v7480_v48 }
 0x351   : > { %v7759_v35 = vpop.eup %7758  ;;  %v3000_v22 = vadd.f32 1.0, %v7757_v52  ;;  %v10199_v60 = vadd.f32 %v2369_v13, %v10145_v9  ;;  %v2371_v23 = vpop.f32.mrb[66].mxu0  ;;  %4822 = vmatprep.subr.bf16.mxu1 %v7489_v46  ;;  %v3162_v37 = vmul.f32 %v2994_v16, %v2490_v53  ;;  %v2508_v53 = vmul.f32 0.5, %v10178_v44 }
 0x352   : > { %v3001_v62 = vadd.f32 1.0, %v7759_v35  ;;  %v2682_v2 = vmul.f32 0.70710677, %v10193_v59  ;;  %v2373_v58 = vpop.f32.mrb[67].mxu0  ;;  %v10205_v42 = vadd.f32 %v2371_v23, %v10141_v7  ;;  %v3163_v20 = vmul.f32 %v2995_v1, %v2491_v29  ;;  %v7499_v1 = vld [vmem:[%s8375_s11 + $0x438] ss:$12 sps:$4 sm:$0xff]  }
 0x353   : > { %v3168_v41 = vmul.f32 %v3000_v22, %v2496_v8  ;;  %v2683_v0 = vmul.f32 0.70710677, %v10199_v60  ;;  %v10208_v36 = vadd.f32 %v2373_v58, %v10145_v9  ;;  %v7508_v22 = vld [vmem:[%s8375_s11 + $0x454] ss:$12 sps:$4 sm:$0xff]  }
 0x354   : > { %v3169_v4 = vmul.f32 %v3001_v62, %v2497_v63  ;;  %7768 = verf.f32 %v2682_v2  ;;  %4823 = vmatpush1.bf16.msra.mxu1 %v7487_v3  ;;  %v2688_v48 = vmul.f32 0.70710677, %v10205_v42  ;;  %v2503_v63 = vmul.f32 0.5, %v10173_v30  ;;  %v7506_v30 = vld [vmem:[%s8375_s11 + $0x450] ss:$12 sps:$4 sm:$0xff]  }
 0x355   : > { %v10211_v14 = vpack.c.bf16 %v3168_v41, %v3162_v37  ;;  %7770 = verf.f32 %v2683_v0  ;;  %4824 = vmatprep.subr.bf16.mxu1 %v7495_v33  ;;  %v2689_v46 = vmul.f32 0.70710677, %v10208_v36  ;;  %v2509_v62 = vmul.f32 0.5, %v10182_v51 }
 0x356   : > { %5159 = vmatmul.mubr.bf16.gmra.mrb[172].mxu0 %v9998_v31  ;;  %v7761_v19 = vpop.eup %7760  ;;  %v10218_v50 = vpack.c.bf16 %v3169_v4, %v3163_v20  ;;  %7772 = verf.f32 %v2688_v48 }
 0x357   : > { %5166 = vmatprep.mubr.bf16.mxu0 %v10002_v27  ;;  %v7763_v16 = vpop.eup %7762  ;;  %v3006_v12 = vadd.f32 1.0, %v7761_v19  ;;  %v2377_v52 = vpop.f32.mrb[68].mxu0  ;;  %4720 = vmatmul.mubr.bf16.gmra.mrb[80].mxu1 %v10048_v61  ;;  %7774 = verf.f32 %v2689_v46  ;;  %v2502_v27 = vmul.f32 0.5, %v10168_v32 }
 0x358   : > { %v7765_v3 = vpop.eup %7764  ;;  %v3007_v13 = vadd.f32 1.0, %v7763_v16  ;;  %v10223_v31 = vadd.f32 %v2377_v52, %v10141_v7  ;;  %v2379_v35 = vpop.f32.mrb[69].mxu0  ;;  %4729 = vmatprep.mubr.bf16.mxu1 %v10052_v39  ;;  %4825 = vmatpush1.bf16.msra.mxu1 %v7493_v21 }
 0x359   : > { %v7767_v33 = vpop.eup %7766  ;;  %v3012_v8 = vadd.f32 1.0, %v7765_v3  ;;  %v10230_v23 = vadd.f32 %v2379_v35, %v10145_v9  ;;  %v2381_v29 = vpop.f32.mrb[70].mxu0  ;;  %4826 = vmatprep.subr.bf16.mxu1 %v7501_v38  ;;  %v3174_v41 = vmul.f32 %v3006_v12, %v2502_v27  ;;  %v7511_v38 = vld [vmem:[%s8375_s11 + $0x46c] ss:$12 sps:$4 sm:$0xff]   ;;  %v7512_v27 = vld [vmem:[%s8375_s11 + $0x3c8] ss:$12 sps:$4 sm:$0xff]  }
 0x35a   : > { %v3013_v2 = vadd.f32 1.0, %v7767_v33  ;;  %v2694_v58 = vmul.f32 0.70710677, %v10223_v31  ;;  %v2383_v37 = vpop.f32.mrb[71].mxu0  ;;  %v10237_v0 = vadd.f32 %v2381_v29, %v10141_v7  ;;  %v3175_v20 = vmul.f32 %v3007_v13, %v2503_v63 }
 0x35b   : > { %v3180_v32 = vmul.f32 %v3012_v8, %v2508_v53  ;;  %v2695_v44 = vmul.f32 0.70710677, %v10230_v23  ;;  %v10240_v21 = vadd.f32 %v2383_v37, %v10145_v9  ;;  %v2515_v29 = vmul.f32 0.5, %v10199_v60 }
 0x35c   : > { %v3181_v4 = vmul.f32 %v3013_v2, %v2509_v62  ;;  %7776 = verf.f32 %v2694_v58  ;;  %4827 = vmatpush1.bf16.msra.mxu1 %v7499_v1  ;;  %v2700_v51 = vmul.f32 0.70710677, %v10237_v0  ;;  %v7509_v1 = vld [vmem:[%s8375_s11 + $0x468] ss:$12 sps:$4 sm:$0xff]   ;;  %v2520_v63 = vmul.f32 0.5, %v10205_v42 }
 0x35d   : > { %7778 = verf.f32 %v2695_v44  ;;  %v10245_v48 = vpack.c.bf16 %v3180_v32, %v3174_v41  ;;  %4828 = vmatprep.subr.bf16.mxu1 %v7508_v22  ;;  %v2701_v46 = vmul.f32 0.70710677, %v10240_v21  ;;  %v2521_v37 = vmul.f32 0.5, %v10208_v36 }
 0x35e   : > { %5167 = vmatmul.mubr.bf16.gmra.mrb[176].mxu0 %v10010_v24  ;;  %v7769_v19 = vpop.eup %7768  ;;  %v10250_v16 = vpack.c.bf16 %v3181_v4, %v3175_v20  ;;  %7780 = verf.f32 %v2700_v51 }
 0x35f   : > { %5174 = vmatprep.mubr.bf16.mxu0 %v10016_v6  ;;  %v7771_v12 = vpop.eup %7770  ;;  %v2387_v52 = vpop.f32.mrb[72].mxu0  ;;  %4730 = vmatmul.mubr.bf16.gmra.mrb[84].mxu1 %v10056_v43  ;;  %v3018_v3 = vadd.f32 1.0, %v7769_v19  ;;  %7782 = verf.f32 %v2701_v46  ;;  %v2514_v6 = vmul.f32 0.5, %v10193_v59 }
 0x360   : > { %v10255_v24 = vadd.f32 %v2387_v52, %v10141_v7  ;;  %v2389_v13 = vpop.f32.mrb[73].mxu0  ;;  %v7773_v35 = vpop.eup %7772  ;;  %4739 = vmatprep.mubr.bf16.mxu1 %v10060_v57  ;;  %4829 = vmatpush1.bf16.msra.mxu1 %v7506_v30  ;;  %v3019_v33 = vadd.f32 1.0, %v7771_v12 }
 0x361   : > { %v10261_v53 = vadd.f32 %v2389_v13, %v10145_v9  ;;  %v2391_v8 = vpop.f32.mrb[74].mxu0  ;;  %v7775_v22 = vpop.eup %7774  ;;  %v3024_v62 = vadd.f32 1.0, %v7773_v35  ;;  %4830 = vmatprep.subr.bf16.mxu1 %v7511_v38  ;;  %v3186_v44 = vmul.f32 %v3018_v3, %v2514_v6  ;;  %v2527_v6 = vmul.f32 0.5, %v10230_v23 }
 0x362   : > { %v2706_v2 = vmul.f32 0.70710677, %v10255_v24  ;;  %v2393_v58 = vpop.f32.mrb[75].mxu0  ;;  %v3025_v41 = vadd.f32 1.0, %v7775_v22  ;;  %v10269_v32 = vadd.f32 %v2391_v8, %v10141_v7  ;;  %v3187_v42 = vmul.f32 %v3019_v33, %v2515_v29 }
 0x363   : > { %v2707_v59 = vmul.f32 0.70710677, %v10261_v53  ;;  %v3192_v20 = vmul.f32 %v3024_v62, %v2520_v63  ;;  %v10272_v60 = vadd.f32 %v2393_v58, %v10145_v9  ;;  %v2532_v33 = vmul.f32 0.5, %v10237_v0 }
 0x364   : > { %7784 = verf.f32 %v2706_v2  ;;  %v3193_v4 = vmul.f32 %v3025_v41, %v2521_v37  ;;  %4831 = vmatpush1.bf16.msra.mxu1 %v7509_v1  ;;  %v2712_v30 = vmul.f32 0.70710677, %v10269_v32  ;;  %v2533_v29 = vmul.f32 0.5, %v10240_v21 }
 0x365   : > { %7786 = verf.f32 %v2707_v59  ;;  %6479 = vmatprep.subr.bf16.mxu1 %v7512_v27  ;;  %v2713_v51 = vmul.f32 0.70710677, %v10272_v60  ;;  %v10278_v19 = vpack.c.bf16 %v3192_v20, %v3186_v44 }
 0x366   : > { %5175 = vmatmul.mubr.bf16.gmra.mrb[180].mxu0 %v10020_v54  ;;  %v7777_v36 = vpop.eup %7776  ;;  %7788 = verf.f32 %v2712_v30  ;;  %v10280_v46 = vpack.c.bf16 %v3193_v4, %v3187_v42  ;;  %v2526_v54 = vmul.f32 0.5, %v10223_v31 }
 0x367   : > { %5182 = vmatprep.mubr.bf16.mxu0 %v10024_v28  ;;  %v7779_v38 = vpop.eup %7778  ;;  %4740 = vmatmul.mubr.bf16.gmra.mrb[88].mxu1 %v10064_v10  ;;  %v3030_v12 = vadd.f32 1.0, %v7777_v36  ;;  %7790 = verf.f32 %v2713_v51  ;;  %v2397_v52 = vpop.f32.mrb[76].mxu0 }
 0x368   : > { %v7781_v3 = vpop.eup %7780  ;;  %4749 = vmatprep.mubr.bf16.mxu1 %v10068_v40  ;;  %v3031_v1 = vadd.f32 1.0, %v7779_v38  ;;  %v10286_v13 = vadd.f32 %v2397_v52, %v10141_v7  ;;  %v2399_v28 = vpop.f32.mrb[77].mxu0 }
 0x369   : > { %v7783_v35 = vpop.eup %7782  ;;  %v3036_v27 = vadd.f32 1.0, %v7781_v3  ;;  %v10291_v8 = vadd.f32 %v2399_v28, %v10145_v9  ;;  %v2401_v22 = vpop.f32.mrb[78].mxu0  ;;  %v3198_v58 = vmul.f32 %v3030_v12, %v2526_v54  ;;  %v2539_v54 = vmul.f32 0.5, %v10261_v53 }
 0x36a   : > { %v3037_v63 = vadd.f32 1.0, %v7783_v35  ;;  %v2718_v31 = vmul.f32 0.70710677, %v10286_v13  ;;  %v10296_v62 = vadd.f32 %v2401_v22, %v10141_v7  ;;  %v2403_v2 = vpop.f32.mrb[79].mxu0  ;;  %v3199_v41 = vmul.f32 %v3031_v1, %v2527_v6 }
 0x36b   : > { %v3204_v37 = vmul.f32 %v3036_v27, %v2532_v33  ;;  %v2719_v23 = vmul.f32 0.70710677, %v10291_v8  ;;  %v10300_v0 = vadd.f32 %v2403_v2, %v10145_v9  ;;  %v2544_v1 = vmul.f32 0.5, %v10269_v32 }
 0x36c   : > { %v3205_v59 = vmul.f32 %v3037_v63, %v2533_v29  ;;  %7792 = verf.f32 %v2718_v31  ;;  %v2724_v44 = vmul.f32 0.70710677, %v10296_v62  ;;  %v2545_v33 = vmul.f32 0.5, %v10272_v60 }
 0x36d   : > { %7794 = verf.f32 %v2719_v23  ;;  %v2725_v20 = vmul.f32 0.70710677, %v10300_v0  ;;  %v10306_v42 = vpack.c.bf16 %v3204_v37, %v3198_v58 }
 0x36e   : > { %5183 = vmatmul.mubr.bf16.gmra.mrb[184].mxu0 %v10030_v47  ;;  %v7785_v21 = vpop.eup %7784  ;;  %7796 = verf.f32 %v2724_v44  ;;  %v10308_v30 = vpack.c.bf16 %v3205_v59, %v3199_v41  ;;  %v2538_v47 = vmul.f32 0.5, %v10255_v24 }
 0x36f   : > { %5190 = vmatprep.mubr.bf16.mxu0 %v10034_v17  ;;  %v7787_v4 = vpop.eup %7786  ;;  %4750 = vmatmul.mubr.bf16.gmra.mrb[92].mxu1 %v10072_v56  ;;  %v3042_v36 = vadd.f32 1.0, %v7785_v21  ;;  %7798 = verf.f32 %v2725_v20  ;;  %v2407_v51 = vpop.f32.mrb[80].mxu0 }
 0x370   : > { %v7789_v38 = vpop.eup %7788  ;;  %4759 = vmatprep.mubr.bf16.mxu1 %v10076_v49  ;;  %v3043_v12 = vadd.f32 1.0, %v7787_v4  ;;  %v10314_v52 = vadd.f32 %v2407_v51, %v10141_v7  ;;  %v2409_v17 = vpop.f32.mrb[81].mxu0 }
 0x371   : > { %v7791_v3 = vpop.eup %7790  ;;  %v3048_v28 = vadd.f32 1.0, %v7789_v38  ;;  %v10319_v35 = vadd.f32 %v2409_v17, %v10145_v9  ;;  %v2411_v6 = vpop.f32.mrb[82].mxu0  ;;  %v3210_v63 = vmul.f32 %v3042_v36, %v2538_v47  ;;  %v2550_v38 = vmul.f32 0.5, %v10286_v13 }
 0x372   : > { %v3049_v27 = vadd.f32 1.0, %v7791_v3  ;;  %v2730_v24 = vmul.f32 0.70710677, %v10314_v52  ;;  %v10324_v22 = vadd.f32 %v2411_v6, %v10141_v7  ;;  %v2413_v29 = vpop.f32.mrb[83].mxu0  ;;  %v3211_v2 = vmul.f32 %v3043_v12, %v2539_v54 }
 0x373   : > { %v3216_v31 = vmul.f32 %v3048_v28, %v2544_v1  ;;  %v2731_v53 = vmul.f32 0.70710677, %v10319_v35  ;;  %v10328_v32 = vadd.f32 %v2413_v29, %v10145_v9  ;;  %v2556_v47 = vmul.f32 0.5, %v10296_v62 }
 0x374   : > { %v3217_v58 = vmul.f32 %v3049_v27, %v2545_v33  ;;  %7800 = verf.f32 %v2730_v24  ;;  %v2736_v37 = vmul.f32 0.70710677, %v10324_v22  ;;  %v2551_v54 = vmul.f32 0.5, %v10291_v8 }
 0x375   : > { %7802 = verf.f32 %v2731_v53  ;;  %v2737_v60 = vmul.f32 0.70710677, %v10328_v32  ;;  %v10334_v23 = vpack.c.bf16 %v3216_v31, %v3210_v63  ;;  %v2557_v1 = vmul.f32 0.5, %v10300_v0 }
 0x376   : > { %5191 = vmatmul.mubr.bf16.gmra.mrb[188].mxu0 %v10038_v11  ;;  %v7793_v41 = vpop.eup %7792  ;;  %7804 = verf.f32 %v2736_v37  ;;  %v10336_v59 = vpack.c.bf16 %v3217_v58, %v3211_v2 }
 0x377   : > { %5198 = vmatprep.mubr.bf16.mxu0 %v10044_v26  ;;  %v7795_v44 = vpop.eup %7794  ;;  %4760 = vmatmul.mubr.bf16.gmra.mrb[96].mxu1 %v10080_v25  ;;  %v3054_v21 = vadd.f32 1.0, %v7793_v41  ;;  %7806 = verf.f32 %v2737_v60 }
 0x378   : > { %v2417_v20 = vpop.f32.mrb[84].mxu0  ;;  %v7797_v4 = vpop.eup %7796  ;;  %4769 = vmatprep.mubr.bf16.mxu1 %v10086_v18  ;;  %v3055_v11 = vadd.f32 1.0, %v7795_v44 }
 0x379   : > { %v10341_v36 = vadd.f32 %v2417_v20, %v10141_v7  ;;  %v2419_v26 = vpop.f32.mrb[85].mxu0  ;;  %v7799_v51 = vpop.eup %7798  ;;  %v3060_v12 = vadd.f32 1.0, %v7797_v4  ;;  %v3222_v27 = vmul.f32 %v3054_v21, %v2550_v38  ;;  %v2562_v4 = vmul.f32 0.5, %v10314_v52 }
 0x37a   : > { %v10346_v17 = vadd.f32 %v2419_v26, %v10145_v9  ;;  %v2421_v3 = vpop.f32.mrb[86].mxu0  ;;  %v3061_v28 = vadd.f32 1.0, %v7799_v51  ;;  %v3223_v62 = vmul.f32 %v3055_v11, %v2551_v54  ;;  %v2568_v11 = vmul.f32 0.5, %v10324_v22 }
 0x37b   : > { %v2742_v6 = vmul.f32 0.70710677, %v10341_v36  ;;  %v2423_v33 = vpop.f32.mrb[87].mxu0  ;;  %v3228_v24 = vmul.f32 %v3060_v12, %v2556_v47  ;;  %v10353_v13 = vadd.f32 %v2421_v3, %v10141_v7  ;;  %v2563_v47 = vmul.f32 0.5, %v10319_v35 }
 0x37c   : > { %v2743_v29 = vmul.f32 0.70710677, %v10346_v17  ;;  %v3229_v63 = vmul.f32 %v3061_v28, %v2557_v1  ;;  %v10356_v31 = vadd.f32 %v2423_v33, %v10145_v9  ;;  %v2569_v12 = vmul.f32 0.5, %v10328_v32 }
 0x37d   : > { %7808 = verf.f32 %v2742_v6  ;;  %v2748_v8 = vmul.f32 0.70710677, %v10353_v13  ;;  %v10361_v0 = vpack.c.bf16 %v3228_v24, %v3222_v27 }
 0x37e   : > { %5199 = vmatmul.mubr.bf16.gmra.mrb[192].mxu0 %v10048_v61  ;;  %7810 = verf.f32 %v2743_v29  ;;  %v7801_v53 = vpop.eup %7800  ;;  %v2749_v2 = vmul.f32 0.70710677, %v10356_v31  ;;  %v10364_v58 = vpack.c.bf16 %v3229_v63, %v3223_v62 }
 0x37f   : > { %5206 = vmatprep.mubr.bf16.mxu0 %v10052_v39  ;;  %v7803_v37 = vpop.eup %7802  ;;  %4770 = vmatmul.mubr.bf16.gmra.mrb[100].mxu1 %v10090_v34  ;;  %v3066_v60 = vadd.f32 1.0, %v7801_v53  ;;  %7812 = verf.f32 %v2748_v8 }
 0x380   : > { %v2427_v41 = vpop.f32.mrb[88].mxu0  ;;  %v7805_v44 = vpop.eup %7804  ;;  %4779 = vmatprep.mubr.bf16.mxu1 %v10095_v45  ;;  %v3067_v61 = vadd.f32 1.0, %v7803_v37  ;;  %7814 = verf.f32 %v2749_v2 }
 0x381   : > { %v10369_v39 = vadd.f32 %v2427_v41, %v10141_v7  ;;  %v2429_v21 = vpop.f32.mrb[89].mxu0  ;;  %v7807_v20 = vpop.eup %7806  ;;  %v3072_v26 = vadd.f32 1.0, %v7805_v44  ;;  %v3234_v28 = vmul.f32 %v3066_v60, %v2562_v4  ;;  %v2574_v60 = vmul.f32 0.5, %v10341_v36 }
 0x382   : > { %v10374_v51 = vadd.f32 %v2429_v21, %v10145_v9  ;;  %v2431_v38 = vpop.f32.mrb[90].mxu0  ;;  %v3073_v3 = vadd.f32 1.0, %v7807_v20  ;;  %v3235_v22 = vmul.f32 %v3067_v61, %v2563_v47  ;;  %v2575_v20 = vmul.f32 0.5, %v10346_v17 }
 0x383   : > { %v2754_v54 = vmul.f32 0.70710677, %v10369_v39  ;;  %v2433_v1 = vpop.f32.mrb[91].mxu0  ;;  %v3240_v6 = vmul.f32 %v3072_v26, %v2568_v11  ;;  %v10381_v52 = vadd.f32 %v2431_v38, %v10141_v7  ;;  %v2580_v4 = vmul.f32 0.5, %v10353_v13 }
 0x384   : > { %v2755_v33 = vmul.f32 0.70710677, %v10374_v51  ;;  %v3241_v27 = vmul.f32 %v3073_v3, %v2569_v12  ;;  %v10384_v24 = vadd.f32 %v2433_v1, %v10145_v9  ;;  %v2581_v47 = vmul.f32 0.5, %v10356_v31 }
 0x385   : > { %7816 = verf.f32 %v2754_v54  ;;  %v2760_v35 = vmul.f32 0.70710677, %v10381_v52  ;;  %v10389_v32 = vpack.c.bf16 %v3240_v6, %v3234_v28 }
 0x386   : > { %5207 = vmatmul.mubr.bf16.gmra.mrb[196].mxu0 %v10056_v43  ;;  %7818 = verf.f32 %v2755_v33  ;;  %v2761_v62 = vmul.f32 0.70710677, %v10384_v24  ;;  %v10392_v63 = vpack.c.bf16 %v3241_v27, %v3235_v22 }
 0x387   : > { %5214 = vmatprep.mubr.bf16.mxu0 %v10060_v57  ;;  %v7809_v29 = vpop.eup %7808  ;;  %4780 = vmatmul.mubr.bf16.gmra.mrb[104].mxu1 %v10098_v5  ;;  %7820 = verf.f32 %v2760_v35 }
 0x388   : > { %v7811_v8 = vpop.eup %7810  ;;  %v2437_v53 = vpop.f32.mrb[92].mxu0  ;;  %4789 = vmatprep.mubr.bf16.mxu1 %v10107_v15  ;;  %v3078_v43 = vadd.f32 1.0, %v7809_v29  ;;  %7822 = verf.f32 %v2761_v62 }
 0x389   : > { %v10397_v2 = vadd.f32 %v2437_v53, %v10141_v7  ;;  %v2439_v57 = vpop.f32.mrb[93].mxu0  ;;  %v7813_v37 = vpop.eup %7812  ;;  %v3079_v41 = vadd.f32 1.0, %v7811_v8  ;;  %v2586_v53 = vmul.f32 0.5, %v10369_v39 }
 0x38a   : > { %v10401_v44 = vadd.f32 %v2439_v57, %v10145_v9  ;;  %v2441_v61 = vpop.f32.mrb[94].mxu0  ;;  %v7815_v21 = vpop.eup %7814  ;;  %v3084_v11 = vadd.f32 1.0, %v7813_v37  ;;  %v3246_v54 = vmul.f32 %v3078_v43, %v2574_v60 }
 0x38b   : > { %v2766_v26 = vmul.f32 0.70710677, %v10397_v2  ;;  %v2443_v38 = vpop.f32.mrb[95].mxu0  ;;  %v3085_v12 = vadd.f32 1.0, %v7815_v21  ;;  %v10409_v36 = vadd.f32 %v2441_v61, %v10141_v7  ;;  %v3247_v17 = vmul.f32 %v3079_v41, %v2575_v20 }
 0x38c   : > { %v2767_v3 = vmul.f32 0.70710677, %v10401_v44  ;;  %v3252_v1 = vmul.f32 %v3084_v11, %v2580_v4  ;;  %v10412_v28 = vadd.f32 %v2443_v38, %v10145_v9  ;;  %v2587_v41 = vmul.f32 0.5, %v10374_v51 }
 0x38d   : > { %7824 = verf.f32 %v2766_v26  ;;  %v3253_v13 = vmul.f32 %v3085_v12, %v2581_v47  ;;  %v2772_v6 = vmul.f32 0.70710677, %v10409_v36  ;;  %v2592_v61 = vmul.f32 0.5, %v10381_v52  ;;  %v7513_v47 = vld [vmem:[%s8375_s11 + $0x308] ss:$12 sps:$4 sm:$0xff]  }
 0x38e   : > { %5215 = vmatmul.mubr.bf16.gmra.mrb[200].mxu0 %v10064_v10  ;;  %7826 = verf.f32 %v2767_v3  ;;  %v2773_v33 = vmul.f32 0.70710677, %v10412_v28  ;;  %v10418_v22 = vpack.c.bf16 %v3252_v1, %v3246_v54  ;;  %v2593_v11 = vmul.f32 0.5, %v10384_v24  ;;  %v7514_v52 = vld [vmem:[%s8375_s11 + $0x3e0] ss:$12 sps:$4 sm:$0xff]  }
 0x38f   : > { %5222 = vmatprep.mubr.bf16.mxu0 %v10068_v40  ;;  %v7817_v31 = vpop.eup %7816  ;;  %4790 = vmatmul.mubr.bf16.gmra.mrb[108].mxu1 %v10105_v55  ;;  %7828 = verf.f32 %v2772_v6  ;;  %v10421_v29 = vpack.c.bf16 %v3253_v13, %v3247_v17 }
 0x390   : > { %v7819_v27 = vpop.eup %7818  ;;  %v2447_v35 = vpop.f32.mrb[96].mxu0  ;;  %4832 = vmatprep.mubr.bf16.mxu1 %v10218_v50  ;;  %v3090_v10 = vadd.f32 1.0, %v7817_v31  ;;  %7830 = verf.f32 %v2773_v33 }
 0x391   : > { %v10425_v62 = vadd.f32 %v2447_v35, %v10141_v7  ;;  %v2449_v40 = vpop.f32.mrb[97].mxu0  ;;  %v7821_v8 = vpop.eup %7820  ;;  %v3091_v43 = vadd.f32 1.0, %v7819_v27  ;;  %v7515_v27 = vld [vmem:[%s8375_s11 + $0x320] ss:$12 sps:$4 sm:$0xff]  }
 0x392   : > { %v10429_v57 = vadd.f32 %v2449_v40, %v10145_v9  ;;  %v2451_v37 = vpop.f32.mrb[98].mxu0  ;;  %v7823_v60 = vpop.eup %7822  ;;  %v3096_v21 = vadd.f32 1.0, %v7821_v8  ;;  %v3258_v12 = vmul.f32 %v3090_v10, %v2586_v53  ;;  %v7516_v8 = vld [vmem:[%s8375_s11 + $0x3f8] ss:$12 sps:$4 sm:$0xff]   ;;  %v2598_v53 = vmul.f32 0.5, %v10397_v2 }
 0x393   : > { %v2778_v20 = vmul.f32 0.70710677, %v10425_v62  ;;  %v2453_v4 = vpop.f32.mrb[99].mxu0  ;;  %v3097_v26 = vadd.f32 1.0, %v7823_v60  ;;  %v10437_v38 = vadd.f32 %v2451_v37, %v10141_v7  ;;  %v3259_v54 = vmul.f32 %v3091_v43, %v2587_v41 }
 0x394   : > { %v2779_v39 = vmul.f32 0.70710677, %v10429_v57  ;;  %v3264_v3 = vmul.f32 %v3096_v21, %v2592_v61  ;;  %v10441_v51 = vadd.f32 %v2453_v4, %v10145_v9  ;;  %v2599_v61 = vmul.f32 0.5, %v10401_v44 }
 0x395   : > { %7832 = verf.f32 %v2778_v20  ;;  %v3265_v1 = vmul.f32 %v3097_v26, %v2593_v11  ;;  %v2784_v24 = vmul.f32 0.70710677, %v10437_v38  ;;  %v2604_v21 = vmul.f32 0.5, %v10409_v36  ;;  %v7518_v36 = vld [vmem:[%s8375_s11 + $0x410] ss:$12 sps:$4 sm:$0xff]  }
 0x396   : > { %5223 = vmatmul.mubr.bf16.gmra.mrb[204].mxu0 %v10072_v56  ;;  %7834 = verf.f32 %v2779_v39  ;;  %v2785_v13 = vmul.f32 0.70710677, %v10441_v51  ;;  %v10448_v6 = vpack.c.bf16 %v3264_v3, %v3258_v12  ;;  %v2605_v26 = vmul.f32 0.5, %v10412_v28  ;;  %v7517_v12 = vld [vmem:[%s8375_s11 + $0x338] ss:$12 sps:$4 sm:$0xff]  }
 0x397   : > { %5230 = vmatprep.mubr.bf16.mxu0 %v10076_v49  ;;  %v7825_v17 = vpop.eup %7824  ;;  %4833 = vmatmul.mubr.bf16.vlgmr.msra.gmra.mrb[56].mxu1 %v10211_v14  ;;  %7836 = verf.f32 %v2784_v24  ;;  %v10451_v33 = vpack.c.bf16 %v3265_v1, %v3259_v54 }
 0x398   : > { %v7827_v31 = vpop.eup %7826  ;;  %6480 = vmatpush3.bf16.msra.mxu1 %v7513_v47  ;;  %4842 = vmatprep.mubr.bf16.mxu1 %v10250_v16  ;;  %v3102_v35 = vadd.f32 1.0, %v7825_v17  ;;  %7838 = verf.f32 %v2785_v13 }
 0x399   : > { %v2457_v56 = vpop.f32.mrb[100].mxu0  ;;  %v7829_v40 = vpop.eup %7828  ;;  %6481 = vmatprep.subr.bf16.mxu1 %v7514_v52  ;;  %v3103_v43 = vadd.f32 1.0, %v7827_v31 }
 0x39a   : > { %v10456_v49 = vadd.f32 %v2457_v56, %v10141_v7  ;;  %v2459_v10 = vpop.f32.mrb[101].mxu0  ;;  %v7831_v41 = vpop.eup %7830  ;;  %v3108_v20 = vadd.f32 1.0, %v7829_v40  ;;  %v3270_v3 = vmul.f32 %v3102_v35, %v2598_v53 }
 0x39b   : > { %v10461_v37 = vadd.f32 %v2459_v10, %v10145_v9  ;;  %v2461_v60 = vpop.f32.mrb[102].mxu0  ;;  %v3109_v39 = vadd.f32 1.0, %v7831_v41  ;;  %v3271_v28 = vmul.f32 %v3103_v43, %v2599_v61  ;;  %v7520_v43 = vld [vmem:[%s8375_s11 + $0x428] ss:$12 sps:$4 sm:$0xff]  }
 0x39c   : > { %v2790_v4 = vmul.f32 0.70710677, %v10456_v49  ;;  %v2463_v11 = vpop.f32.mrb[103].mxu0  ;;  %v10469_v47 = vadd.f32 %v2461_v60, %v10141_v7  ;;  %6482 = vmatpush3.bf16.msra.mxu1 %v7515_v27  ;;  %v3276_v52 = vmul.f32 %v3108_v20, %v2604_v21  ;;  %v7519_v27 = vld [vmem:[%s8375_s11 + $0x350] ss:$12 sps:$4 sm:$0xff]   ;;  %v2611_v21 = vmul.f32 0.5, %v10429_v57 }
 0x39d   : > { %v2791_v2 = vmul.f32 0.70710677, %v10461_v37  ;;  %v10473_v44 = vadd.f32 %v2463_v11, %v10145_v9  ;;  %6483 = vmatprep.subr.bf16.mxu1 %v7516_v8  ;;  %v3277_v54 = vmul.f32 %v3109_v39, %v2605_v26  ;;  %v2610_v8 = vmul.f32 0.5, %v10425_v62 }
 0x39e   : > { %7840 = verf.f32 %v2790_v4  ;;  %5231 = vmatmul.mubr.bf16.gmra.mrb[208].mxu0 %v10080_v25  ;;  %v2796_v1 = vmul.f32 0.70710677, %v10469_v47  ;;  %v10480_v13 = vpack.c.bf16 %v3276_v52, %v3270_v3  ;;  %v2616_v20 = vmul.f32 0.5, %v10437_v38 }
 0x39f   : > { %7842 = verf.f32 %v2791_v2  ;;  %5238 = vmatprep.mubr.bf16.mxu0 %v10086_v18  ;;  %v7833_v24 = vpop.eup %7832  ;;  %v2797_v17 = vmul.f32 0.70710677, %v10473_v44  ;;  %4843 = vmatmul.mubr.bf16.gmra.mrb[60].mxu1 %v10245_v48  ;;  %v10483_v56 = vpack.c.bf16 %v3277_v54, %v3271_v28  ;;  %v2617_v39 = vmul.f32 0.5, %v10441_v51  ;;  %v7522_v51 = vld [vmem:[%s8375_s11 + $0x440] ss:$12 sps:$4 sm:$0xff]  }
 0x3a0   : > { %v7835_v31 = vpop.eup %7834  ;;  %7844 = verf.f32 %v2796_v1  ;;  %4852 = vmatprep.mubr.bf16.mxu1 %v10280_v46  ;;  %6484 = vmatpush3.bf16.msra.mxu1 %v7517_v12  ;;  %v3114_v35 = vadd.f32 1.0, %v7833_v24 }
 0x3a1   : > { %v2467_v25 = vpop.f32.mrb[104].mxu0  ;;  %7846 = verf.f32 %v2797_v17  ;;  %v7837_v40 = vpop.eup %7836  ;;  %6485 = vmatprep.subr.bf16.mxu1 %v7518_v36  ;;  %v3115_v53 = vadd.f32 1.0, %v7835_v31  ;;  %v7521_v36 = vld [vmem:[%s8375_s11 + $0x368] ss:$12 sps:$4 sm:$0xff]  }
 0x3a2   : > { %v10488_v18 = vadd.f32 %v2467_v25, %v10141_v7  ;;  %v2469_v10 = vpop.f32.mrb[105].mxu0  ;;  %v7839_v61 = vpop.eup %7838  ;;  %v3120_v4 = vadd.f32 1.0, %v7837_v40  ;;  %v3282_v3 = vmul.f32 %v3114_v35, %v2610_v8  ;;  %v7523_v35 = vld [vmem:[%s8375_s11 + $0x380] ss:$12 sps:$4 sm:$0xff]   ;;  %v2622_v8 = vmul.f32 0.5, %v10456_v49 }
 0x3a3   : > { %v10493_v60 = vadd.f32 %v2469_v10, %v10145_v9  ;;  %v2471_v41 = vpop.f32.mrb[106].mxu0  ;;  %v3121_v62 = vadd.f32 1.0, %v7839_v61  ;;  %v3283_v38 = vmul.f32 %v3115_v53, %v2611_v21  ;;  %v7524_v61 = vld [vmem:[%s8375_s11 + $0x458] ss:$12 sps:$4 sm:$0xff]  }
 0x3a4   : > { %v2802_v11 = vmul.f32 0.70710677, %v10488_v18  ;;  %v2473_v26 = vpop.f32.mrb[107].mxu0  ;;  %v10501_v12 = vadd.f32 %v2471_v41, %v10141_v7  ;;  %6486 = vmatpush3.bf16.msra.mxu1 %v7519_v27  ;;  %v3288_v52 = vmul.f32 %v3120_v4, %v2616_v20  ;;  %v2623_v20 = vmul.f32 0.5, %v10461_v37 }
 0x3a5   : > { %v2803_v2 = vmul.f32 0.70710677, %v10493_v60  ;;  %v10505_v57 = vadd.f32 %v2473_v26, %v10145_v9  ;;  %6487 = vmatprep.subr.bf16.mxu1 %v7520_v43  ;;  %v3289_v28 = vmul.f32 %v3121_v62, %v2617_v39  ;;  %v2628_v4 = vmul.f32 0.5, %v10469_v47  ;;  %v7525_v47 = vld [vmem:[%s8375_s11 + $0x398] ss:$12 sps:$4 sm:$0xff]  }
 0x3a6   : > { %7848 = verf.f32 %v2802_v11  ;;  %5239 = vmatmul.mubr.bf16.gmra.mrb[212].mxu0 %v10090_v34  ;;  %v2808_v54 = vmul.f32 0.70710677, %v10501_v12  ;;  %v10512_v17 = vpack.c.bf16 %v3288_v52, %v3282_v3  ;;  %v2629_v62 = vmul.f32 0.5, %v10473_v44 }
 0x3a7   : > { %7850 = verf.f32 %v2803_v2  ;;  %5246 = vmatprep.mubr.bf16.mxu0 %v10095_v45  ;;  %v2809_v24 = vmul.f32 0.70710677, %v10505_v57  ;;  %4853 = vmatmul.mubr.bf16.gmra.mrb[64].mxu1 %v10278_v19  ;;  %v10515_v25 = vpack.c.bf16 %v3289_v28, %v3283_v38 }
 0x3a8   : > { %v7841_v1 = vpop.eup %7840  ;;  %7852 = verf.f32 %v2808_v54  ;;  %4862 = vmatprep.mubr.bf16.mxu1 %v10308_v30  ;;  %6488 = vmatpush3.bf16.msra.mxu1 %v7521_v36 }
 0x3a9   : > { %v7843_v31 = vpop.eup %7842  ;;  %v2477_v34 = vpop.f32.mrb[108].mxu0  ;;  %v3126_v27 = vadd.f32 1.0, %v7841_v1  ;;  %7854 = verf.f32 %v2809_v24  ;;  %6489 = vmatprep.subr.bf16.mxu1 %v7522_v51 }
 0x3aa   : > { %v10520_v45 = vadd.f32 %v2477_v34, %v10141_v7  ;;  %v2479_v10 = vpop.f32.mrb[109].mxu0  ;;  %v7845_v40 = vpop.eup %7844  ;;  %v3127_v53 = vadd.f32 1.0, %v7843_v31  ;;  %v7527_v34 = vld [vmem:[%s8375_s11 + $0x3b0] ss:$12 sps:$4 sm:$0xff]  }
 0x3ab   : > { %v10524_v43 = vadd.f32 %v2479_v10, %v10145_v9  ;;  %v2481_v41 = vpop.f32.mrb[110].mxu0  ;;  %v7847_v21 = vpop.eup %7846  ;;  %v3132_v11 = vadd.f32 1.0, %v7845_v40  ;;  %v3294_v52 = vmul.f32 %v3126_v27, %v2622_v8 }
 0x3ac   : > { %v2814_v26 = vmul.f32 0.70710677, %v10520_v45  ;;  %v2483_v39 = vpop.f32.mrb[111].mxu0  ;;  %v3133_v49 = vadd.f32 1.0, %v7847_v21  ;;  %v10533_v3 = vadd.f32 %v2481_v41, %v10141_v7  ;;  %6490 = vmatpush3.bf16.msra.mxu1 %v7523_v35  ;;  %v3295_v38 = vmul.f32 %v3127_v53, %v2623_v20  ;;  %v7526_v7 = vld [vmem:[%s8375_s11 + $0x470] ss:$12 sps:$4 sm:$0xff]  }
 0x3ad   : > { %v2815_v2 = vmul.f32 0.70710677, %v10524_v43  ;;  %v3300_v36 = vmul.f32 %v3132_v11, %v2628_v4  ;;  %v6746_v37 = vadd.f32 %v2483_v39, %v10145_v9  ;;  %6491 = vmatprep.subr.bf16.mxu1 %v7524_v61  ;;  %v2634_v53 = vmul.f32 0.5, %v10488_v18 }
 0x3ae   : > { %7856 = verf.f32 %v2814_v26  ;;  %5247 = vmatmul.mubr.bf16.gmra.mrb[216].mxu0 %v10098_v5  ;;  %v3301_v28 = vmul.f32 %v3133_v49, %v2629_v62  ;;  %v2820_v44 = vmul.f32 0.70710677, %v10533_v3  ;;  %v2640_v41 = vmul.f32 0.5, %v10501_v12 }
 0x3af   : > { %7858 = verf.f32 %v2815_v2  ;;  %5254 = vmatprep.mubr.bf16.mxu0 %v10107_v15  ;;  %v2821_v54 = vmul.f32 0.70710677, %v6746_v37  ;;  %v10541_v1 = vpack.c.bf16 %v3300_v36, %v3294_v52  ;;  %4863 = vmatmul.mubr.bf16.gmra.mrb[68].mxu1 %v10306_v42  ;;  %v2635_v20 = vmul.f32 0.5, %v10493_v60 }
 0x3b0   : > { %v7849_v51 = vpop.eup %7848  ;;  %7860 = verf.f32 %v2820_v44  ;;  %v10544_v9 = vpack.c.bf16 %v3301_v28, %v3295_v38  ;;  %4872 = vmatprep.mubr.bf16.mxu1 %v10336_v59  ;;  %6492 = vmatpush3.bf16.msra.mxu1 %v7525_v47  ;;  %v2641_v4 = vmul.f32 0.5, %v10505_v57 }
 0x3b1   : > { %v7851_v24 = vpop.eup %7850  ;;  %v6295_v5 = vpop.f32.mrb[112].mxu0  ;;  %v3138_v31 = vadd.f32 1.0, %v7849_v51  ;;  %7862 = verf.f32 %v2821_v54  ;;  %6493 = vmatprep.subr.bf16.mxu1 %v7526_v7  ;;  %v2646_v51 = vmul.f32 0.5, %v10520_v45  ;;  %v2652_v54 = vmul.f32 0.5, %v10533_v3 }
 0x3b2   : > { %v6296_v15 = vpop.f32.mrb[113].mxu0  ;;  %v7853_v27 = vpop.eup %7852  ;;  %v3139_v35 = vadd.f32 1.0, %v7851_v24 }
 0x3b3   : > { %v10548_v10 = vadd.f32 %v6296_v15, %v6295_v5  ;;  %v6298_v40 = vpop.f32.mrb[114].mxu0  ;;  %v7855_v8 = vpop.eup %7854  ;;  %v3144_v61 = vadd.f32 1.0, %v7853_v27  ;;  %v3306_v39 = vmul.f32 %v3138_v31, %v2634_v53  ;;  %v2647_v31 = vmul.f32 0.5, %v10524_v43 }
 0x3b4   : > { %v6299_v21 = vpop.f32.mrb[115].mxu0  ;;  %v3145_v11 = vadd.f32 1.0, %v7855_v8  ;;  %6494 = vmatpush3.bf16.msra.mxu1 %v7527_v34  ;;  %v3307_v49 = vmul.f32 %v3139_v35, %v2635_v20  ;;  %v2653_v15 = vmul.f32 0.5, %v6746_v37 }
 0x3b5   : > { %v10554_v26 = vadd.f32 %v6299_v21, %v6298_v40  ;;  %v3312_v62 = vmul.f32 %v3144_v61, %v2640_v41 }
 0x3b6   : > { %5255 = vmatmul.mubr.bf16.gmra.mrb[220].mxu0 %v10105_v55  ;;  %v3313_v2 = vmul.f32 %v3145_v11, %v2641_v4 }
 0x3b7   : > { %v10557_v18 = vpack.c.bf16 %v3312_v62, %v3306_v39  ;;  %4873 = vmatmul.mubr.bf16.gmra.mrb[72].mxu1 %v10334_v23 }
 0x3b8   : > { %v7857_v52 = vpop.eup %7856  ;;  %v10560_v60 = vpack.c.bf16 %v3313_v2, %v3307_v49  ;;  %4882 = vmatprep.mubr.bf16.mxu1 %v10364_v58 }
 0x3b9   : > { %v7859_v12 = vpop.eup %7858  ;;  %v6301_v36 = vpop.f32.mrb[116].mxu0  ;;  %v3150_v57 = vadd.f32 1.0, %v7857_v52 }
 0x3ba   : > { %v6302_v47 = vpop.f32.mrb[117].mxu0  ;;  %v7861_v38 = vpop.eup %7860  ;;  %v3151_v28 = vadd.f32 1.0, %v7859_v12 }
 0x3bb   : > { %v10563_v44 = vadd.f32 %v6302_v47, %v6301_v36  ;;  %v6304_v55 = vpop.f32.mrb[118].mxu0  ;;  %v7863_v7 = vpop.eup %7862  ;;  %v3156_v24 = vadd.f32 1.0, %v7861_v38  ;;  %v3318_v35 = vmul.f32 %v3150_v57, %v2646_v51 }
 0x3bc   : > { %v6305_v5 = vpop.f32.mrb[119].mxu0  ;;  %v3157_v34 = vadd.f32 1.0, %v7863_v7  ;;  %v3319_v8 = vmul.f32 %v3151_v28, %v2647_v31 }
 0x3bd   : > { %v10568_v27 = vadd.f32 %v6305_v5, %v6304_v55  ;;  %v3324_v40 = vmul.f32 %v3156_v24, %v2652_v54 }
 0x3be   : > { %v3325_v53 = vmul.f32 %v3157_v34, %v2653_v15 }
 0x3bf   : > { %v10570_v41 = vpack.c.bf16 %v3324_v40, %v3318_v35  ;;  %4883 = vmatmul.mubr.bf16.gmra.mrb[76].mxu1 %v10361_v0 }
 0x3c0   : > { %v10573_v45 = vpack.c.bf16 %v3325_v53, %v3319_v8  ;;  %4892 = vmatprep.mubr.bf16.mxu1 %v10392_v63 }
 0x3c1   : > { %v6307_v61 = vpop.f32.mrb[120].mxu0 }
 0x3c2   : > { %v6308_v3 = vpop.f32.mrb[121].mxu0 }
 0x3c3   : > { %v10576_v21 = vadd.f32 %v6308_v3, %v6307_v61  ;;  %v6310_v43 = vpop.f32.mrb[122].mxu0 }
 0x3c4   : > { %v6311_v37 = vpop.f32.mrb[123].mxu0 }
 0x3c5   : > { %v10578_v20 = vadd.f32 %v6311_v37, %v6310_v43 }
 0x3c7   : > { %4893 = vmatmul.mubr.bf16.gmra.mrb[80].mxu1 %v10389_v32 }
 0x3c8   : > { %4902 = vmatprep.mubr.bf16.mxu1 %v10421_v29 }
 0x3c9   : > { %v6313_v4 = vpop.f32.mrb[124].mxu0 }
 0x3ca   : > { %v6314_v11 = vpop.f32.mrb[125].mxu0 }
 0x3cb   : > { %v10582_v39 = vadd.f32 %v6314_v11, %v6313_v4  ;;  %v6316_v62 = vpop.f32.mrb[126].mxu0 }
 0x3cc   : > { %v6317_v49 = vpop.f32.mrb[127].mxu0 }
 0x3cd   : > { %v10584_v2 = vadd.f32 %v6317_v49, %v6316_v62 }
 0x3cf   : > { %4903 = vmatmul.mubr.bf16.gmra.mrb[84].mxu1 %v10418_v22 }
 0x3d0   : > { %4912 = vmatprep.mubr.bf16.mxu1 %v10451_v33 }
 0x3d1   : > { %v6319_v52 = vpop.f32.mrb[128].mxu0 }
 0x3d2   : > { %v6320_v12 = vpop.f32.mrb[129].mxu0 }
 0x3d3   : > { %v10588_v36 = vadd.f32 %v6320_v12, %v6319_v52  ;;  %v6322_v57 = vpop.f32.mrb[130].mxu0 }
 0x3d4   : > { %v6323_v47 = vpop.f32.mrb[131].mxu0 }
 0x3d5   : > { %v10590_v38 = vadd.f32 %v6323_v47, %v6322_v57 }
 0x3d7   : > { %4913 = vmatmul.mubr.bf16.gmra.mrb[88].mxu1 %v10448_v6 }
 0x3d8   : > { %4922 = vmatprep.mubr.bf16.mxu1 %v10483_v56 }
 0x3d9   : > { %v6325_v28 = vpop.f32.mrb[132].mxu0 }
 0x3da   : > { %v6326_v55 = vpop.f32.mrb[133].mxu0 }
 0x3db   : > { %v10594_v7 = vadd.f32 %v6326_v55, %v6325_v28  ;;  %v6328_v51 = vpop.f32.mrb[134].mxu0 }
 0x3dc   : > { %v6329_v54 = vpop.f32.mrb[135].mxu0 }
 0x3dd   : > { %v10596_v24 = vadd.f32 %v6329_v54, %v6328_v51 }
 0x3df   : > { %4923 = vmatmul.mubr.bf16.gmra.mrb[92].mxu1 %v10480_v13 }
 0x3e0   : > { %4932 = vmatprep.mubr.bf16.mxu1 %v10515_v25 }
 0x3e1   : > { %v6331_v5 = vpop.f32.mrb[136].mxu0 }
 0x3e2   : > { %v6332_v31 = vpop.f32.mrb[137].mxu0 }
 0x3e3   : > { %v10600_v15 = vadd.f32 %v6332_v31, %v6331_v5  ;;  %v6334_v34 = vpop.f32.mrb[138].mxu0 }
 0x3e4   : > { %v6335_v35 = vpop.f32.mrb[139].mxu0 }
 0x3e5   : > { %v10602_v40 = vadd.f32 %v6335_v35, %v6334_v34 }
 0x3e7   : > { %4933 = vmatmul.mubr.bf16.gmra.mrb[96].mxu1 %v10512_v17 }
 0x3e8   : > { %4942 = vmatprep.mubr.bf16.mxu1 %v10544_v9 }
 0x3e9   : > { %v6337_v8 = vpop.f32.mrb[140].mxu0 }
 0x3ea   : > { %v6338_v53 = vpop.f32.mrb[141].mxu0 }
 0x3eb   : > { %v10606_v61 = vadd.f32 %v6338_v53, %v6337_v8  ;;  %v6340_v3 = vpop.f32.mrb[142].mxu0 }
 0x3ec   : > { %v6341_v43 = vpop.f32.mrb[143].mxu0 }
 0x3ed   : > { %v10608_v37 = vadd.f32 %v6341_v43, %v6340_v3 }
 0x3ef   : > { %4943 = vmatmul.mubr.bf16.gmra.mrb[100].mxu1 %v10541_v1 }
 0x3f0   : > { %4952 = vmatprep.mubr.bf16.mxu1 %v10560_v60 }
 0x3f1   : > { %v6343_v4 = vpop.f32.mrb[144].mxu0 }
 0x3f2   : > { %v6344_v11 = vpop.f32.mrb[145].mxu0 }
 0x3f3   : > { %v10612_v62 = vadd.f32 %v6344_v11, %v6343_v4  ;;  %v6346_v49 = vpop.f32.mrb[146].mxu0 }
 0x3f4   : > { %v6347_v52 = vpop.f32.mrb[147].mxu0 }
 0x3f5   : > { %v10614_v12 = vadd.f32 %v6347_v52, %v6346_v49 }
 0x3f7   : > { %4953 = vmatmul.mubr.bf16.gmra.mrb[104].mxu1 %v10557_v18 }
 0x3f8   : > { %4962 = vmatprep.mubr.bf16.mxu1 %v10573_v45 }
 0x3f9   : > { %v6349_v57 = vpop.f32.mrb[148].mxu0 }
 0x3fa   : > { %v6350_v47 = vpop.f32.mrb[149].mxu0 }
 0x3fb   : > { %v10618_v28 = vadd.f32 %v6350_v47, %v6349_v57  ;;  %v6352_v55 = vpop.f32.mrb[150].mxu0 }
 0x3fc   : > { %v6353_v51 = vpop.f32.mrb[151].mxu0 }
 0x3fd   : > { %v10620_v54 = vadd.f32 %v6353_v51, %v6352_v55 }
 0x3ff   : > { %4963 = vmatmul.mubr.bf16.gmra.mrb[108].mxu1 %v10570_v41 }
 0x400   : > { %5295 = vmatprep.mubr.bf16.mxu1 %v10218_v50 }
 0x401   : > { %v6355_v5 = vpop.f32.mrb[152].mxu0 }
 0x402   : > { %v6356_v31 = vpop.f32.mrb[153].mxu0 }
 0x403   : > { %v10624_v34 = vadd.f32 %v6356_v31, %v6355_v5  ;;  %v6358_v35 = vpop.f32.mrb[154].mxu0 }
 0x404   : > { %v6359_v8 = vpop.f32.mrb[155].mxu0 }
 0x405   : > { %v10626_v53 = vadd.f32 %v6359_v8, %v6358_v35 }
 0x407   : > { %5296 = vmatmul.mubr.bf16.vlgmr.msra.gmra.mrb[112].mxu1 %v10211_v14 }
 0x408   : > { %5303 = vmatprep.mubr.bf16.mxu1 %v10250_v16 }
 0x409   : > { %v6361_v3 = vpop.f32.mrb[156].mxu0 }
 0x40a   : > { %v6362_v43 = vpop.f32.mrb[157].mxu0 }
 0x40b   : > { %v10630_v4 = vadd.f32 %v6362_v43, %v6361_v3  ;;  %v6364_v11 = vpop.f32.mrb[158].mxu0 }
 0x40c   : > { %v6365_v49 = vpop.f32.mrb[159].mxu0 }
 0x40d   : > { %v10632_v52 = vadd.f32 %v6365_v49, %v6364_v11 }
 0x40f   : > { %5304 = vmatmul.mubr.bf16.gmra.mrb[116].mxu1 %v10245_v48 }
 0x410   : > { %5311 = vmatprep.mubr.bf16.mxu1 %v10280_v46 }
 0x411   : > { %v6367_v50 = vpop.f32.mrb[160].mxu0 }
 0x412   : > { %v6368_v57 = vpop.f32.mrb[161].mxu0 }
 0x413   : > { %v10636_v47 = vadd.f32 %v6368_v57, %v6367_v50  ;;  %v6370_v55 = vpop.f32.mrb[162].mxu0 }
 0x414   : > { %v6371_v14 = vpop.f32.mrb[163].mxu0 }
 0x415   : > { %v10638_v51 = vadd.f32 %v6371_v14, %v6370_v55 }
 0x417   : > { %5312 = vmatmul.mubr.bf16.gmra.mrb[120].mxu1 %v10278_v19 }
 0x418   : > { %5319 = vmatprep.mubr.bf16.mxu1 %v10308_v30 }
 0x419   : > { %v6373_v16 = vpop.f32.mrb[164].mxu0 }
 0x41a   : > { %v6374_v5 = vpop.f32.mrb[165].mxu0 }
 0x41b   : > { %v10642_v31 = vadd.f32 %v6374_v5, %v6373_v16  ;;  %v6376_v35 = vpop.f32.mrb[166].mxu0 }
 0x41c   : > { %v6377_v48 = vpop.f32.mrb[167].mxu0 }
 0x41d   : > { %v10644_v8 = vadd.f32 %v6377_v48, %v6376_v35 }
 0x41f   : > { %5320 = vmatmul.mubr.bf16.gmra.mrb[124].mxu1 %v10306_v42 }
 0x420   : > { %5327 = vmatprep.mubr.bf16.mxu1 %v10336_v59 }
 0x421   : > { %v6395_v46 = vpop.f32.mrb[168].mxu0 }
 0x422   : > { %v6396_v3 = vpop.f32.mrb[169].mxu0 }
 0x423   : > { %v6397_v43 = vadd.f32 %v6396_v3, %v6395_v46  ;;  %v6398_v11 = vpop.f32.mrb[170].mxu0 }
 0x424   : > { %v6399_v49 = vpop.f32.mrb[171].mxu0 }
 0x425   : > { %v10649_v19 = vadd.f32 %v6397_v43, %v10548_v10  ;;  %v6400_v30 = vadd.f32 %v6399_v49, %v6398_v11 }
 0x427   : > { %v10652_v50 = vadd.f32 %v6400_v30, %v10554_v26  ;;  %5328 = vmatmul.mubr.bf16.gmra.mrb[128].mxu1 %v10334_v23 }
 0x428   : > { %5335 = vmatprep.mubr.bf16.mxu1 %v10364_v58 }
 0x429   : > { %v6401_v57 = vpop.f32.mrb[172].mxu0 }
 0x42a   : > { %v6402_v42 = vpop.f32.mrb[173].mxu0 }
 0x42b   : > { %v6403_v55 = vadd.f32 %v6402_v42, %v6401_v57  ;;  %v6404_v14 = vpop.f32.mrb[174].mxu0 }
 0x42c   : > { %v6405_v59 = vpop.f32.mrb[175].mxu0 }
 0x42d   : > { %v10657_v16 = vadd.f32 %v6403_v55, %v10563_v44  ;;  %v6406_v5 = vadd.f32 %v6405_v59, %v6404_v14 }
 0x42f   : > { %v10660_v10 = vadd.f32 %v6406_v5, %v10568_v27  ;;  %5336 = vmatmul.mubr.bf16.gmra.mrb[132].mxu1 %v10361_v0 }
 0x430   : > { %5343 = vmatprep.mubr.bf16.mxu1 %v10392_v63 }
 0x431   : > { %v6407_v26 = vpop.f32.mrb[176].mxu0 }
 0x432   : > { %v6408_v23 = vpop.f32.mrb[177].mxu0 }
 0x433   : > { %v6409_v35 = vadd.f32 %v6408_v23, %v6407_v26  ;;  %v6410_v48 = vpop.f32.mrb[178].mxu0 }
 0x434   : > { %v6411_v58 = vpop.f32.mrb[179].mxu0 }
 0x435   : > { %v10665_v46 = vadd.f32 %v6409_v35, %v10576_v21  ;;  %v6412_v3 = vadd.f32 %v6411_v58, %v6410_v48 }
 0x437   : > { %v10668_v44 = vadd.f32 %v6412_v3, %v10578_v20  ;;  %5344 = vmatmul.mubr.bf16.gmra.mrb[136].mxu1 %v10389_v32 }
 0x438   : > { %5351 = vmatprep.mubr.bf16.mxu1 %v10421_v29 }
 0x439   : > { %v6413_v27 = vpop.f32.mrb[180].mxu0 }
 0x43a   : > { %v6414_v0 = vpop.f32.mrb[181].mxu0 }
 0x43b   : > { %v6415_v43 = vadd.f32 %v6414_v0, %v6413_v27  ;;  %v6416_v11 = vpop.f32.mrb[182].mxu0 }
 0x43c   : > { %v6417_v63 = vpop.f32.mrb[183].mxu0 }
 0x43d   : > { %v10673_v49 = vadd.f32 %v6415_v43, %v10582_v39  ;;  %v6418_v30 = vadd.f32 %v6417_v63, %v6416_v11 }
 0x43f   : > { %v10676_v21 = vadd.f32 %v6418_v30, %v10584_v2  ;;  %5352 = vmatmul.mubr.bf16.gmra.mrb[140].mxu1 %v10418_v22 }
 0x440   : > { %5359 = vmatprep.mubr.bf16.mxu1 %v10451_v33 }
 0x441   : > { %v6419_v20 = vpop.f32.mrb[184].mxu0 }
 0x442   : > { %v6420_v32 = vpop.f32.mrb[185].mxu0 }
 0x443   : > { %v6421_v57 = vadd.f32 %v6420_v32, %v6419_v20  ;;  %v6422_v42 = vpop.f32.mrb[186].mxu0 }
 0x444   : > { %v6423_v29 = vpop.f32.mrb[187].mxu0 }
 0x445   : > { %v10681_v55 = vadd.f32 %v6421_v57, %v10588_v36  ;;  %v6424_v14 = vadd.f32 %v6423_v29, %v6422_v42  ;;  %v3327_v42 = vld [vmem:[#allocation11 + $0x8] sm:$0xff] }
 0x447   : > { %v10684_v39 = vadd.f32 %v6424_v14, %v10590_v38  ;;  %5360 = vmatmul.mubr.bf16.gmra.mrb[144].mxu1 %v10448_v6 }
 0x448   : > { %5367 = vmatprep.mubr.bf16.mxu1 %v10483_v56 }
 0x449   : > { %v6425_v2 = vpop.f32.mrb[188].mxu0 }
 0x44a   : > { %v6426_v22 = vpop.f32.mrb[189].mxu0 }
 0x44b   : > { %v6427_v59 = vadd.f32 %v6426_v22, %v6425_v2  ;;  %v6428_v5 = vpop.f32.mrb[190].mxu0  ;;  %v3329_v2 = vld [vmem:[#allocation11 + $0x18] sm:$0xff] }
 0x44c   : > { %v6429_v33 = vpop.f32.mrb[191].mxu0 }
 0x44d   : > { %v10689_v26 = vadd.f32 %v6427_v59, %v10594_v7  ;;  %v6430_v23 = vadd.f32 %v6429_v33, %v6428_v5  ;;  %v3330_v5 = vld [vmem:[#allocation11 + $0x20] sm:$0xff] }
 0x44f   : > { %v10692_v36 = vadd.f32 %v6430_v23, %v10596_v24  ;;  %5368 = vmatmul.mubr.bf16.gmra.mrb[148].mxu1 %v10480_v13 }
 0x450   : > { %5375 = vmatprep.mubr.bf16.mxu1 %v10515_v25 }
 0x451   : > { %v6431_v38 = vpop.f32.mrb[192].mxu0 }
 0x452   : > { %v6432_v6 = vpop.f32.mrb[193].mxu0 }
 0x453   : > { %v6433_v35 = vadd.f32 %v6432_v6, %v6431_v38  ;;  %v6434_v48 = vpop.f32.mrb[194].mxu0 }
 0x454   : > { %v6435_v56 = vpop.f32.mrb[195].mxu0 }
 0x455   : > { %v10697_v58 = vadd.f32 %v6433_v35, %v10600_v15  ;;  %v6436_v3 = vadd.f32 %v6435_v56, %v6434_v48  ;;  %v3332_v56 = vld [vmem:[#allocation11 + $0x30] sm:$0xff] }
 0x457   : > { %v10700_v7 = vadd.f32 %v6436_v3, %v10602_v40  ;;  %5376 = vmatmul.mubr.bf16.gmra.mrb[152].mxu1 %v10512_v17 }
 0x458   : > { %5383 = vmatprep.mubr.bf16.mxu1 %v10544_v9 }
 0x459   : > { %v6437_v24 = vpop.f32.mrb[196].mxu0 }
 0x45a   : > { %v6438_v13 = vpop.f32.mrb[197].mxu0 }
 0x45b   : > { %v6439_v27 = vadd.f32 %v6438_v13, %v6437_v24  ;;  %v6440_v0 = vpop.f32.mrb[198].mxu0 }
 0x45c   : > { %v6441_v25 = vpop.f32.mrb[199].mxu0 }
 0x45d   : > { %v10705_v43 = vadd.f32 %v6439_v27, %v10606_v61  ;;  %v6442_v11 = vadd.f32 %v6441_v25, %v6440_v0  ;;  %v3335_v0 = vld [vmem:[#allocation11 + $0x48] sm:$0xff] }
 0x45f   : > { %v10708_v15 = vadd.f32 %v6442_v11, %v10608_v37  ;;  %5384 = vmatmul.mubr.bf16.gmra.mrb[156].mxu1 %v10541_v1  ;;  %v3326_v1 = vld [vmem:[#allocation11] sm:$0xff] }
 0x460   : > { %5391 = vmatprep.mubr.bf16.mxu1 %v10560_v60 }
 0x461   : > { %v6443_v40 = vpop.f32.mrb[200].mxu0 }
 0x462   : > { %v6444_v17 = vpop.f32.mrb[201].mxu0 }
 0x463   : > { %v6445_v63 = vadd.f32 %v6444_v17, %v6443_v40  ;;  %v6446_v30 = vpop.f32.mrb[202].mxu0  ;;  %v3336_v17 = vld [vmem:[#allocation11 + $0x50] sm:$0xff] }
 0x464   : > { %v6447_v9 = vpop.f32.mrb[203].mxu0 }
 0x465   : > { %v10713_v20 = vadd.f32 %v6445_v63, %v10612_v62  ;;  %v6448_v32 = vadd.f32 %v6447_v9, %v6446_v30 }
 0x467   : > { %v10716_v61 = vadd.f32 %v6448_v32, %v10614_v12  ;;  %5392 = vmatmul.mubr.bf16.gmra.mrb[160].mxu1 %v10557_v18 }
 0x468   : > { %5399 = vmatprep.mubr.bf16.mxu1 %v10573_v45 }
 0x469   : > { %v6449_v37 = vpop.f32.mrb[204].mxu0 }
 0x46a   : > { %v6450_v57 = vpop.f32.mrb[205].mxu0  ;;  %v4834_v14 = vpop.f32.mrb[56].mxu1 }
 0x46b   : > { %v6451_v60 = vadd.f32 %v6450_v57, %v6449_v37  ;;  %v6452_v29 = vpop.f32.mrb[206].mxu0  ;;  %v5408_v59 = vadd.f32 %v4834_v14, %v3326_v1  ;;  %v4836_v62 = vpop.f32.mrb[57].mxu1 }
 0x46c   : > { %v6453_v22 = vpop.f32.mrb[207].mxu0  ;;  %v5409_v23 = vadd.f32 %v4836_v62, %v3327_v42  ;;  %v4838_v18 = vpop.f32.mrb[58].mxu1  ;;  %v3338_v42 = vld [vmem:[#allocation11 + $0x60] sm:$0xff] }
 0x46d   : > { %v10721_v33 = vadd.f32 %v6451_v60, %v10618_v28  ;;  %v6454_v12 = vadd.f32 %v6453_v22, %v6452_v29  ;;  %5492 = vst [vmem:[#allocation11] sm:$0xff] %v5408_v59  ;;  %v5411_v38 = vadd.f32 %v4838_v18, %v3329_v2  ;;  %v4840_v45 = vpop.f32.mrb[59].mxu1  ;;  %v3333_v28 = vld [vmem:[#allocation11 + $0x38] sm:$0xff]  ;;  %v3339_v29 = vld [vmem:[#allocation11 + $0x68] sm:$0xff] }
 0x46e   : > { %5493 = vst [vmem:[#allocation11 + $0x8] sm:$0xff] %v5409_v23  ;;  %v5412_v35 = vadd.f32 %v4840_v45, %v3330_v5  ;;  %v3341_v22 = vld [vmem:[#allocation11 + $0x78] sm:$0xff] }
 0x46f   : > { %v10724_v6 = vadd.f32 %v6454_v12, %v10620_v54  ;;  %5495 = vst [vmem:[#allocation11 + $0x18] sm:$0xff] %v5411_v38  ;;  %5400 = vmatmul.mubr.bf16.gmra.mrb[164].mxu1 %v10570_v41  ;;  %v3342_v12 = vld [vmem:[#allocation11 + $0x80] sm:$0xff] }
 0x470   : > { %5496 = vst [vmem:[#allocation11 + $0x20] sm:$0xff] %v5412_v35 }
 0x471   : > { %v6455_v48 = vpop.f32.mrb[208].mxu0 }
 0x472   : > { %v6456_v3 = vpop.f32.mrb[209].mxu0  ;;  %v4844_v27 = vpop.f32.mrb[60].mxu1 }
 0x473   : > { %v6457_v24 = vadd.f32 %v6456_v3, %v6455_v48  ;;  %v6458_v13 = vpop.f32.mrb[210].mxu0  ;;  %v5414_v11 = vadd.f32 %v4844_v27, %v3332_v56  ;;  %v4846_v40 = vpop.f32.mrb[61].mxu1 }
 0x474   : > { %v6459_v25 = vpop.f32.mrb[211].mxu0  ;;  %v5415_v30 = vadd.f32 %v4846_v40, %v3333_v28  ;;  %v4848_v9 = vpop.f32.mrb[62].mxu1  ;;  %v3344_v28 = vld [vmem:[#allocation11 + $0x90] sm:$0xff] }
 0x475   : > { %v10728_v54 = vadd.f32 %v6457_v24, %v10624_v34  ;;  %v6460_v63 = vadd.f32 %v6459_v25, %v6458_v13  ;;  %5498 = vst [vmem:[#allocation11 + $0x30] sm:$0xff] %v5414_v11  ;;  %v5417_v41 = vadd.f32 %v4848_v9, %v3335_v0  ;;  %v4850_v32 = vpop.f32.mrb[63].mxu1  ;;  %v3345_v13 = vld [vmem:[#allocation11 + $0x98] sm:$0xff]  ;;  %v3347_v25 = vld [vmem:[#allocation11 + $0xa8] sm:$0xff] }
 0x476   : > { %5499 = vst [vmem:[#allocation11 + $0x38] sm:$0xff] %v5415_v30  ;;  %v5418_v1 = vadd.f32 %v4850_v32, %v3336_v17 }
 0x477   : > { %v10731_v37 = vadd.f32 %v6460_v63, %v10626_v53  ;;  %5501 = vst [vmem:[#allocation11 + $0x48] sm:$0xff] %v5417_v41  ;;  %v3348_v63 = vld [vmem:[#allocation11 + $0xb0] sm:$0xff] }
 0x478   : > { %5502 = vst [vmem:[#allocation11 + $0x50] sm:$0xff] %v5418_v1 }
 0x479   : > { %v6461_v57 = vpop.f32.mrb[212].mxu0 }
 0x47a   : > { %v6462_v60 = vpop.f32.mrb[213].mxu0  ;;  %v4854_v2 = vpop.f32.mrb[64].mxu1 }
 0x47b   : > { %v6463_v14 = vadd.f32 %v6462_v60, %v6461_v57  ;;  %v6464_v34 = vpop.f32.mrb[214].mxu0  ;;  %v5420_v62 = vadd.f32 %v4854_v2, %v3338_v42  ;;  %v4856_v5 = vpop.f32.mrb[65].mxu1 }
 0x47c   : > { %v6465_v59 = vpop.f32.mrb[215].mxu0  ;;  %v5421_v18 = vadd.f32 %v4856_v5, %v3339_v29  ;;  %v4858_v38 = vpop.f32.mrb[66].mxu1  ;;  %v3350_v29 = vld [vmem:[#allocation11 + $0xc0] sm:$0xff] }
 0x47d   : > { %v10734_v23 = vadd.f32 %v6463_v14, %v10630_v4  ;;  %v6466_v53 = vadd.f32 %v6465_v59, %v6464_v34  ;;  %5504 = vst [vmem:[#allocation11 + $0x60] sm:$0xff] %v5420_v62  ;;  %v5423_v45 = vadd.f32 %v4858_v38, %v3341_v22  ;;  %v4860_v35 = vpop.f32.mrb[67].mxu1  ;;  %v3351_v34 = vld [vmem:[#allocation11 + $0xc8] sm:$0xff]  ;;  %v3353_v59 = vld [vmem:[#allocation11 + $0xd8] sm:$0xff] }
 0x47e   : > { %5505 = vst [vmem:[#allocation11 + $0x68] sm:$0xff] %v5421_v18  ;;  %v5424_v56 = vadd.f32 %v4860_v35, %v3342_v12 }
 0x47f   : > { %v10737_v48 = vadd.f32 %v6466_v53, %v10632_v52  ;;  %5507 = vst [vmem:[#allocation11 + $0x78] sm:$0xff] %v5423_v45  ;;  %v3354_v53 = vld [vmem:[#allocation11 + $0xe0] sm:$0xff] }
 0x480   : > { %5508 = vst [vmem:[#allocation11 + $0x80] sm:$0xff] %v5424_v56 }
 0x481   : > { %v6467_v3 = vpop.f32.mrb[216].mxu0 }
 0x482   : > { %v6468_v24 = vpop.f32.mrb[217].mxu0  ;;  %v4864_v0 = vpop.f32.mrb[68].mxu1 }
 0x483   : > { %v6469_v27 = vadd.f32 %v6468_v24, %v6467_v3  ;;  %v6470_v4 = vpop.f32.mrb[218].mxu0  ;;  %v5426_v40 = vadd.f32 %v4864_v0, %v3344_v28  ;;  %v4866_v17 = vpop.f32.mrb[69].mxu1  ;;  %v3356_v24 = vld [vmem:[#allocation11 + $0xf0] sm:$0xff] }
 0x484   : > { %v6471_v11 = vpop.f32.mrb[219].mxu0  ;;  %v5427_v9 = vadd.f32 %v4866_v17, %v3345_v13  ;;  %v4868_v41 = vpop.f32.mrb[70].mxu1  ;;  %v3357_v13 = vld [vmem:[#allocation11 + $0xf8] sm:$0xff] }
 0x485   : > { %v10740_v30 = vadd.f32 %v6469_v27, %v10636_v47  ;;  %v6472_v52 = vadd.f32 %v6471_v11, %v6470_v4  ;;  %5510 = vst [vmem:[#allocation11 + $0x90] sm:$0xff] %v5426_v40  ;;  %v5429_v32 = vadd.f32 %v4868_v41, %v3347_v25  ;;  %v4870_v1 = vpop.f32.mrb[71].mxu1  ;;  %v3359_v4 = vld [vmem:[#allocation11 + $0x108] sm:$0xff]  ;;  %v3360_v25 = vld [vmem:[#allocation11 + $0x110] sm:$0xff] }
 0x486   : > { %5511 = vst [vmem:[#allocation11 + $0x98] sm:$0xff] %v5427_v9  ;;  %v5430_v42 = vadd.f32 %v4870_v1, %v3348_v63  ;;  %v3363_v9 = vld [vmem:[#allocation11 + $0x128] sm:$0xff] }
 0x487   : > { %v10743_v57 = vadd.f32 %v6472_v52, %v10638_v51  ;;  %5513 = vst [vmem:[#allocation11 + $0xa8] sm:$0xff] %v5429_v32  ;;  %v3365_v32 = vld [vmem:[#allocation11 + $0x138] sm:$0xff] }
 0x488   : > { %5514 = vst [vmem:[#allocation11 + $0xb0] sm:$0xff] %v5430_v42 }
 0x489   : > { %v6473_v60 = vpop.f32.mrb[220].mxu0 }
 0x48a   : > { %v6474_v14 = vpop.f32.mrb[221].mxu0  ;;  %v4874_v22 = vpop.f32.mrb[72].mxu1 }
 0x48b   : > { %v6475_v2 = vadd.f32 %v6474_v14, %v6473_v60  ;;  %v6476_v47 = vpop.f32.mrb[222].mxu0  ;;  %v5432_v5 = vadd.f32 %v4874_v22, %v3350_v29  ;;  %v4876_v12 = vpop.f32.mrb[73].mxu1  ;;  %v3366_v60 = vld [vmem:[#allocation11 + $0x140] sm:$0xff]  ;;  %v3368_v22 = vld [vmem:[#allocation11 + $0x150] sm:$0xff] }
 0x48c   : > { %v6477_v62 = vpop.f32.mrb[223].mxu0  ;;  %v5433_v38 = vadd.f32 %v4876_v12, %v3351_v34  ;;  %v4878_v45 = vpop.f32.mrb[74].mxu1 }
 0x48d   : > { %v10746_v18 = vadd.f32 %v6475_v2, %v10642_v31  ;;  %v6478_v51 = vadd.f32 %v6477_v62, %v6476_v47  ;;  %5516 = vst [vmem:[#allocation11 + $0xc0] sm:$0xff] %v5432_v5  ;;  %v5435_v35 = vadd.f32 %v4878_v45, %v3353_v59  ;;  %v4880_v56 = vpop.f32.mrb[75].mxu1  ;;  %v3369_v59 = vld [vmem:[#allocation11 + $0x158] sm:$0xff]  ;;  %v3371_v5 = vld [vmem:[#allocation11 + $0x168] sm:$0xff] }
 0x48e   : > { %5517 = vst [vmem:[#allocation11 + $0xc8] sm:$0xff] %v5433_v38  ;;  %v5436_v28 = vadd.f32 %v4880_v56, %v3354_v53 }
 0x48f   : > { %v10749_v3 = vadd.f32 %v6478_v51, %v10644_v8  ;;  %5519 = vst [vmem:[#allocation11 + $0xd8] sm:$0xff] %v5435_v35  ;;  %v3362_v8 = vld [vmem:[#allocation11 + $0x120] sm:$0xff]  ;;  %v3372_v51 = vld [vmem:[#allocation11 + $0x170] sm:$0xff] }
 0x490   : > { %5520 = vst [vmem:[#allocation11 + $0xe0] sm:$0xff] %v5436_v28 }
 0x492   : > { %v4884_v27 = vpop.f32.mrb[76].mxu1 }
 0x493   : > { %v5438_v0 = vadd.f32 %v4884_v27, %v3356_v24  ;;  %v4886_v31 = vpop.f32.mrb[77].mxu1  ;;  %v3374_v24 = vld [vmem:[#allocation11 + $0x180] sm:$0xff] }
 0x494   : > { %v5439_v11 = vadd.f32 %v4886_v31, %v3357_v13  ;;  %v4888_v40 = vpop.f32.mrb[78].mxu1  ;;  %v3375_v13 = vld [vmem:[#allocation11 + $0x188] sm:$0xff] }
 0x495   : > { %5522 = vst [vmem:[#allocation11 + $0xf0] sm:$0xff] %v5438_v0  ;;  %v5441_v17 = vadd.f32 %v4888_v40, %v3359_v4  ;;  %v4890_v63 = vpop.f32.mrb[79].mxu1  ;;  %v3377_v4 = vld [vmem:[#allocation11 + $0x198] sm:$0xff] }
 0x496   : > { %5523 = vst [vmem:[#allocation11 + $0xf8] sm:$0xff] %v5439_v11  ;;  %v5442_v52 = vadd.f32 %v4890_v63, %v3360_v25  ;;  %v3378_v25 = vld [vmem:[#allocation11 + $0x1a0] sm:$0xff] }
 0x497   : > { %5525 = vst [vmem:[#allocation11 + $0x108] sm:$0xff] %v5441_v17 }
 0x498   : > { %5526 = vst [vmem:[#allocation11 + $0x110] sm:$0xff] %v5442_v52 }
 0x49a   : > { %v4894_v41 = vpop.f32.mrb[80].mxu1 }
 0x49b   : > { %v5444_v1 = vadd.f32 %v4894_v41, %v3362_v8  ;;  %v4896_v42 = vpop.f32.mrb[81].mxu1  ;;  %v3380_v8 = vld [vmem:[#allocation11 + $0x1b0] sm:$0xff] }
 0x49c   : > { %v5445_v29 = vadd.f32 %v4896_v42, %v3363_v9  ;;  %v4898_v14 = vpop.f32.mrb[82].mxu1  ;;  %v3381_v9 = vld [vmem:[#allocation11 + $0x1b8] sm:$0xff] }
 0x49d   : > { %5528 = vst [vmem:[#allocation11 + $0x120] sm:$0xff] %v5444_v1  ;;  %v5447_v34 = vadd.f32 %v4898_v14, %v3365_v32  ;;  %v4900_v2 = vpop.f32.mrb[83].mxu1  ;;  %v3383_v32 = vld [vmem:[#allocation11 + $0x1c8] sm:$0xff] }
 0x49e   : > { %5529 = vst [vmem:[#allocation11 + $0x128] sm:$0xff] %v5445_v29  ;;  %v5448_v47 = vadd.f32 %v4900_v2, %v3366_v60  ;;  %v3384_v60 = vld [vmem:[#allocation11 + $0x1d0] sm:$0xff] }
 0x49f   : > { %5531 = vst [vmem:[#allocation11 + $0x138] sm:$0xff] %v5447_v34 }
 0x4a0   : > { %5532 = vst [vmem:[#allocation11 + $0x140] sm:$0xff] %v5448_v47 }
 0x4a2   : > { %v4904_v62 = vpop.f32.mrb[84].mxu1 }
 0x4a3   : > { %v5450_v12 = vadd.f32 %v4904_v62, %v3368_v22  ;;  %v4906_v53 = vpop.f32.mrb[85].mxu1  ;;  %v3386_v22 = vld [vmem:[#allocation11 + $0x1e0] sm:$0xff] }
 0x4a4   : > { %v5451_v38 = vadd.f32 %v4906_v53, %v3369_v59  ;;  %v4908_v45 = vpop.f32.mrb[86].mxu1  ;;  %v3387_v59 = vld [vmem:[#allocation11 + $0x1e8] sm:$0xff] }
 0x4a5   : > { %5534 = vst [vmem:[#allocation11 + $0x150] sm:$0xff] %v5450_v12  ;;  %v5453_v35 = vadd.f32 %v4908_v45, %v3371_v5  ;;  %v4910_v56 = vpop.f32.mrb[87].mxu1  ;;  %v3389_v5 = vld [vmem:[#allocation11 + $0x1f8] sm:$0xff] }
 0x4a6   : > { %5535 = vst [vmem:[#allocation11 + $0x158] sm:$0xff] %v5451_v38  ;;  %v5454_v28 = vadd.f32 %v4910_v56, %v3372_v51  ;;  %v3390_v51 = vld [vmem:[#allocation11 + $0x200] sm:$0xff] }
 0x4a7   : > { %5537 = vst [vmem:[#allocation11 + $0x168] sm:$0xff] %v5453_v35 }
 0x4a8   : > { %5538 = vst [vmem:[#allocation11 + $0x170] sm:$0xff] %v5454_v28 }
 0x4aa   : > { %v4914_v27 = vpop.f32.mrb[88].mxu1 }
 0x4ab   : > { %v5456_v0 = vadd.f32 %v4914_v27, %v3374_v24  ;;  %v4916_v31 = vpop.f32.mrb[89].mxu1  ;;  %v3392_v24 = vld [vmem:[#allocation11 + $0x210] sm:$0xff] }
 0x4ac   : > { %v5457_v11 = vadd.f32 %v4916_v31, %v3375_v13  ;;  %v4918_v40 = vpop.f32.mrb[90].mxu1  ;;  %v3393_v13 = vld [vmem:[#allocation11 + $0x218] sm:$0xff] }
 0x4ad   : > { %5540 = vst [vmem:[#allocation11 + $0x180] sm:$0xff] %v5456_v0  ;;  %v5459_v17 = vadd.f32 %v4918_v40, %v3377_v4  ;;  %v4920_v63 = vpop.f32.mrb[91].mxu1  ;;  %v3395_v4 = vld [vmem:[#allocation11 + $0x228] sm:$0xff] }
 0x4ae   : > { %5541 = vst [vmem:[#allocation11 + $0x188] sm:$0xff] %v5457_v11  ;;  %v5460_v52 = vadd.f32 %v4920_v63, %v3378_v25  ;;  %v3396_v25 = vld [vmem:[#allocation11 + $0x230] sm:$0xff] }
 0x4af   : > { %5543 = vst [vmem:[#allocation11 + $0x198] sm:$0xff] %v5459_v17 }
 0x4b0   : > { %5544 = vst [vmem:[#allocation11 + $0x1a0] sm:$0xff] %v5460_v52 }
 0x4b2   : > { %v4924_v41 = vpop.f32.mrb[92].mxu1 }
 0x4b3   : > { %v5462_v1 = vadd.f32 %v4924_v41, %v3380_v8  ;;  %v4926_v42 = vpop.f32.mrb[93].mxu1  ;;  %v3398_v8 = vld [vmem:[#allocation11 + $0x240] sm:$0xff] }
 0x4b4   : > { %v5463_v29 = vadd.f32 %v4926_v42, %v3381_v9  ;;  %v4928_v14 = vpop.f32.mrb[94].mxu1  ;;  %v3399_v9 = vld [vmem:[#allocation11 + $0x248] sm:$0xff] }
 0x4b5   : > { %5546 = vst [vmem:[#allocation11 + $0x1b0] sm:$0xff] %v5462_v1  ;;  %v5465_v34 = vadd.f32 %v4928_v14, %v3383_v32  ;;  %v4930_v2 = vpop.f32.mrb[95].mxu1  ;;  %v3401_v32 = vld [vmem:[#allocation11 + $0x258] sm:$0xff] }
 0x4b6   : > { %5547 = vst [vmem:[#allocation11 + $0x1b8] sm:$0xff] %v5463_v29  ;;  %v5466_v47 = vadd.f32 %v4930_v2, %v3384_v60  ;;  %v3402_v60 = vld [vmem:[#allocation11 + $0x260] sm:$0xff] }
 0x4b7   : > { %5549 = vst [vmem:[#allocation11 + $0x1c8] sm:$0xff] %v5465_v34 }
 0x4b8   : > { %5550 = vst [vmem:[#allocation11 + $0x1d0] sm:$0xff] %v5466_v47 }
 0x4ba   : > { %v4934_v62 = vpop.f32.mrb[96].mxu1 }
 0x4bb   : > { %v5468_v12 = vadd.f32 %v4934_v62, %v3386_v22  ;;  %v4936_v53 = vpop.f32.mrb[97].mxu1  ;;  %v3404_v22 = vld [vmem:[#allocation11 + $0x270] sm:$0xff] }
 0x4bc   : > { %v5469_v38 = vadd.f32 %v4936_v53, %v3387_v59  ;;  %v4938_v45 = vpop.f32.mrb[98].mxu1  ;;  %v3405_v59 = vld [vmem:[#allocation11 + $0x278] sm:$0xff] }
 0x4bd   : > { %5552 = vst [vmem:[#allocation11 + $0x1e0] sm:$0xff] %v5468_v12  ;;  %v5471_v35 = vadd.f32 %v4938_v45, %v3389_v5  ;;  %v4940_v56 = vpop.f32.mrb[99].mxu1  ;;  %v3407_v5 = vld [vmem:[#allocation11 + $0x288] sm:$0xff] }
 0x4be   : > { %5553 = vst [vmem:[#allocation11 + $0x1e8] sm:$0xff] %v5469_v38  ;;  %v5472_v28 = vadd.f32 %v4940_v56, %v3390_v51  ;;  %v3408_v51 = vld [vmem:[#allocation11 + $0x290] sm:$0xff] }
 0x4bf   : > { %5555 = vst [vmem:[#allocation11 + $0x1f8] sm:$0xff] %v5471_v35 }
 0x4c0   : > { %5556 = vst [vmem:[#allocation11 + $0x200] sm:$0xff] %v5472_v28 }
 0x4c2   : > { %v4944_v27 = vpop.f32.mrb[100].mxu1 }
 0x4c3   : > { %v5474_v0 = vadd.f32 %v4944_v27, %v3392_v24  ;;  %v4946_v31 = vpop.f32.mrb[101].mxu1 }
 0x4c4   : > { %v5475_v11 = vadd.f32 %v4946_v31, %v3393_v13  ;;  %v4948_v40 = vpop.f32.mrb[102].mxu1 }
 0x4c5   : > { %5558 = vst [vmem:[#allocation11 + $0x210] sm:$0xff] %v5474_v0  ;;  %v5477_v17 = vadd.f32 %v4948_v40, %v3395_v4  ;;  %v4950_v63 = vpop.f32.mrb[103].mxu1  ;;  %v3328_v0 = vld [vmem:[#allocation11 + $0x10] sm:$0xff]  ;;  %v3331_v40 = vld [vmem:[#allocation11 + $0x28] sm:$0xff] }
 0x4c6   : > { %5559 = vst [vmem:[#allocation11 + $0x218] sm:$0xff] %v5475_v11  ;;  %v5478_v52 = vadd.f32 %v4950_v63, %v3396_v25 }
 0x4c7   : > { %5561 = vst [vmem:[#allocation11 + $0x228] sm:$0xff] %v5477_v17 }
 0x4c8   : > { %5562 = vst [vmem:[#allocation11 + $0x230] sm:$0xff] %v5478_v52 }
 0x4ca   : > { %v4954_v41 = vpop.f32.mrb[104].mxu1 }
 0x4cb   : > { %v5480_v1 = vadd.f32 %v4954_v41, %v3398_v8  ;;  %v4956_v42 = vpop.f32.mrb[105].mxu1 }
 0x4cc   : > { %v5481_v29 = vadd.f32 %v4956_v42, %v3399_v9  ;;  %v4958_v14 = vpop.f32.mrb[106].mxu1 }
 0x4cd   : > { %5564 = vst [vmem:[#allocation11 + $0x240] sm:$0xff] %v5480_v1  ;;  %v5483_v34 = vadd.f32 %v4958_v14, %v3401_v32  ;;  %v4960_v2 = vpop.f32.mrb[107].mxu1  ;;  %v3334_v1 = vld [vmem:[#allocation11 + $0x40] sm:$0xff]  ;;  %v3337_v14 = vld [vmem:[#allocation11 + $0x58] sm:$0xff] }
 0x4ce   : > { %5565 = vst [vmem:[#allocation11 + $0x248] sm:$0xff] %v5481_v29  ;;  %v5484_v47 = vadd.f32 %v4960_v2, %v3402_v60 }
 0x4cf   : > { %5567 = vst [vmem:[#allocation11 + $0x258] sm:$0xff] %v5483_v34 }
 0x4d0   : > { %5568 = vst [vmem:[#allocation11 + $0x260] sm:$0xff] %v5484_v47 }
 0x4d2   : > { %v4964_v62 = vpop.f32.mrb[108].mxu1 }
 0x4d3   : > { %v5486_v12 = vadd.f32 %v4964_v62, %v3404_v22  ;;  %v4966_v53 = vpop.f32.mrb[109].mxu1  ;;  %v3340_v62 = vld [vmem:[#allocation11 + $0x70] sm:$0xff] }
 0x4d4   : > { %v5487_v38 = vadd.f32 %v4966_v53, %v3405_v59  ;;  %v4968_v45 = vpop.f32.mrb[110].mxu1 }
 0x4d5   : > { %5570 = vst [vmem:[#allocation11 + $0x270] sm:$0xff] %v5486_v12  ;;  %v5489_v35 = vadd.f32 %v4968_v45, %v3407_v5  ;;  %v4970_v56 = vpop.f32.mrb[111].mxu1 }
 0x4d6   : > { %5571 = vst [vmem:[#allocation11 + $0x278] sm:$0xff] %v5487_v38  ;;  %v5490_v28 = vadd.f32 %v4970_v56, %v3408_v51  ;;  %v3343_v51 = vld [vmem:[#allocation11 + $0x88] sm:$0xff] }
 0x4d7   : > { %5573 = vst [vmem:[#allocation11 + $0x288] sm:$0xff] %v5489_v35 }
 0x4d8   : > { %5574 = vst [vmem:[#allocation11 + $0x290] sm:$0xff] %v5490_v28 }
 0x4da   : > { %v6495_v24 = vpop.f32.mrb[112].mxu1 }
 0x4db   : > { %v6496_v13 = vpop.f32.mrb[113].mxu1 }
 0x4dc   : > { %v6497_v27 = vadd.f32 %v6496_v13, %v6495_v24  ;;  %v6498_v4 = vpop.f32.mrb[114].mxu1  ;;  %v3346_v24 = vld [vmem:[#allocation11 + $0xa0] sm:$0xff] }
 0x4dd   : > { %v6499_v31 = vpop.f32.mrb[115].mxu1 }
 0x4de   : > { %v5298_v25 = vadd.f32 %v6497_v27, %v10649_v19  ;;  %v6500_v11 = vadd.f32 %v6499_v31, %v6498_v4 }
 0x4e0   : > { %v5410_v17 = vadd.f32 %v5298_v25, %v3328_v0  ;;  %v5301_v63 = vadd.f32 %v6500_v11, %v10652_v50  ;;  %v3349_v0 = vld [vmem:[#allocation11 + $0xb8] sm:$0xff] }
 0x4e2   : > { %5494 = vst [vmem:[#allocation11 + $0x10] sm:$0xff] %v5410_v17  ;;  %v5413_v52 = vadd.f32 %v5301_v63, %v3331_v40  ;;  %v6501_v8 = vpop.f32.mrb[116].mxu1  ;;  %v3352_v63 = vld [vmem:[#allocation11 + $0xd0] sm:$0xff] }
 0x4e3   : > { %v6502_v9 = vpop.f32.mrb[117].mxu1 }
 0x4e4   : > { %5497 = vst [vmem:[#allocation11 + $0x28] sm:$0xff] %v5413_v52  ;;  %v6503_v41 = vadd.f32 %v6502_v9, %v6501_v8  ;;  %v6504_v32 = vpop.f32.mrb[118].mxu1 }
 0x4e5   : > { %v6505_v42 = vpop.f32.mrb[119].mxu1 }
 0x4e6   : > { %v5306_v60 = vadd.f32 %v6503_v41, %v10657_v16  ;;  %v6506_v29 = vadd.f32 %v6505_v42, %v6504_v32  ;;  %v3355_v41 = vld [vmem:[#allocation11 + $0xe8] sm:$0xff] }
 0x4e8   : > { %v5416_v34 = vadd.f32 %v5306_v60, %v3334_v1  ;;  %v5309_v19 = vadd.f32 %v6506_v29, %v10660_v10 }
 0x4ea   : > { %5500 = vst [vmem:[#allocation11 + $0x40] sm:$0xff] %v5416_v34  ;;  %v5419_v2 = vadd.f32 %v5309_v19, %v3337_v14  ;;  %v6507_v47 = vpop.f32.mrb[120].mxu1  ;;  %v3358_v14 = vld [vmem:[#allocation11 + $0x100] sm:$0xff] }
 0x4eb   : > { %v6508_v50 = vpop.f32.mrb[121].mxu1 }
 0x4ec   : > { %5503 = vst [vmem:[#allocation11 + $0x58] sm:$0xff] %v5419_v2  ;;  %v6509_v22 = vadd.f32 %v6508_v50, %v6507_v47  ;;  %v6510_v59 = vpop.f32.mrb[122].mxu1  ;;  %v3361_v47 = vld [vmem:[#allocation11 + $0x118] sm:$0xff] }
 0x4ed   : > { %v6511_v5 = vpop.f32.mrb[123].mxu1 }
 0x4ee   : > { %v5314_v12 = vadd.f32 %v6509_v22, %v10665_v46  ;;  %v6512_v53 = vadd.f32 %v6511_v5, %v6510_v59 }
 0x4f0   : > { %v5422_v38 = vadd.f32 %v5314_v12, %v3340_v62  ;;  %v5317_v16 = vadd.f32 %v6512_v53, %v10668_v44  ;;  %v3364_v12 = vld [vmem:[#allocation11 + $0x130] sm:$0xff] }
 0x4f2   : > { %5506 = vst [vmem:[#allocation11 + $0x70] sm:$0xff] %v5422_v38  ;;  %v5425_v45 = vadd.f32 %v5317_v16, %v3343_v51  ;;  %v6513_v35 = vpop.f32.mrb[124].mxu1  ;;  %v3367_v16 = vld [vmem:[#allocation11 + $0x148] sm:$0xff] }
 0x4f3   : > { %v6514_v10 = vpop.f32.mrb[125].mxu1 }
 0x4f4   : > { %5509 = vst [vmem:[#allocation11 + $0x88] sm:$0xff] %v5425_v45  ;;  %v6515_v56 = vadd.f32 %v6514_v10, %v6513_v35  ;;  %v6516_v28 = vpop.f32.mrb[126].mxu1 }
 0x4f5   : > { %v6517_v13 = vpop.f32.mrb[127].mxu1 }
 0x4f6   : > { %v5322_v27 = vadd.f32 %v6515_v56, %v10673_v49  ;;  %v6518_v4 = vadd.f32 %v6517_v13, %v6516_v28 }
 0x4f8   : > { %v5428_v31 = vadd.f32 %v5322_v27, %v3346_v24  ;;  %v5325_v46 = vadd.f32 %v6518_v4, %v10676_v21  ;;  %v3370_v24 = vld [vmem:[#allocation11 + $0x160] sm:$0xff] }
 0x4fa   : > { %5512 = vst [vmem:[#allocation11 + $0xa0] sm:$0xff] %v5428_v31  ;;  %v5431_v25 = vadd.f32 %v5325_v46, %v3349_v0  ;;  %v6519_v11 = vpop.f32.mrb[128].mxu1  ;;  %v3373_v0 = vld [vmem:[#allocation11 + $0x178] sm:$0xff] }
 0x4fb   : > { %v6520_v44 = vpop.f32.mrb[129].mxu1 }
 0x4fc   : > { %5515 = vst [vmem:[#allocation11 + $0xb8] sm:$0xff] %v5431_v25  ;;  %v6521_v40 = vadd.f32 %v6520_v44, %v6519_v11  ;;  %v6522_v17 = vpop.f32.mrb[130].mxu1 }
 0x4fd   : > { %v6523_v52 = vpop.f32.mrb[131].mxu1 }
 0x4fe   : > { %v5330_v8 = vadd.f32 %v6521_v40, %v10681_v55  ;;  %v6524_v9 = vadd.f32 %v6523_v52, %v6522_v17  ;;  %v3376_v40 = vld [vmem:[#allocation11 + $0x190] sm:$0xff] }
 0x500   : > { %v5434_v32 = vadd.f32 %v5330_v8, %v3352_v63  ;;  %v5333_v49 = vadd.f32 %v6524_v9, %v10684_v39  ;;  %v3379_v8 = vld [vmem:[#allocation11 + $0x1a8] sm:$0xff] }
 0x502   : > { %5518 = vst [vmem:[#allocation11 + $0xd0] sm:$0xff] %v5434_v32  ;;  %v5437_v1 = vadd.f32 %v5333_v49, %v3355_v41  ;;  %v6525_v42 = vpop.f32.mrb[132].mxu1 }
 0x503   : > { %v6526_v21 = vpop.f32.mrb[133].mxu1 }
 0x504   : > { %5521 = vst [vmem:[#allocation11 + $0xe8] sm:$0xff] %v5437_v1  ;;  %v6527_v60 = vadd.f32 %v6526_v21, %v6525_v42  ;;  %v6528_v29 = vpop.f32.mrb[134].mxu1  ;;  %v3382_v42 = vld [vmem:[#allocation11 + $0x1c0] sm:$0xff] }
 0x505   : > { %v6529_v34 = vpop.f32.mrb[135].mxu1 }
 0x506   : > { %v5338_v19 = vadd.f32 %v6527_v60, %v10689_v26  ;;  %v6530_v2 = vadd.f32 %v6529_v34, %v6528_v29 }
 0x508   : > { %v5440_v50 = vadd.f32 %v5338_v19, %v3358_v14  ;;  %v5341_v55 = vadd.f32 %v6530_v2, %v10692_v36  ;;  %v3385_v14 = vld [vmem:[#allocation11 + $0x1d8] sm:$0xff] }
 0x50a   : > { %5524 = vst [vmem:[#allocation11 + $0x100] sm:$0xff] %v5440_v50  ;;  %v5443_v22 = vadd.f32 %v5341_v55, %v3361_v47  ;;  %v6531_v59 = vpop.f32.mrb[136].mxu1  ;;  %v3388_v55 = vld [vmem:[#allocation11 + $0x1f0] sm:$0xff] }
 0x50b   : > { %v6532_v39 = vpop.f32.mrb[137].mxu1 }
 0x50c   : > { %5527 = vst [vmem:[#allocation11 + $0x118] sm:$0xff] %v5443_v22  ;;  %v6533_v62 = vadd.f32 %v6532_v39, %v6531_v59  ;;  %v6534_v5 = vpop.f32.mrb[138].mxu1 }
 0x50d   : > { %v6535_v53 = vpop.f32.mrb[139].mxu1 }
 0x50e   : > { %v5346_v51 = vadd.f32 %v6533_v62, %v10697_v58  ;;  %v6536_v38 = vadd.f32 %v6535_v53, %v6534_v5  ;;  %v3391_v62 = vld [vmem:[#allocation11 + $0x208] sm:$0xff] }
 0x510   : > { %v5446_v45 = vadd.f32 %v5346_v51, %v3364_v12  ;;  %v5349_v26 = vadd.f32 %v6536_v38, %v10700_v7 }
 0x512   : > { %5530 = vst [vmem:[#allocation11 + $0x130] sm:$0xff] %v5446_v45  ;;  %v5449_v35 = vadd.f32 %v5349_v26, %v3367_v16  ;;  %v6537_v10 = vpop.f32.mrb[140].mxu1  ;;  %v3394_v16 = vld [vmem:[#allocation11 + $0x220] sm:$0xff] }
 0x513   : > { %v6538_v36 = vpop.f32.mrb[141].mxu1 }
 0x514   : > { %5533 = vst [vmem:[#allocation11 + $0x148] sm:$0xff] %v5449_v35  ;;  %v6539_v56 = vadd.f32 %v6538_v36, %v6537_v10  ;;  %v6540_v28 = vpop.f32.mrb[142].mxu1  ;;  %v3397_v10 = vld [vmem:[#allocation11 + $0x238] sm:$0xff] }
 0x515   : > { %v6541_v13 = vpop.f32.mrb[143].mxu1 }
 0x516   : > { %v5354_v27 = vadd.f32 %v6539_v56, %v10705_v43  ;;  %v6542_v4 = vadd.f32 %v6541_v13, %v6540_v28 }
 0x518   : > { %v5452_v31 = vadd.f32 %v5354_v27, %v3370_v24  ;;  %v5357_v58 = vadd.f32 %v6542_v4, %v10708_v15  ;;  %v3400_v27 = vld [vmem:[#allocation11 + $0x250] sm:$0xff] }
 0x51a   : > { %5536 = vst [vmem:[#allocation11 + $0x160] sm:$0xff] %v5452_v31  ;;  %v5455_v46 = vadd.f32 %v5357_v58, %v3373_v0  ;;  %v6543_v25 = vpop.f32.mrb[144].mxu1  ;;  %v3403_v58 = vld [vmem:[#allocation11 + $0x268] sm:$0xff] }
 0x51b   : > { %v6544_v7 = vpop.f32.mrb[145].mxu1 }
 0x51c   : > { %5539 = vst [vmem:[#allocation11 + $0x178] sm:$0xff] %v5455_v46  ;;  %v6545_v11 = vadd.f32 %v6544_v7, %v6543_v25  ;;  %v6546_v44 = vpop.f32.mrb[146].mxu1 }
 0x51d   : > { %v6547_v17 = vpop.f32.mrb[147].mxu1 }
 0x51e   : > { %v5362_v63 = vadd.f32 %v6545_v11, %v10713_v20  ;;  %v6548_v52 = vadd.f32 %v6547_v17, %v6546_v44 }
 0x520   : > { %v5458_v9 = vadd.f32 %v5362_v63, %v3376_v40  ;;  %v5365_v43 = vadd.f32 %v6548_v52, %v10716_v61  ;;  %v3406_v40 = vld [vmem:[#allocation11 + $0x280] sm:$0xff] }
 0x522   : > { %5542 = vst [vmem:[#allocation11 + $0x190] sm:$0xff] %v5458_v9  ;;  %v5461_v41 = vadd.f32 %v5365_v43, %v3379_v8  ;;  %v6549_v32 = vpop.f32.mrb[148].mxu1  ;;  %v3409_v8 = vld [vmem:[#allocation11 + $0x298] sm:$0xff] }
 0x523   : > { %v6550_v15 = vpop.f32.mrb[149].mxu1 }
 0x524   : > { %5545 = vst [vmem:[#allocation11 + $0x1a8] sm:$0xff] %v5461_v41  ;;  %v6551_v49 = vadd.f32 %v6550_v15, %v6549_v32  ;;  %v6552_v1 = vpop.f32.mrb[150].mxu1  ;;  %v5664_v41 = vld [vmem:[#allocation10] sm:$0x7] (!%p6272_p2)  ;;  %v5581_v32 = vld [vmem:[#allocation11 + $0x8] sm:$0xff] (!%p6272_p2) }
 0x525   : > { %v6553_v21 = vpop.f32.mrb[151].mxu1  ;;  %v11143_v15 = vld [vmem:[#allocation24_spill] sm:$0xff] (!%p6272_p2) }
 0x526   : > { %v5370_v60 = vadd.f32 %v6551_v49, %v10721_v33  ;;  %v6554_v29 = vadd.f32 %v6553_v21, %v6552_v1  ;;  %v11144_v49 = vsub.s32 (!%p6272_p2), 0, %v11143_v15  ;;  %v5582_v21 = vld [vmem:[#allocation11 + $0x10] sm:$0xff] (!%p6272_p2) }
 0x528   : > { %v5464_v34 = vadd.f32 %v5370_v60, %v3382_v42  ;;  %v5373_v20 = vadd.f32 %v6554_v29, %v10724_v6  ;;  %v10782_v1 = vrot.slane (!%p6272_p2), %v5664_v41, %v11144_v49  ;;  %v5583_v29 = vld [vmem:[#allocation11 + $0x18] sm:$0xff] (!%p6272_p2) }
 0x529   : > { %v5611_v49 = vld [vmem:[#allocation11 + $0xf8] sm:$0xff] (!%p6272_p2) }
 0x52a   : > { %5548 = vst [vmem:[#allocation11 + $0x1c0] sm:$0xff] %v5464_v34  ;;  %v5467_v19 = vadd.f32 %v5373_v20, %v3385_v14  ;;  %v6555_v2 = vpop.f32.mrb[152].mxu1  ;;  %v5584_v14 = vld [vmem:[#allocation11 + $0x20] sm:$0xff] (!%p6272_p2)  ;;  %v5585_v34 = vld [vmem:[#allocation11 + $0x28] sm:$0xff] (!%p6272_p2)  ;;  %v5586_v20 = vld [vmem:[#allocation11 + $0x30] sm:$0xff] (!%p6272_p2) }
 0x52b   : > { %v6556_v61 = vpop.f32.mrb[153].mxu1 }
 0x52c   : > { %5551 = vst [vmem:[#allocation11 + $0x1d8] sm:$0xff] %v5467_v19  ;;  %v6557_v47 = vadd.f32 %v6556_v61, %v6555_v2  ;;  %v6558_v50 = vpop.f32.mrb[154].mxu1  ;;  %v5587_v19 = vld [vmem:[#allocation11 + $0x38] sm:$0xff] (!%p6272_p2) }
 0x52d   : > { %v6559_v22 = vpop.f32.mrb[155].mxu1 }
 0x52e   : > { %v5378_v59 = vadd.f32 %v6557_v47, %v10728_v54  ;;  %v6560_v39 = vadd.f32 %v6559_v22, %v6558_v50  ;;  %v5684_v50 = vadd.f32 (!%p6272_p2), %v10782_v1, %v5583_v29  ;;  %v5589_v22 = vld [vmem:[#allocation11 + $0x48] sm:$0xff] (!%p6272_p2)  ;;  %v5612_v29 = vld [vmem:[#allocation11 + $0x100] sm:$0xff] (!%p6272_p2) }
 0x530   : > { %v5470_v5 = vadd.f32 %v5378_v59, %v3388_v55  ;;  %v5381_v33 = vadd.f32 %v6560_v39, %v10731_v37  ;;  %v5588_v55 = vld [vmem:[#allocation11 + $0x40] sm:$0xff] (!%p6272_p2)  ;;  %v5590_v59 = vld [vmem:[#allocation11 + $0x50] sm:$0xff] (!%p6272_p2)  ;;  %5768 = vst [vmem:[#allocation11 + $0x18] sm:$0xff] (!%p6272_p2), %v5684_v50  ;;  %v5617_v50 = vld [vmem:[#allocation11 + $0x128] sm:$0xff] (!%p6272_p2) }
 0x532   : > { %5554 = vst [vmem:[#allocation11 + $0x1f0] sm:$0xff] %v5470_v5  ;;  %v5473_v12 = vadd.f32 %v5381_v33, %v3391_v62  ;;  %v6561_v53 = vpop.f32.mrb[156].mxu1  ;;  %v5687_v5 = vadd.f32 (!%p6272_p2), %v10782_v1, %v5586_v20 }
 0x533   : > { %v6562_v6 = vpop.f32.mrb[157].mxu1 }
 0x534   : > { %5557 = vst [vmem:[#allocation11 + $0x208] sm:$0xff] %v5473_v12  ;;  %v6563_v51 = vadd.f32 %v6562_v6, %v6561_v53  ;;  %v6564_v38 = vpop.f32.mrb[158].mxu1  ;;  %v5591_v12 = vld [vmem:[#allocation11 + $0x58] sm:$0xff] (!%p6272_p2)  ;;  %v5592_v53 = vld [vmem:[#allocation11 + $0x60] sm:$0xff] (!%p6272_p2)  ;;  %v5593_v6 = vld [vmem:[#allocation11 + $0x68] sm:$0xff] (!%p6272_p2) }
 0x535   : > { %v6565_v45 = vpop.f32.mrb[159].mxu1  ;;  %5771 = vst [vmem:[#allocation11 + $0x30] sm:$0xff] (!%p6272_p2), %v5687_v5  ;;  %v5620_v5 = vld [vmem:[#allocation11 + $0x140] sm:$0xff] (!%p6272_p2) }
 0x536   : > { %v5386_v26 = vadd.f32 %v6563_v51, %v10734_v23  ;;  %v6566_v35 = vadd.f32 %v6565_v45, %v6564_v38  ;;  %v5690_v38 = vadd.f32 (!%p6272_p2), %v10782_v1, %v5589_v22 }
 0x538   : > { %v5476_v36 = vadd.f32 %v5386_v26, %v3394_v16  ;;  %v5389_v54 = vadd.f32 %v6566_v35, %v10737_v48  ;;  %v5594_v26 = vld [vmem:[#allocation11 + $0x70] sm:$0xff] (!%p6272_p2)  ;;  %v5595_v35 = vld [vmem:[#allocation11 + $0x78] sm:$0xff] (!%p6272_p2)  ;;  %5774 = vst [vmem:[#allocation11 + $0x48] sm:$0xff] (!%p6272_p2), %v5690_v38 }
 0x539   : > { %v5623_v38 = vld [vmem:[#allocation11 + $0x158] sm:$0xff] (!%p6272_p2) }
 0x53a   : > { %5560 = vst [vmem:[#allocation11 + $0x220] sm:$0xff] %v5476_v36  ;;  %v5479_v56 = vadd.f32 %v5389_v54, %v3397_v10  ;;  %v6567_v28 = vpop.f32.mrb[160].mxu1  ;;  %v5596_v10 = vld [vmem:[#allocation11 + $0x80] sm:$0xff] (!%p6272_p2)  ;;  %v5693_v36 = vadd.f32 (!%p6272_p2), %v10782_v1, %v5592_v53 }
 0x53b   : > { %v6568_v37 = vpop.f32.mrb[161].mxu1 }
 0x53c   : > { %5563 = vst [vmem:[#allocation11 + $0x238] sm:$0xff] %v5479_v56  ;;  %v6569_v24 = vadd.f32 %v6568_v37, %v6567_v28  ;;  %v6570_v13 = vpop.f32.mrb[162].mxu1  ;;  %v5696_v28 = vadd.f32 (!%p6272_p2), %v10782_v1, %v5595_v35  ;;  %v5597_v37 = vld [vmem:[#allocation11 + $0x88] sm:$0xff] (!%p6272_p2)  ;;  %5777 = vst [vmem:[#allocation11 + $0x60] sm:$0xff] (!%p6272_p2), %v5693_v36  ;;  %v5624_v35 = vld [vmem:[#allocation11 + $0x160] sm:$0xff] (!%p6272_p2) }
 0x53d   : > { %v6571_v4 = vpop.f32.mrb[163].mxu1  ;;  %v5626_v36 = vld [vmem:[#allocation11 + $0x170] sm:$0xff] (!%p6272_p2) }
 0x53e   : > { %v5394_v0 = vadd.f32 %v6569_v24, %v10740_v30  ;;  %v6572_v31 = vadd.f32 %v6571_v4, %v6570_v13  ;;  %v5598_v24 = vld [vmem:[#allocation11 + $0x90] sm:$0xff] (!%p6272_p2)  ;;  %v5599_v13 = vld [vmem:[#allocation11 + $0x98] sm:$0xff] (!%p6272_p2)  ;;  %5780 = vst [vmem:[#allocation11 + $0x78] sm:$0xff] (!%p6272_p2), %v5696_v28 }
 0x540   : > { %v5482_v46 = vadd.f32 %v5394_v0, %v3400_v27  ;;  %v5397_v23 = vadd.f32 %v6572_v31, %v10743_v57  ;;  %v5580_v57 = vld [vmem:[#allocation11] sm:$0xff] (!%p6272_p2)  ;;  %v5699_v0 = vadd.f32 (!%p6272_p2), %v10782_v1, %v5598_v24 }
 0x541   : > { %v5681_v2 = vadd.f32 (!%p6272_p2), %v10782_v1, %v5580_v57  ;;  %v5628_v24 = vld [vmem:[#allocation11 + $0x180] sm:$0xff] (!%p6272_p2) }
 0x542   : > { %5566 = vst [vmem:[#allocation11 + $0x250] sm:$0xff] %v5482_v46  ;;  %v5485_v25 = vadd.f32 %v5397_v23, %v3403_v58  ;;  %v6573_v7 = vpop.f32.mrb[164].mxu1  ;;  %v5600_v58 = vld [vmem:[#allocation11 + $0xa0] sm:$0xff] (!%p6272_p2)  ;;  %v5601_v46 = vld [vmem:[#allocation11 + $0xa8] sm:$0xff] (!%p6272_p2)  ;;  %v5602_v23 = vld [vmem:[#allocation11 + $0xb0] sm:$0xff] (!%p6272_p2) }
 0x543   : > { %v6574_v48 = vpop.f32.mrb[165].mxu1  ;;  %5765 = vst [vmem:[#allocation11] sm:$0xff] (!%p6272_p2), %v5681_v2  ;;  %5783 = vst [vmem:[#allocation11 + $0x90] sm:$0xff] (!%p6272_p2), %v5699_v0 }
 0x544   : > { %5569 = vst [vmem:[#allocation11 + $0x268] sm:$0xff] %v5485_v25  ;;  %v6575_v11 = vadd.f32 %v6574_v48, %v6573_v7  ;;  %v6576_v44 = vpop.f32.mrb[166].mxu1  ;;  %v5702_v7 = vadd.f32 (!%p6272_p2), %v10782_v1, %v5601_v46  ;;  %v5632_v46 = vld [vmem:[#allocation11 + $0x1a0] sm:$0xff] (!%p6272_p2) }
 0x545   : > { %v6577_v17 = vpop.f32.mrb[167].mxu1 }
 0x546   : > { %v5402_v63 = vadd.f32 %v6575_v11, %v10746_v18  ;;  %v6578_v52 = vadd.f32 %v6577_v17, %v6576_v44  ;;  %5579 = sbr.rel (%p6272_p2) target bundleno = 1394 (0x572), region = 68  ;;  %v11145_v18 = vsub.s32 (!%p6272_p2), 1, %v11143_v15  ;;  %v5603_v11 = vld [vmem:[#allocation11 + $0xb8] sm:$0xff] (!%p6272_p2)  ;;  %v5604_v44 = vld [vmem:[#allocation11 + $0xc0] sm:$0xff] (!%p6272_p2)  ;;  %5786 = vst [vmem:[#allocation11 + $0xa8] sm:$0xff] (!%p6272_p2), %v5702_v7 }
 0x548   : > { %v5488_v9 = vadd.f32 %v5402_v63, %v3406_v40  ;;  %v5405_v30 = vadd.f32 %v6578_v52, %v10749_v3  ;;  %v10786_v42 = vrot.slane (!%p6272_p2), %v5664_v41, %v11145_v18  ;;  %v11146_v3 = vsub.s32 (!%p6272_p2), 2, %v11143_v15  ;;  %v5605_v40 = vld [vmem:[#allocation11 + $0xc8] sm:$0xff] (!%p6272_p2)  ;;  %v5610_v15 = vld [vmem:[#allocation11 + $0xf0] sm:$0xff] (!%p6272_p2) }
 0x549   : > { %v5705_v63 = vadd.f32 (!%p6272_p2), %v10782_v1, %v5604_v44  ;;  %v5635_v44 = vld [vmem:[#allocation11 + $0x1b8] sm:$0xff] (!%p6272_p2) }
 0x54a   : > { %5572 = vst [vmem:[#allocation11 + $0x280] sm:$0xff] %v5488_v9  ;;  %v5491_v43 = vadd.f32 %v5405_v30, %v3409_v8  ;;  %v10790_v60 = vrot.slane (!%p6272_p2), %v5664_v41, %v11146_v3  ;;  %v5682_v61 = vadd.f32 (!%p6272_p2), %v10786_v42, %v5581_v32  ;;  %v5685_v39 = vadd.f32 (!%p6272_p2), %v10786_v42, %v5584_v14  ;;  %v5606_v8 = vld [vmem:[#allocation11 + $0xd0] sm:$0xff] (!%p6272_p2)  ;;  %v5607_v9 = vld [vmem:[#allocation11 + $0xd8] sm:$0xff] (!%p6272_p2)  ;;  %v5608_v30 = vld [vmem:[#allocation11 + $0xe0] sm:$0xff] (!%p6272_p2) }
 0x54b   : > { %v5688_v33 = vadd.f32 (!%p6272_p2), %v10786_v42, %v5587_v19  ;;  %v5691_v16 = vadd.f32 (!%p6272_p2), %v10786_v42, %v5590_v59  ;;  %v5694_v54 = vadd.f32 (!%p6272_p2), %v10786_v42, %v5593_v6  ;;  %v5697_v27 = vadd.f32 (!%p6272_p2), %v10786_v42, %v5596_v10  ;;  %v5609_v32 = vld [vmem:[#allocation11 + $0xe8] sm:$0xff] (!%p6272_p2)  ;;  %5789 = vst [vmem:[#allocation11 + $0xc0] sm:$0xff] (!%p6272_p2), %v5705_v63 }
 0x54c   : > { %5575 = vst [vmem:[#allocation11 + $0x298] sm:$0xff] %v5491_v43  ;;  %v5683_v47 = vadd.f32 (!%p6272_p2), %v10790_v60, %v5582_v21  ;;  %v5686_v62 = vadd.f32 (!%p6272_p2), %v10790_v60, %v5585_v34  ;;  %5766 = vst [vmem:[#allocation11 + $0x8] sm:$0xff] (!%p6272_p2), %v5682_v61  ;;  %v5689_v51 = vadd.f32 (!%p6272_p2), %v10790_v60, %v5588_v55  ;;  %v5613_v14 = vld [vmem:[#allocation11 + $0x108] sm:$0xff] (!%p6272_p2)  ;;  %v5614_v34 = vld [vmem:[#allocation11 + $0x110] sm:$0xff] (!%p6272_p2) }
 0x54d   : > { %v5692_v45 = vadd.f32 %v10790_v60, %v5591_v12  ;;  %5769 = vst [vmem:[#allocation11 + $0x20] sm:$0xff] %v5685_v39  ;;  %5772 = vst [vmem:[#allocation11 + $0x38] sm:$0xff] %v5688_v33  ;;  %v5695_v56 = vadd.f32 %v10790_v60, %v5594_v26  ;;  %v5698_v4 = vadd.f32 %v10790_v60, %v5597_v37  ;;  %v5615_v61 = vld [vmem:[#allocation11 + $0x118] sm:$0xff]  ;;  %v5618_v39 = vld [vmem:[#allocation11 + $0x130] sm:$0xff] }
 0x54e   : > { %5767 = vst [vmem:[#allocation11 + $0x10] sm:$0xff] %v5683_v47  ;;  %5770 = vst [vmem:[#allocation11 + $0x28] sm:$0xff] %v5686_v62  ;;  %v5700_v31 = vadd.f32 %v10786_v42, %v5599_v13  ;;  %v5701_v25 = vadd.f32 %v10790_v60, %v5600_v58  ;;  %v5703_v48 = vadd.f32 %v10786_v42, %v5602_v23  ;;  %v5616_v47 = vld [vmem:[#allocation11 + $0x120] sm:$0xff]  ;;  %v5619_v62 = vld [vmem:[#allocation11 + $0x138] sm:$0xff] }
 0x54f   : > { %5773 = vst [vmem:[#allocation11 + $0x40] sm:$0xff] %v5689_v51  ;;  %5775 = vst [vmem:[#allocation11 + $0x50] sm:$0xff] %v5691_v16  ;;  %v5704_v17 = vadd.f32 %v10790_v60, %v5603_v11  ;;  %v5706_v52 = vadd.f32 %v10786_v42, %v5605_v40  ;;  %v5707_v43 = vadd.f32 %v10790_v60, %v5606_v8  ;;  %v5621_v6 = vld [vmem:[#allocation11 + $0x148] sm:$0xff]  ;;  %v5622_v51 = vld [vmem:[#allocation11 + $0x150] sm:$0xff] }
 0x550   : > { %5776 = vst [vmem:[#allocation11 + $0x58] sm:$0xff] %v5692_v45  ;;  %5778 = vst [vmem:[#allocation11 + $0x68] sm:$0xff] %v5694_v54  ;;  %v5708_v57 = vadd.f32 %v10782_v1, %v5607_v9  ;;  %v5709_v41 = vadd.f32 %v10786_v42, %v5608_v30  ;;  %v5710_v18 = vadd.f32 %v10790_v60, %v5609_v32  ;;  %v5625_v10 = vld [vmem:[#allocation11 + $0x168] sm:$0xff]  ;;  %v5627_v37 = vld [vmem:[#allocation11 + $0x178] sm:$0xff] }
 0x551   : > { %5779 = vst [vmem:[#allocation11 + $0x70] sm:$0xff] %v5695_v56  ;;  %5781 = vst [vmem:[#allocation11 + $0x80] sm:$0xff] %v5697_v27  ;;  %v5711_v21 = vadd.f32 %v10782_v1, %v5610_v15  ;;  %v5712_v3 = vadd.f32 %v10786_v42, %v5611_v49  ;;  %v5713_v20 = vadd.f32 %v10790_v60, %v5612_v29  ;;  %v5629_v13 = vld [vmem:[#allocation11 + $0x188] sm:$0xff]  ;;  %v5631_v58 = vld [vmem:[#allocation11 + $0x198] sm:$0xff] }
 0x552   : > { %5782 = vst [vmem:[#allocation11 + $0x88] sm:$0xff] %v5698_v4  ;;  %5784 = vst [vmem:[#allocation11 + $0x98] sm:$0xff] %v5700_v31  ;;  %v5714_v19 = vadd.f32 %v10782_v1, %v5613_v14  ;;  %v5715_v2 = vadd.f32 %v10786_v42, %v5614_v34  ;;  %v5716_v55 = vadd.f32 %v10790_v60, %v5615_v61  ;;  %v5630_v31 = vld [vmem:[#allocation11 + $0x190] sm:$0xff]  ;;  %v5637_v8 = vld [vmem:[#allocation11 + $0x1c8] sm:$0xff] }
 0x553   : > { %5785 = vst [vmem:[#allocation11 + $0xa0] sm:$0xff] %v5701_v25  ;;  %5787 = vst [vmem:[#allocation11 + $0xb0] sm:$0xff] %v5703_v48  ;;  %v5717_v22 = vadd.f32 %v10782_v1, %v5616_v47  ;;  %v5718_v59 = vadd.f32 %v10786_v42, %v5617_v50  ;;  %v5719_v33 = vadd.f32 %v10790_v60, %v5618_v39  ;;  %v5633_v48 = vld [vmem:[#allocation11 + $0x1a8] sm:$0xff]  ;;  %v5634_v11 = vld [vmem:[#allocation11 + $0x1b0] sm:$0xff] }
 0x554   : > { %5788 = vst [vmem:[#allocation11 + $0xb8] sm:$0xff] %v5704_v17  ;;  %5790 = vst [vmem:[#allocation11 + $0xc8] sm:$0xff] %v5706_v52  ;;  %v5720_v12 = vadd.f32 %v10782_v1, %v5619_v62  ;;  %v5721_v53 = vadd.f32 %v10786_v42, %v5620_v5  ;;  %v5722_v16 = vadd.f32 %v10790_v60, %v5621_v6  ;;  %v5636_v52 = vld [vmem:[#allocation11 + $0x1c0] sm:$0xff]  ;;  %v5638_v9 = vld [vmem:[#allocation11 + $0x1d0] sm:$0xff] }
 0x555   : > { %5791 = vst [vmem:[#allocation11 + $0xd0] sm:$0xff] %v5707_v43  ;;  %5792 = vst [vmem:[#allocation11 + $0xd8] sm:$0xff] %v5708_v57  ;;  %v5723_v45 = vadd.f32 %v10782_v1, %v5622_v51  ;;  %v5724_v26 = vadd.f32 %v10786_v42, %v5623_v38  ;;  %v5725_v54 = vadd.f32 %v10790_v60, %v5624_v35  ;;  %v5640_v32 = vld [vmem:[#allocation11 + $0x1e0] sm:$0xff]  ;;  %v5641_v15 = vld [vmem:[#allocation11 + $0x1e8] sm:$0xff] }
 0x556   : > { %5793 = vst [vmem:[#allocation11 + $0xe0] sm:$0xff] %v5709_v41  ;;  %5794 = vst [vmem:[#allocation11 + $0xe8] sm:$0xff] %v5710_v18  ;;  %v5726_v56 = vadd.f32 %v10782_v1, %v5625_v10  ;;  %v5727_v28 = vadd.f32 %v10786_v42, %v5626_v36  ;;  %v5728_v27 = vadd.f32 %v10790_v60, %v5627_v37  ;;  %v5639_v41 = vld [vmem:[#allocation11 + $0x1d8] sm:$0xff]  ;;  %v5644_v14 = vld [vmem:[#allocation11 + $0x200] sm:$0xff] }
 0x557   : > { %5795 = vst [vmem:[#allocation11 + $0xf0] sm:$0xff] %v5711_v21  ;;  %5796 = vst [vmem:[#allocation11 + $0xf8] sm:$0xff] %v5712_v3  ;;  %v5729_v4 = vadd.f32 %v10782_v1, %v5628_v24  ;;  %v5730_v0 = vadd.f32 %v10786_v42, %v5629_v13  ;;  %v5731_v23 = vadd.f32 %v10790_v60, %v5630_v31  ;;  %v5642_v3 = vld [vmem:[#allocation11 + $0x1f0] sm:$0xff]  ;;  %v5643_v29 = vld [vmem:[#allocation11 + $0x1f8] sm:$0xff] }
 0x558   : > { %5797 = vst [vmem:[#allocation11 + $0x100] sm:$0xff] %v5713_v20  ;;  %5798 = vst [vmem:[#allocation11 + $0x108] sm:$0xff] %v5714_v19  ;;  %v5732_v25 = vadd.f32 %v10782_v1, %v5631_v58  ;;  %v5733_v7 = vadd.f32 %v10786_v42, %v5632_v46  ;;  %v5734_v40 = vadd.f32 %v10790_v60, %v5633_v48  ;;  %v5646_v61 = vld [vmem:[#allocation11 + $0x210] sm:$0xff]  ;;  %v5647_v47 = vld [vmem:[#allocation11 + $0x218] sm:$0xff] }
 0x559   : > { %5799 = vst [vmem:[#allocation11 + $0x110] sm:$0xff] %v5715_v2  ;;  %5800 = vst [vmem:[#allocation11 + $0x118] sm:$0xff] %v5716_v55  ;;  %v5735_v17 = vadd.f32 %v10782_v1, %v5634_v11  ;;  %v5736_v63 = vadd.f32 %v10786_v42, %v5635_v44  ;;  %v5737_v30 = vadd.f32 %v10790_v60, %v5636_v52  ;;  %v5645_v2 = vld [vmem:[#allocation11 + $0x208] sm:$0xff]  ;;  %v5650_v62 = vld [vmem:[#allocation11 + $0x230] sm:$0xff] }
 0x55a   : > { %5801 = vst [vmem:[#allocation11 + $0x120] sm:$0xff] %v5717_v22  ;;  %5802 = vst [vmem:[#allocation11 + $0x128] sm:$0xff] %v5718_v59  ;;  %v5738_v43 = vadd.f32 %v10782_v1, %v5637_v8  ;;  %v5739_v57 = vadd.f32 %v10786_v42, %v5638_v9  ;;  %v5740_v49 = vadd.f32 %v10790_v60, %v5639_v41  ;;  %v5648_v59 = vld [vmem:[#allocation11 + $0x220] sm:$0xff]  ;;  %v5649_v39 = vld [vmem:[#allocation11 + $0x228] sm:$0xff] }
 0x55b   : > { %5803 = vst [vmem:[#allocation11 + $0x130] sm:$0xff] %v5719_v33  ;;  %5804 = vst [vmem:[#allocation11 + $0x138] sm:$0xff] %v5720_v12  ;;  %v5741_v18 = vadd.f32 %v10782_v1, %v5640_v32  ;;  %v5742_v21 = vadd.f32 %v10786_v42, %v5641_v15  ;;  %v5743_v34 = vadd.f32 %v10790_v60, %v5642_v3  ;;  %v5652_v6 = vld [vmem:[#allocation11 + $0x240] sm:$0xff]  ;;  %v5653_v51 = vld [vmem:[#allocation11 + $0x248] sm:$0xff] }
 0x55c   : > { %5805 = vst [vmem:[#allocation11 + $0x140] sm:$0xff] %v5721_v53  ;;  %5806 = vst [vmem:[#allocation11 + $0x148] sm:$0xff] %v5722_v16  ;;  %v5744_v20 = vadd.f32 %v10782_v1, %v5643_v29  ;;  %v5745_v19 = vadd.f32 %v10786_v42, %v5644_v14  ;;  %v5746_v50 = vadd.f32 %v10790_v60, %v5645_v2  ;;  %v5651_v53 = vld [vmem:[#allocation11 + $0x238] sm:$0xff]  ;;  %v5656_v10 = vld [vmem:[#allocation11 + $0x260] sm:$0xff] }
 0x55d   : > { %5807 = vst [vmem:[#allocation11 + $0x150] sm:$0xff] %v5723_v45  ;;  %5808 = vst [vmem:[#allocation11 + $0x158] sm:$0xff] %v5724_v26  ;;  %v5747_v55 = vadd.f32 %v10782_v1, %v5646_v61  ;;  %v5748_v22 = vadd.f32 %v10786_v42, %v5647_v47  ;;  %v5749_v5 = vadd.f32 %v10790_v60, %v5648_v59  ;;  %v5654_v26 = vld [vmem:[#allocation11 + $0x250] sm:$0xff]  ;;  %v5655_v35 = vld [vmem:[#allocation11 + $0x258] sm:$0xff] }
 0x55e   : > { %5809 = vst [vmem:[#allocation11 + $0x160] sm:$0xff] %v5725_v54  ;;  %5810 = vst [vmem:[#allocation11 + $0x168] sm:$0xff] %v5726_v56  ;;  %v5750_v33 = vadd.f32 %v10782_v1, %v5649_v39  ;;  %v5751_v12 = vadd.f32 %v10786_v42, %v5650_v62  ;;  %v5752_v38 = vadd.f32 %v10790_v60, %v5651_v53  ;;  %v5658_v37 = vld [vmem:[#allocation11 + $0x270] sm:$0xff]  ;;  %v5659_v24 = vld [vmem:[#allocation11 + $0x278] sm:$0xff] }
 0x55f   : > { %5811 = vst [vmem:[#allocation11 + $0x170] sm:$0xff] %v5727_v28  ;;  %5812 = vst [vmem:[#allocation11 + $0x178] sm:$0xff] %v5728_v27  ;;  %v5753_v16 = vadd.f32 %v10782_v1, %v5652_v6  ;;  %v5754_v45 = vadd.f32 %v10786_v42, %v5653_v51  ;;  %v5755_v36 = vadd.f32 %v10790_v60, %v5654_v26  ;;  %v5657_v28 = vld [vmem:[#allocation11 + $0x268] sm:$0xff]  ;;  %v5662_v58 = vld [vmem:[#allocation11 + $0x290] sm:$0xff] }
 0x560   : > { %5813 = vst [vmem:[#allocation11 + $0x180] sm:$0xff] %v5729_v4  ;;  %5814 = vst [vmem:[#allocation11 + $0x188] sm:$0xff] %v5730_v0  ;;  %v5756_v54 = vadd.f32 %v10782_v1, %v5655_v35  ;;  %v5757_v56 = vadd.f32 %v10786_v42, %v5656_v10  ;;  %v5758_v13 = vadd.f32 %v10790_v60, %v5657_v28  ;;  %v5660_v0 = vld [vmem:[#allocation11 + $0x280] sm:$0xff]  ;;  %v5661_v31 = vld [vmem:[#allocation11 + $0x288] sm:$0xff] }
 0x561   : > { %5815 = vst [vmem:[#allocation11 + $0x190] sm:$0xff] %v5731_v23  ;;  %5816 = vst [vmem:[#allocation11 + $0x198] sm:$0xff] %v5732_v25  ;;  %v5759_v27 = vadd.f32 %v10782_v1, %v5658_v37  ;;  %v5760_v4 = vadd.f32 %v10786_v42, %v5659_v24  ;;  %v5761_v46 = vadd.f32 %v10790_v60, %v5660_v0 }
 0x562   : > { %5817 = vst [vmem:[#allocation11 + $0x1a0] sm:$0xff] %v5733_v7  ;;  %5818 = vst [vmem:[#allocation11 + $0x1a8] sm:$0xff] %v5734_v40  ;;  %v5762_v23 = vadd.f32 %v10782_v1, %v5661_v31  ;;  %v5763_v25 = vadd.f32 %v10786_v42, %v5662_v58  ;;  %v5663_v7 = vld [vmem:[#allocation11 + $0x298] sm:$0xff] }
 0x563   : > { %5819 = vst [vmem:[#allocation11 + $0x1b0] sm:$0xff] %v5735_v17  ;;  %5820 = vst [vmem:[#allocation11 + $0x1b8] sm:$0xff] %v5736_v63  ;;  %v5764_v48 = vadd.f32 %v10790_v60, %v5663_v7 }
 0x564   : > { %5821 = vst [vmem:[#allocation11 + $0x1c0] sm:$0xff] %v5737_v30  ;;  %5822 = vst [vmem:[#allocation11 + $0x1c8] sm:$0xff] %v5738_v43 }
 0x565   : > { %5823 = vst [vmem:[#allocation11 + $0x1d0] sm:$0xff] %v5739_v57  ;;  %5824 = vst [vmem:[#allocation11 + $0x1d8] sm:$0xff] %v5740_v49 }
 0x566   : > { %5825 = vst [vmem:[#allocation11 + $0x1e0] sm:$0xff] %v5741_v18  ;;  %5826 = vst [vmem:[#allocation11 + $0x1e8] sm:$0xff] %v5742_v21 }
 0x567   : > { %5827 = vst [vmem:[#allocation11 + $0x1f0] sm:$0xff] %v5743_v34  ;;  %5828 = vst [vmem:[#allocation11 + $0x1f8] sm:$0xff] %v5744_v20 }
 0x568   : > { %5829 = vst [vmem:[#allocation11 + $0x200] sm:$0xff] %v5745_v19  ;;  %5830 = vst [vmem:[#allocation11 + $0x208] sm:$0xff] %v5746_v50 }
 0x569   : > { %5831 = vst [vmem:[#allocation11 + $0x210] sm:$0xff] %v5747_v55  ;;  %5832 = vst [vmem:[#allocation11 + $0x218] sm:$0xff] %v5748_v22 }
 0x56a   : > { %5833 = vst [vmem:[#allocation11 + $0x220] sm:$0xff] %v5749_v5  ;;  %5834 = vst [vmem:[#allocation11 + $0x228] sm:$0xff] %v5750_v33 }
 0x56b   : > { %5835 = vst [vmem:[#allocation11 + $0x230] sm:$0xff] %v5751_v12  ;;  %5836 = vst [vmem:[#allocation11 + $0x238] sm:$0xff] %v5752_v38 }
 0x56c   : > { %5837 = vst [vmem:[#allocation11 + $0x240] sm:$0xff] %v5753_v16  ;;  %5838 = vst [vmem:[#allocation11 + $0x248] sm:$0xff] %v5754_v45 }
 0x56d   : > { %5839 = vst [vmem:[#allocation11 + $0x250] sm:$0xff] %v5755_v36  ;;  %5840 = vst [vmem:[#allocation11 + $0x258] sm:$0xff] %v5756_v54 }
 0x56e   : > { %5841 = vst [vmem:[#allocation11 + $0x260] sm:$0xff] %v5757_v56  ;;  %5842 = vst [vmem:[#allocation11 + $0x268] sm:$0xff] %v5758_v13 }
 0x56f   : > { %5843 = vst [vmem:[#allocation11 + $0x270] sm:$0xff] %v5759_v27  ;;  %5844 = vst [vmem:[#allocation11 + $0x278] sm:$0xff] %v5760_v4 }
 0x570   : > { %5845 = vst [vmem:[#allocation11 + $0x280] sm:$0xff] %v5761_v46  ;;  %5846 = vst [vmem:[#allocation11 + $0x288] sm:$0xff] %v5762_v23 }
 0x571   : > { %5847 = vst [vmem:[#allocation11 + $0x290] sm:$0xff] %v5763_v25  ;;  %5848 = vst [vmem:[#allocation11 + $0x298] sm:$0xff] %v5764_v48 }
 0x572 PF: > { %p7074_p4 = scmp.eq.s32.totalorder %s8153_s22, 1  ;;  %s8101_s28 = smov [#allocation11]  }
 0x573   : > { %s5855_s15 = sshll.u32 %s8101_s28, 4  ;;  %s5856_s15 = int_to_ptr.vmem [resolvable:$true] %s5855_s15 }
 0x574   : > { %s8011_s16 = scalar_lea.vmem %s5856_s15, 10752  ;;  %p8018_p10 = scmp.lt.s32.totalorder %s5856_s15, %s5856_s15 }
 0x575   : > { %p8012_p11 = scmp.ne.s32.totalorder %s5856_s15, %s8011_s16  ;;  %p8019_p1 = scmp.lt.s32.totalorder %s8011_s16, %s8011_s16 }
 0x577   : > { %p8013_p8 = pnand %p8012_p11, %p7074_p4  ;;  %p8020_p9 = por %p8019_p1, %p8018_p10 }
 0x579   : > { %p8014_p7 = pneg %p8013_p8 }
 0x57b   : > { %p8021_p5 = pnand %p8020_p9, %p8014_p7 }
 0x57d   : > { %8024 = shalt.err (!%p8021_p5)
}
 0x57e   : > { %s8025_s7 = scalar_lea.hbm %s10917_s5, 10752 }
 0x57f   : > { %p8026_p3 = scmp.ne.s32.totalorder %s10917_s5, %s8025_s7  ;;  %p8031_p0 = scmp.lt.u32.totalorder %s8025_s7, %s10917_s5 }
 0x581   : > { %p8027_p13 = pnand %p8026_p3, %p7074_p4 }
 0x583   : > { %p8028_p12 = pneg %p8027_p13 }
 0x585   : > { %p8033_p6 = pnand %p8031_p0, %p8028_p12 }
 0x587   : > { %8036 = shalt.err (!%p8033_p6)
}
 0x588   : > { %s8102_s9 = smov 384   ;;  %s8103_s1 = smov 24  }
 0x589   : > { %7048 = dma.vmem_to_hbm [thread:$0]  (%p7074_p4), %s5856_s15, 10752, %s10917_s5, [#allocation4], %s8102_s9, %s8102_s9, %s8103_s1  }
 0x58a   : > { %8070 = dma.done.wait (%p7074_p4), [#allocation4], 10752  }
 0x58b   : > { %8072 = vsyncadd (%p7074_p4), [#allocation4], 4294956544 }
 0x58c PF: > { %p20_p2 = scmp.ge.s32.totalorder %s8156_s23, 4   ;;  %s11147_s18 = smov %s8079_s19 }
 0x58d   : > { %s11148_s19 = smov %s8083_s20  ;;  %s11149_s20 = smov %s8166_s26 }
 0x58e   : > { %s11150_s21 = smov %s8156_s23  ;;  %22 = sbr.rel (!%p20_p2) target bundleno = 9 (0x9), region = 118 }
 0x595   :  { %5871 = vsyncpa [#allocation3], 1 }
 0x596   :  { %5873 = vsyncpa [#allocation3 + $0x1], 1 }
 0x597   :  { %5874 = vsyncpa [#allocation6], 1 }
 0x598   :  { %5876 = vsyncpa [#allocation6 + $0x1], 1 }
 0x599   :  { %5877 = vsyncpa [#allocation9], 1 }
 0x59a   :  { %5879 = vsyncpa [#allocation9 + $0x1], 1 }
 0x59b   :  { %5880 = vsyncpa [#allocation4], 1 }
 0x59c   :  { %5882 = vsyncpa [#allocation4 + $0x1], 1 }

</bundles_post_ra>
